<compile_context>
chip_gen: v7x
topology: tpu7x:2x2x1
jax: 0.10.0
libtpu: 0.0.40
codegen_flags: <defaults>
</compile_context>

<pallas_src>
import functools

import jax
import jax.numpy as jnp
from jax import lax
from jax.experimental import pallas as pl
from jax.experimental.pallas import tpu as pltpu


def _pick_tile(dim, pref, floor=128):
    """Largest power-of-two-ish tile <= pref dividing dim, else the full dim."""
    t = pref
    while t >= 2 * floor and dim % t != 0:
        t //= 2
    if dim % t != 0:
        # TODO(synk): pad to a tile multiple instead of the full-dim fallback.
        return dim
    return t


# ---------------- K-tiled fused RMSNorm + matmul (input LN -> QKV) -----------
# RMSNorm is a per-row scale, so it commutes with the matmul: accumulate
# (x * gamma) @ W_k and sum(x^2) over K tiles, apply rsqrt(mean+eps) at the end.

def _ln_matmul_kernel(x_ref, g_ref, w_ref, o_ref, acc_ref, ssq_ref, *, eps, k_full):
    k = pl.program_id(2)

    @pl.when(k == 0)
    def _init():
        acc_ref[...] = jnp.zeros_like(acc_ref)
        ssq_ref[...] = jnp.zeros_like(ssq_ref)

    x = x_ref[...].astype(jnp.float32)                        # (tm, tk)
    ssq_ref[...] += jnp.sum(x * x, axis=-1, keepdims=True)
    xg = (x * g_ref[...].astype(jnp.float32)).astype(w_ref.dtype)
    acc_ref[...] += jnp.dot(xg, w_ref[...], preferred_element_type=jnp.float32)

    @pl.when(k == pl.num_programs(2) - 1)
    def _fin():
        scale = lax.rsqrt(ssq_ref[...] / k_full + eps)
        o_ref[...] = (acc_ref[...] * scale).astype(o_ref.dtype)


def rmsnorm_matmul(x, gamma, w, eps, tm=256, tn=512, tk=512):
    T, K = x.shape
    N = w.shape[1]
    tm, tn, tk = _pick_tile(T, tm), _pick_tile(N, tn), _pick_tile(K, tk)
    kernel = functools.partial(_ln_matmul_kernel, eps=eps, k_full=K)
    return pl.pallas_call(
        kernel,
        out_shape=jax.ShapeDtypeStruct((T, N), x.dtype),
        grid=(T // tm, N // tn, K // tk),
        in_specs=[pl.BlockSpec((tm, tk), lambda i, j, k: (i, k)),
                  pl.BlockSpec((1, tk), lambda i, j, k: (0, k)),
                  pl.BlockSpec((tk, tn), lambda i, j, k: (k, j))],
        out_specs=pl.BlockSpec((tm, tn), lambda i, j, k: (i, j)),
        scratch_shapes=[pltpu.VMEM((tm, tn), jnp.float32),
                        pltpu.VMEM((tm, 1), jnp.float32)],
        compiler_params=pltpu.CompilerParams(
            dimension_semantics=("parallel", "parallel", "arbitrary")),
    )(x, gamma.reshape(1, K), w)


# -------- K-tiled fused (residual add) + RMSNorm + matmul, emits new residual ----

def _add_ln_matmul_kernel(x_ref, r_ref, g_ref, w_ref, o_ref, rout_ref,
                          acc_ref, ssq_ref, *, eps, k_full, tk):
    k = pl.program_id(2)

    @pl.when(k == 0)
    def _init():
        acc_ref[...] = jnp.zeros_like(acc_ref)
        ssq_ref[...] = jnp.zeros_like(ssq_ref)

    xr = x_ref[...].astype(jnp.float32) + r_ref[...].astype(jnp.float32)  # (tm, tk)
    # Stage the new residual into the full-K output block; it is written back
    # to HBM only once per row tile (when the i block index changes).
    col = pl.multiple_of(k * tk, tk)
    rout_ref[:, pl.ds(col, tk)] = xr.astype(rout_ref.dtype)

    ssq_ref[...] += jnp.sum(xr * xr, axis=-1, keepdims=True)
    xg = (xr * g_ref[...].astype(jnp.float32)).astype(w_ref.dtype)
    acc_ref[...] += jnp.dot(xg, w_ref[...], preferred_element_type=jnp.float32)

    @pl.when(k == pl.num_programs(2) - 1)
    def _fin():
        scale = lax.rsqrt(ssq_ref[...] / k_full + eps)
        o_ref[...] = (acc_ref[...] * scale).astype(o_ref.dtype)


def add_rmsnorm_matmul(x, resid, gamma, w, eps, tm=256, tn=512, tk=512):
    """Returns (rmsnorm(x + resid) @ w, x + resid)."""
    T, K = x.shape
    N = w.shape[1]
    tm, tn, tk = _pick_tile(T, tm), _pick_tile(N, tn), _pick_tile(K, tk)
    kernel = functools.partial(_add_ln_matmul_kernel, eps=eps, k_full=K, tk=tk)
    return pl.pallas_call(
        kernel,
        out_shape=(jax.ShapeDtypeStruct((T, N), x.dtype),
                   jax.ShapeDtypeStruct((T, K), x.dtype)),
        grid=(T // tm, N // tn, K // tk),
        in_specs=[pl.BlockSpec((tm, tk), lambda i, j, k: (i, k)),
                  pl.BlockSpec((tm, tk), lambda i, j, k: (i, k)),
                  pl.BlockSpec((1, tk), lambda i, j, k: (0, k)),
                  pl.BlockSpec((tk, tn), lambda i, j, k: (k, j))],
        out_specs=(pl.BlockSpec((tm, tn), lambda i, j, k: (i, j)),
                   pl.BlockSpec((tm, K), lambda i, j, k: (i, 0))),
        scratch_shapes=[pltpu.VMEM((tm, tn), jnp.float32),
                        pltpu.VMEM((tm, 1), jnp.float32)],
        compiler_params=pltpu.CompilerParams(
            # j kept "arbitrary": the residual output block is j-invariant.
            dimension_semantics=("parallel", "arbitrary", "arbitrary")),
    )(x, resid, gamma.reshape(1, K), w)


# ------ K-tiled fused RMSNorm + gate/up matmul + SiLU*mul (post-attn LN/MLP) -----

def _ln_gate_up_silu_kernel(x_ref, g_ref, wg_ref, wu_ref, o_ref,
                            accg_ref, accu_ref, ssq_ref, *, eps, k_full):
    k = pl.program_id(2)

    @pl.when(k == 0)
    def _init():
        accg_ref[...] = jnp.zeros_like(accg_ref)
        accu_ref[...] = jnp.zeros_like(accu_ref)
        ssq_ref[...] = jnp.zeros_like(ssq_ref)

    x = x_ref[...].astype(jnp.float32)
    ssq_ref[...] += jnp.sum(x * x, axis=-1, keepdims=True)
    xg = (x * g_ref[...].astype(jnp.float32)).astype(wg_ref.dtype)
    accg_ref[...] += jnp.dot(xg, wg_ref[...], preferred_element_type=jnp.float32)
    accu_ref[...] += jnp.dot(xg, wu_ref[...], preferred_element_type=jnp.float32)

    @pl.when(k == pl.num_programs(2) - 1)
    def _fin():
        scale = lax.rsqrt(ssq_ref[...] / k_full + eps)
        g = accg_ref[...] * scale
        u = accu_ref[...] * scale
        o_ref[...] = (g * jax.nn.sigmoid(g) * u).astype(o_ref.dtype)      # EUP sigmoid


def rmsnorm_gate_up_silu(x, gamma, w_gate, w_up, eps, tm=256, tn=512, tk=512):
    T, K = x.shape
    N = w_gate.shape[1]
    tm, tn, tk = _pick_tile(T, tm), _pick_tile(N, tn), _pick_tile(K, tk)
    kernel = functools.partial(_ln_gate_up_silu_kernel, eps=eps, k_full=K)
    return pl.pallas_call(
        kernel,
        out_shape=jax.ShapeDtypeStruct((T, N), x.dtype),
        grid=(T // tm, N // tn, K // tk),
        in_specs=[pl.BlockSpec((tm, tk), lambda i, j, k: (i, k)),
                  pl.BlockSpec((1, tk), lambda i, j, k: (0, k)),
                  pl.BlockSpec((tk, tn), lambda i, j, k: (k, j)),
                  pl.BlockSpec((tk, tn), lambda i, j, k: (k, j))],
        out_specs=pl.BlockSpec((tm, tn), lambda i, j, k: (i, j)),
        scratch_shapes=[pltpu.VMEM((tm, tn), jnp.float32),
                        pltpu.VMEM((tm, tn), jnp.float32),
                        pltpu.VMEM((tm, 1), jnp.float32)],
        compiler_params=pltpu.CompilerParams(
            dimension_semantics=("parallel", "parallel", "arbitrary")),
    )(x, gamma.reshape(1, K), w_gate, w_up)


# -------------- K-tiled matmul + bias (+ optional fused residual) ------------

def _matmul_bias_kernel(x_ref, w_ref, b_ref, o_ref, acc_ref):
    @pl.when(pl.program_id(2) == 0)
    def _init():
        acc_ref[...] = jnp.zeros_like(acc_ref)

    acc_ref[...] += jnp.dot(x_ref[...].astype(w_ref.dtype), w_ref[...],
                            preferred_element_type=jnp.float32)

    @pl.when(pl.program_id(2) == pl.num_programs(2) - 1)
    def _fin():
        o_ref[...] = (acc_ref[...] + b_ref[...].astype(jnp.float32)
                      ).astype(o_ref.dtype)


def _matmul_bias_residual_kernel(x_ref, w_ref, b_ref, r_ref, o_ref, acc_ref):
    @pl.when(pl.program_id(2) == 0)
    def _init():
        acc_ref[...] = jnp.zeros_like(acc_ref)

    acc_ref[...] += jnp.dot(x_ref[...].astype(w_ref.dtype), w_ref[...],
                            preferred_element_type=jnp.float32)

    @pl.when(pl.program_id(2) == pl.num_programs(2) - 1)
    def _fin():
        o_ref[...] = (acc_ref[...] + b_ref[...].astype(jnp.float32)
                      + r_ref[...].astype(jnp.float32)).astype(o_ref.dtype)


def _tiled_matmul(kernel, inputs, T, N, tm, tn, tk, K, extra_specs, out_dtype):
    return pl.pallas_call(
        kernel,
        out_shape=jax.ShapeDtypeStruct((T, N), out_dtype),
        grid=(T // tm, N // tn, K // tk),
        in_specs=[pl.BlockSpec((tm, tk), lambda i, j, k: (i, k)),
                  pl.BlockSpec((tk, tn), lambda i, j, k: (k, j)),
                  pl.BlockSpec((1, tn), lambda i, j, k: (0, j))] + extra_specs,
        out_specs=pl.BlockSpec((tm, tn), lambda i, j, k: (i, j)),
        scratch_shapes=[pltpu.VMEM((tm, tn), jnp.float32)],
        compiler_params=pltpu.CompilerParams(
            dimension_semantics=("parallel", "parallel", "arbitrary")),
    )(*inputs)


def matmul_bias(x, w, b, tm=256, tn=512, tk=512):
    T, K = x.shape
    N = w.shape[1]
    tm, tn, tk = _pick_tile(T, tm), _pick_tile(N, tn), _pick_tile(K, tk)
    return _tiled_matmul(_matmul_bias_kernel, (x, w, b.reshape(1, N)),
                         T, N, tm, tn, tk, K, [], x.dtype)


def matmul_bias_residual(x, w, b, residual, tm=256, tn=512, tk=512):
    """out = x @ w + b + residual  (dense proj fused with residual add)."""
    T, K = x.shape
    N = w.shape[1]
    tm, tn, tk = _pick_tile(T, tm), _pick_tile(N, tn), _pick_tile(K, tk)
    extra = [pl.BlockSpec((tm, tn), lambda i, j, k: (i, j))]
    return _tiled_matmul(_matmul_bias_residual_kernel,
                         (x, w, b.reshape(1, N), residual),
                         T, N, tm, tn, tk, K, extra, x.dtype)


# ------------------ RoPE kernel: rotate Q and K once, lane-dense -------------

def _rope_kernel(q_ref, k_ref, cos_ref, sin_ref, qo_ref, ko_ref, *, nh, nkv, hd):
    half = hd // 2
    cos = cos_ref[...].astype(jnp.float32)                    # (tm, hd)
    sin = sin_ref[...].astype(jnp.float32)                    # signed: [-sin, sin]
    for h in range(nh):
        x = q_ref[:, h * hd:(h + 1) * hd].astype(jnp.float32)
        qo_ref[:, h * hd:(h + 1) * hd] = (
            x * cos + pltpu.roll(x, half, 1) * sin).astype(qo_ref.dtype)
    for h in range(nkv):
        x = k_ref[:, h * hd:(h + 1) * hd].astype(jnp.float32)
        ko_ref[:, h * hd:(h + 1) * hd] = (
            x * cos + pltpu.roll(x, half, 1) * sin).astype(ko_ref.dtype)


def rope_rotate(qkv, cos_full, sin_signed, nh, nkv, hd, tm=256):
    T = qkv.shape[0]
    q_size, kv_size = nh * hd, nkv * hd
    group = nh // nkv
    tm = _pick_tile(T, tm)
    kernel = functools.partial(_rope_kernel, nh=nh, nkv=nkv, hd=hd)
    return pl.pallas_call(
        kernel,
        out_shape=(jax.ShapeDtypeStruct((T, q_size), qkv.dtype),
                   jax.ShapeDtypeStruct((T, kv_size), qkv.dtype)),
        grid=(T // tm,),
        in_specs=[pl.BlockSpec((tm, q_size), lambda i: (i, 0)),       # Q columns of qkv
                  pl.BlockSpec((tm, kv_size), lambda i: (i, group)),  # K columns of qkv
                  pl.BlockSpec((tm, hd), lambda i: (i, 0)),
                  pl.BlockSpec((tm, hd), lambda i: (i, 0))],
        out_specs=(pl.BlockSpec((tm, q_size), lambda i: (i, 0)),
                   pl.BlockSpec((tm, kv_size), lambda i: (i, 0))),
        compiler_params=pltpu.CompilerParams(dimension_semantics=("parallel",)),
    )(qkv, qkv, cos_full, sin_signed)


# ---- flash-style causal GQA attention: triangular tile enumeration, no RoPE ----

def _flash_attn_kernel(qi_ref, ki_ref, q_ref, k_ref, v_ref, o_ref,
                       m_sc, l_sc, acc_sc, *, scale, block_q, block_k, group, hd):
    pair = pl.program_id(1)
    qi = qi_ref[pair]
    ki = ki_ref[pair]

    @pl.when(ki == 0)
    def _init():
        m_sc[...] = jnp.full(m_sc.shape, -jnp.inf, dtype=m_sc.dtype)
        l_sc[...] = jnp.zeros_like(l_sc)
        acc_sc[...] = jnp.zeros_like(acc_sc)

    k = k_ref[...]                                              # (bk, hd)
    v = v_ref[...]                                              # (bk, hd)
    row = lax.broadcasted_iota(jnp.int32, (block_q, block_k), 0)
    col = lax.broadcasted_iota(jnp.int32, (block_q, block_k), 1)
    causal = (qi * block_q + row) >= (ki * block_k + col)
    # TODO(synk): skip the mask on fully-visible (non-diagonal) KV tiles.

    for g in range(group):                                      # GQA group, static
        q_g = q_ref[:, g * hd:(g + 1) * hd]                     # (bq, hd), lane-aligned
        s = lax.dot_general(q_g, k, (((1,), (1,)), ((), ())),
                            preferred_element_type=jnp.float32) * scale
        s = jnp.where(causal, s, -1e30)
        m_prev = m_sc[g]                                        # (bq, 1)
        m_new = jnp.maximum(m_prev, jnp.max(s, axis=-1, keepdims=True))
        alpha = jnp.exp(m_prev - m_new)
        p_mat = jnp.exp(s - m_new)
        l_sc[g] = alpha * l_sc[g] + jnp.sum(p_mat, axis=-1, keepdims=True)
        acc_sc[g] = alpha * acc_sc[g] + jnp.dot(
            p_mat.astype(v.dtype), v, preferred_element_type=jnp.float32)
        m_sc[g] = m_new

    @pl.when((ki + 1) * block_k >= (qi + 1) * block_q)          # last KV tile for this qi
    def _finalize():
        for g in range(group):
            o_ref[:, g * hd:(g + 1) * hd] = (
                acc_sc[g] * pl.reciprocal(l_sc[g], approx=True)).astype(o_ref.dtype)


def attention(q_rot, k_rot, qkv, nh, nkv, hd, scale, block_q=256, block_k=256):
    # q_rot: (T, nh*hd); k_rot: (T, nkv*hd); V is read directly from qkv columns.
    T = q_rot.shape[0]
    group = nh // nkv
    q_size, kv_size = nh * hd, nkv * hd
    bq = _pick_tile(T, block_q)
    bk = _pick_tile(T, block_k)
    nq = T // bq
    v_col0 = (q_size + kv_size) // hd

    # Enumerate only lower-triangle (qi, ki) tile pairs (causal).
    qi_list, ki_list = [], []
    for qi in range(nq):
        k_hi = ((qi + 1) * bq - 1) // bk
        for ki in range(k_hi + 1):
            qi_list.append(qi)
            ki_list.append(ki)
    qi_arr = jnp.asarray(qi_list, dtype=jnp.int32)
    ki_arr = jnp.asarray(ki_list, dtype=jnp.int32)

    kernel = functools.partial(_flash_attn_kernel, scale=scale,
                               block_q=bq, block_k=bk, group=group, hd=hd)
    grid_spec = pltpu.PrefetchScalarGridSpec(
        num_scalar_prefetch=2,
        grid=(nkv, len(qi_list)),
        in_specs=[pl.BlockSpec((bq, group * hd),
                               lambda kv, n, q_idx, k_idx: (q_idx[n], kv)),
                  pl.BlockSpec((bk, hd),
                               lambda kv, n, q_idx, k_idx: (k_idx[n], kv)),
                  pl.BlockSpec((bk, hd),
                               lambda kv, n, q_idx, k_idx: (k_idx[n], v_col0 + kv))],
        out_specs=pl.BlockSpec((bq, group * hd),
                               lambda kv, n, q_idx, k_idx: (q_idx[n], kv)),
        scratch_shapes=[pltpu.VMEM((group, bq, 1), jnp.float32),
                        pltpu.VMEM((group, bq, 1), jnp.float32),
                        pltpu.VMEM((group, bq, hd), jnp.float32)])
    return pl.pallas_call(
        kernel,
        out_shape=jax.ShapeDtypeStruct((T, q_size), q_rot.dtype),
        grid_spec=grid_spec,
        compiler_params=pltpu.CompilerParams(
            dimension_semantics=("parallel", "arbitrary")),
    )(qi_arr, ki_arr, q_rot, k_rot, qkv)


# ---------------------------- decoder layer forward ---------------------------

def telechat2_decoder_layer(positions, hidden_states, residual, params, cfg):
    eps = cfg["layer_norm_epsilon"]
    hidden_size = cfg["hidden_size"]
    nh = cfg["num_heads"]
    nkv = cfg["num_kv_heads"]
    hd = hidden_size // nh

    # input layernorm (+ fused residual add) -> QKV projection
    if residual is None:
        residual = hidden_states
        qkv = rmsnorm_matmul(hidden_states, params["input_ln_w"],
                             params["w_qkv"], eps)
    else:
        qkv, residual = add_rmsnorm_matmul(hidden_states, residual,
                                           params["input_ln_w"],
                                           params["w_qkv"], eps)

    # lane-dense full-width RoPE tables; rotation happens once in the RoPE kernel
    inv_freq = 1.0 / (cfg["rope_theta"] **
                      (jnp.arange(0, hd, 2, dtype=jnp.float32) / hd))
    angles = positions.astype(jnp.float32)[:, None] * inv_freq[None, :]    # (T, hd//2)
    cos = jnp.cos(angles)
    sin = jnp.sin(angles)
    cos_full = jnp.concatenate([cos, cos], axis=-1)                        # (T, hd)
    sin_signed = jnp.concatenate([-sin, sin], axis=-1)                     # (T, hd)

    q_rot, k_rot = rope_rotate(qkv, cos_full, sin_signed, nh, nkv, hd)
    attn_flat = attention(q_rot, k_rot, qkv, nh, nkv, hd, hd ** -0.5)      # (T, nh*hd)

    # dense proj + bias + residual add fused; result is the new residual
    residual = matmul_bias_residual(attn_flat, params["w_dense"],
                                    params["b_dense"], residual)

    # post-attn RMSNorm fused into the gate/up matmul + SiLU-and-mul
    inter = rmsnorm_gate_up_silu(residual, params["post_ln_w"],
                                 params["w_gate"], params["w_up"], eps)
    hidden_states = matmul_bias(inter, params["w_down"], params["b_down"])

    return hidden_states, residual


# ------------------------------ pure-JAX reference ----------------------------

def _ref_rmsnorm(x, w, eps):
    xf = x.astype(jnp.float32)
    var = jnp.mean(xf * xf, axis=-1, keepdims=True)
    return (xf * lax.rsqrt(var + eps) * w).astype(x.dtype)


def _ref_attention(q, k, v, cos, sin, scale):
    H, T, D = q.shape
    group = H // k.shape[0]
    half = D // 2

    def rope(x):
        x1, x2 = x[..., :half], x[..., half:]
        return jnp.concatenate([x1 * cos - x2 * sin, x2 * cos + x1 * sin], axis=-1)

    q = rope(q)
    k = rope(k)
    kk = jnp.repeat(k, group, axis=0)
    vv = jnp.repeat(v, group, axis=0)
    s = jnp.einsum("htd,hsd->hts", q, kk) * scale
    mask = jnp.tril(jnp.ones((T, T), dtype=bool))
    s = jnp.where(mask[None], s, -1e30)
    p = jax.nn.softmax(s, axis=-1)
    return jnp.einsum("hts,hsd->htd", p, vv)


def ref_decoder_layer(positions, hidden_states, residual, params, cfg):
    eps = cfg["layer_norm_epsilon"]
    hidden_size = cfg["hidden_size"]
    nh, nkv = cfg["num_heads"], cfg["num_kv_heads"]
    hd = hidden_size // nh
    q_size, kv_size = nh * hd, nkv * hd
    T = hidden_states.shape[0]

    if residual is None:
        residual = hidden_states
    else:
        residual = hidden_states + residual
    h = _ref_rmsnorm(residual, params["input_ln_w"], eps)

    qkv = h @ params["w_qkv"]
    q = qkv[:, :q_size].reshape(T, nh, hd).transpose(1, 0, 2)
    k = qkv[:, q_size:q_size + kv_size].reshape(T, nkv, hd).transpose(1, 0, 2)
    v = qkv[:, q_size + kv_size:].reshape(T, nkv, hd).transpose(1, 0, 2)

    inv_freq = 1.0 / (cfg["rope_theta"] **
                      (jnp.arange(0, hd, 2, dtype=jnp.float32) / hd))
    angles = positions.astype(jnp.float32)[:, None] * inv_freq[None, :]
    cos, sin = jnp.cos(angles), jnp.sin(angles)

    attn = _ref_attention(q, k, v, cos, sin, hd ** -0.5)
    attn = attn.transpose(1, 0, 2).reshape(T, q_size)
    attn = attn @ params["w_dense"] + params["b_dense"]

    residual = attn + residual
    h = _ref_rmsnorm(residual, params["post_ln_w"], eps)

    g = h @ params["w_gate"]
    u = h @ params["w_up"]
    inter = (g * jax.nn.sigmoid(g)) * u
    hidden_states = inter @ params["w_down"] + params["b_down"]
    return hidden_states, residual


# ------------------------------------ main ------------------------------------

if __name__ == "__main__":
    # Small but tile-divisible toy config: head_dim=128 (lane width), T and the
    # hidden/intermediate dims exercise multi-K-tile accumulation, the
    # triangular attention enumeration (nq=2) and GQA (group=2).
    cfg = dict(
        hidden_size=1024,
        num_heads=8,            # config.num_attention_heads
        num_kv_heads=4,         # config.num_key_value_heads (GQA)
        ffn_hidden_size=2048,
        layer_norm_epsilon=1e-5,
        rope_theta=1000000.0,
    )
    T = 512
    H = cfg["hidden_size"]
    nh, nkv = cfg["num_heads"], cfg["num_kv_heads"]
    hd = H // nh
    qkv_out = nh * hd + 2 * nkv * hd
    I = cfg["ffn_hidden_size"]

    key = jax.random.PRNGKey(0)
    ks = jax.random.split(key, 10)
    scale = 0.02
    # NOTE: production would pass bf16 weights/activations here; the kernels
    # cast to the weight dtype before every MXU dot and accumulate in f32.
    params = {
        "input_ln_w": 1.0 + 0.02 * jax.random.normal(ks[1], (H,), jnp.float32),
        "post_ln_w": 1.0 + 0.02 * jax.random.normal(ks[2], (H,), jnp.float32),
        "w_qkv": scale * jax.random.normal(ks[3], (H, qkv_out), jnp.float32),
        "w_dense": scale * jax.random.normal(ks[4], (nh * hd, H), jnp.float32),
        "b_dense": scale * jax.random.normal(ks[5], (H,), jnp.float32),
        "w_gate": scale * jax.random.normal(ks[6], (H, I), jnp.float32),
        "w_up": scale * jax.random.normal(ks[7], (H, I), jnp.float32),
        "w_down": scale * jax.random.normal(ks[8], (I, H), jnp.float32),
        "b_down": scale * jax.random.normal(ks[9], (H,), jnp.float32),
    }

    positions = jnp.arange(T, dtype=jnp.int32)
    hidden_states = jax.random.normal(ks[0], (T, H), jnp.float32)

    # first call: residual is None (prologue path)
    out1, res1 = telechat2_decoder_layer(positions, hidden_states, None, params, cfg)
    jax.block_until_ready((out1, res1))
    ref_out1, ref_res1 = ref_decoder_layer(positions, hidden_states, None, params, cfg)
    assert jnp.allclose(out1, ref_out1, atol=2e-2, rtol=2e-2), "layer-1 output mismatch"
    assert jnp.allclose(res1, ref_res1, atol=2e-2, rtol=2e-2), "layer-1 residual mismatch"

    # second call: exercises the fused add+RMSNorm+QKV path (same inputs to ref)
    out2, res2 = telechat2_decoder_layer(positions, out1, res1, params, cfg)
    jax.block_until_ready((out2, res2))
    ref_out2, ref_res2 = ref_decoder_layer(positions, out1, res1, params, cfg)
    assert jnp.allclose(out2, ref_out2, atol=2e-2, rtol=2e-2), "layer-2 output mismatch"
    assert jnp.allclose(res2, ref_res2, atol=2e-2, rtol=2e-2), "layer-2 residual mismatch"

    print("KERNEL_OK")
</pallas_src>

<mosaic_0001>
module attributes {stable_mosaic.version = 11 : i64} {
  func.func @_ln_matmul_kernel(%arg0: i32, %arg1: i32, %arg2: i32, %arg3: memref<256x512xf32, #tpu.memory_space<vmem>>, %arg4: memref<1x512xf32, #tpu.memory_space<vmem>>, %arg5: memref<512x512xf32, #tpu.memory_space<vmem>>, %arg6: memref<256x512xf32, #tpu.memory_space<vmem>>, %arg7: memref<256x512xf32, #tpu.memory_space<vmem>>, %arg8: memref<256x1xf32, #tpu.memory_space<vmem>>) attributes {dimension_semantics = [#tpu.dimension_semantics<parallel>, #tpu.dimension_semantics<parallel>, #tpu.dimension_semantics<arbitrary>], iteration_bounds = array<i64: 2, 4, 2>, scalar_prefetch = 0 : i64, scratch_operands = 2 : i64, tpu.core_type = #tpu.core_type<tc>, window_params = [{transform_indices = @transform_0, window_bounds = array<i64: 256, 512>}, {transform_indices = @transform_1, window_bounds = array<i64: 1, 512>}, {transform_indices = @transform_2, window_bounds = array<i64: 512, 512>}, {transform_indices = @transform_3, window_bounds = array<i64: 256, 512>}]} {
    %c0_i32 = arith.constant 0 : i32
    %0 = arith.cmpi eq, %arg2, %c0_i32 : i32
    %1 = arith.extui %0 : i1 to i32
    %c0_i32_0 = arith.constant 0 : i32
    %2 = arith.cmpi ne, %1, %c0_i32_0 : i32
    scf.if %2 {
      %cst_16 = arith.constant 0.000000e+00 : f32
      %21 = vector.broadcast %cst_16 : f32 to vector<256x512xf32>
      %c0_17 = arith.constant 0 : index
      %c0_18 = arith.constant 0 : index
      %22 = vector.load %arg7[%c0_17, %c0_18] : memref<256x512xf32, #tpu.memory_space<vmem>>, vector<256x512xf32>
      tpu.vector_store %arg7[%c0_17, %c0_18], %21 {strides = array<i32>} : memref<256x512xf32, #tpu.memory_space<vmem>>, vector<256x512xf32>,
      %cst_19 = arith.constant 0.000000e+00 : f32
      %23 = vector.broadcast %cst_19 : f32 to vector<256x1xf32>
      %c0_20 = arith.constant 0 : index
      %c0_21 = arith.constant 0 : index
      %24 = vector.load %arg8[%c0_20, %c0_21] : memref<256x1xf32, #tpu.memory_space<vmem>>, vector<256x1xf32>
      tpu.vector_store %arg8[%c0_20, %c0_21], %23 {strides = array<i32>} : memref<256x1xf32, #tpu.memory_space<vmem>>, vector<256x1xf32>,
    } else {
    }
    %c0 = arith.constant 0 : index
    %c0_1 = arith.constant 0 : index
    %3 = vector.load %arg3[%c0, %c0_1] : memref<256x512xf32, #tpu.memory_space<vmem>>, vector<256x512xf32>
    %c0_2 = arith.constant 0 : index
    %c0_3 = arith.constant 0 : index
    %4 = vector.load %arg8[%c0_2, %c0_3] : memref<256x1xf32, #tpu.memory_space<vmem>>, vector<256x1xf32>
    %5 = arith.mulf %3, %3 : vector<256x512xf32>
    %cst = arith.constant dense<0.000000e+00> : vector<256xf32>
    %6 = vector.multi_reduction <add>, %5, %cst [1] : vector<256x512xf32> to vector<256xf32>
    %7 = vector.shape_cast %6 : vector<256xf32> to vector<256x1xf32>
    %8 = arith.addf %4, %7 : vector<256x1xf32>
    %c0_4 = arith.constant 0 : index
    %c0_5 = arith.constant 0 : index
    %9 = vector.load %arg8[%c0_4, %c0_5] : memref<256x1xf32, #tpu.memory_space<vmem>>, vector<256x1xf32>
    tpu.vector_store %arg8[%c0_4, %c0_5], %8 {strides = array<i32>} : memref<256x1xf32, #tpu.memory_space<vmem>>, vector<256x1xf32>,
    %c0_6 = arith.constant 0 : index
    %c0_7 = arith.constant 0 : index
    %10 = vector.load %arg4[%c0_6, %c0_7] : memref<1x512xf32, #tpu.memory_space<vmem>>, vector<1x512xf32>
    %11 = vector.broadcast %10 : vector<1x512xf32> to vector<256x512xf32>
    %12 = arith.mulf %3, %11 : vector<256x512xf32>
    %c0_8 = arith.constant 0 : index
    %c0_9 = arith.constant 0 : index
    %13 = vector.load %arg7[%c0_8, %c0_9] : memref<256x512xf32, #tpu.memory_space<vmem>>, vector<256x512xf32>
    %c0_10 = arith.constant 0 : index
    %c0_11 = arith.constant 0 : index
    %14 = vector.load %arg5[%c0_10, %c0_11] : memref<512x512xf32, #tpu.memory_space<vmem>>, vector<512x512xf32>
    %cst_12 = arith.constant dense<0.000000e+00> : vector<256x512xf32>
    %15 = tpu.matmul %12, %14, %cst_12 {dimension_numbers = #tpu.dot_dimension_numbers<[1], [0], [0], [1], [0, 0, 1, 1], [], []>} : vector<256x512xf32>, vector<512x512xf32>, vector<256x512xf32> -> vector<256x512xf32>
    %16 = arith.addf %13, %15 : vector<256x512xf32>
    %c0_13 = arith.constant 0 : index
    %c0_14 = arith.constant 0 : index
    %17 = vector.load %arg7[%c0_13, %c0_14] : memref<256x512xf32, #tpu.memory_space<vmem>>, vector<256x512xf32>
    tpu.vector_store %arg7[%c0_13, %c0_14], %16 {strides = array<i32>} : memref<256x512xf32, #tpu.memory_space<vmem>>, vector<256x512xf32>,
    %c1_i32 = arith.constant 1 : i32
    %18 = arith.cmpi eq, %arg2, %c1_i32 : i32
    %19 = arith.extui %18 : i1 to i32
    %c0_i32_15 = arith.constant 0 : i32
    %20 = arith.cmpi ne, %19, %c0_i32_15 : i32
    scf.if %20 {
      %c0_16 = arith.constant 0 : index
      %c0_17 = arith.constant 0 : index
      %21 = vector.load %arg8[%c0_16, %c0_17] : memref<256x1xf32, #tpu.memory_space<vmem>>, vector<256x1xf32>
      %cst_18 = arith.constant 1.024000e+03 : f32
      %22 = vector.broadcast %cst_18 : f32 to vector<256x1xf32>
      %23 = arith.divf %21, %22 : vector<256x1xf32>
      %cst_19 = arith.constant 9.99999974E-6 : f32
      %24 = vector.broadcast %cst_19 : f32 to vector<256x1xf32>
      %25 = arith.addf %23, %24 : vector<256x1xf32>
      %26 = math.rsqrt %25 : vector<256x1xf32>
      %c0_20 = arith.constant 0 : index
      %c0_21 = arith.constant 0 : index
      %27 = vector.load %arg7[%c0_20, %c0_21] : memref<256x512xf32, #tpu.memory_space<vmem>>, vector<256x512xf32>
      %28 = vector.broadcast %26 : vector<256x1xf32> to vector<256x512xf32>
      %29 = arith.mulf %27, %28 : vector<256x512xf32>
      %c0_22 = arith.constant 0 : index
      %c0_23 = arith.constant 0 : index
      %30 = vector.load %arg6[%c0_22, %c0_23] : memref<256x512xf32, #tpu.memory_space<vmem>>, vector<256x512xf32>
      tpu.vector_store %arg6[%c0_22, %c0_23], %29 {strides = array<i32>} : memref<256x512xf32, #tpu.memory_space<vmem>>, vector<256x512xf32>,
    } else {
    }
    return
  }
  func.func @transform_0(%arg0: i32, %arg1: i32, %arg2: i32) -> (i32, i32) {
    %c0_i32 = arith.constant 0 : i32
    return %arg0, %arg2 : i32, i32
  }
  func.func @transform_1(%arg0: i32, %arg1: i32, %arg2: i32) -> (i32, i32) {
    %c0_i32 = arith.constant 0 : i32
    %c0_i32_0 = arith.constant 0 : i32
    return %c0_i32, %arg2 : i32, i32
  }
  func.func @transform_2(%arg0: i32, %arg1: i32, %arg2: i32) -> (i32, i32) {
    %c0_i32 = arith.constant 0 : i32
    return %arg2, %arg1 : i32, i32
  }
  func.func @transform_3(%arg0: i32, %arg1: i32, %arg2: i32) -> (i32, i32) {
    %c0_i32 = arith.constant 0 : i32
    return %arg0, %arg1 : i32, i32
  }
}

</mosaic_0001>

<bundles_post_ra>
// kernel: tpu_custom_call.1
= control target key start
LH: loop header
LB: loop body
LE: loop exit
PB: predicated region body
PF: predicated region fallthrough
CT: control target
= control target key end

     0   :  { %s6785_s0 = inlined_call_operand.hbm [shape: f32[512,1024], index: 0, kind: input, shape index: {}]   ;;  %s6786_s1 = inlined_call_operand.hbm [shape: f32[1,1024], index: 1, kind: input, shape index: {}]   ;;  %s6787_s2 = inlined_call_operand.hbm [shape: f32[1024,2048], index: 2, kind: input, shape index: {}]   ;;  %s6788_s3 = inlined_call_operand.hbm [shape: f32[512,2048], index: 3, kind: output, shape index: {}]  }
   0x1   :  { %6830 = sst [smem:[#allocation62_spill]] %s6786_s1 }
   0x2   :  { %6831 = sst [smem:[#allocation63_spill]] %s6788_s3 }
   0x3   :  { %8 = vsyncpa [#allocation5], 0 }
   0x4   :  { %10 = vsyncpa [#allocation5 + $0x1], 0 }
   0x5   :  { %11 = vsyncpa [#allocation8], 0 }
   0x6   :  { %13 = vsyncpa [#allocation8 + $0x1], 0 }
   0x7   :  { %14 = vsyncpa [#allocation6], 0 }
   0x8   :  { %16 = vsyncpa [#allocation6 + $0x1], 0  ;;  %s4627_s12 = smov 0   ;;  %s4629_s13 = smov 0  }
   0x9   :  { %s4631_s14 = smov 0   ;;  %s4633_s15 = smov 0  }
   0xa   :  { %s4635_s16 = smov 0   ;;  %s4637_s17 = smov 0  }
   0xb   :  { %s4639_s18 = smov 0   ;;  %s4641_s19 = smov 0  }
   0xc   :  { %s4643_s20 = smov 0   ;;  %s4645_s21 = smov 0  }
   0xd   :  { %s4647_s22 = smov 0   ;;  %s4649_s23 = smov 0  }
   0xe   :  { %s4651_s24 = smov 0   ;;  %s4653_s25 = smov 0  }
   0xf   :  { %s4655_s26 = smov 0   ;;  %s4657_s27 = smov 0  }
  0x10   :  { %s4659_s28 = smov 0   ;;  %s4661_s29 = smov 0  }
  0x11   :  { %s4663_s30 = smov 0  }
  0x12 LB: > { %6832 = sst [smem:[#allocation15_spill]] %s4520_s12  ;;  %s4721_s4 = sadd.s32 4294967295, %s4592_s30   ;;  %s4592_s30 = sphi %s4663_s30, %s22_s30   ;;  %s4588_s29 = sphi %s4661_s29, %s6971_s29   ;;  %s4584_s28 = sphi %s4659_s28, %s6970_s28   ;;  %s4580_s27 = sphi %s4657_s27, %s6969_s27   ;;  %s4576_s26 = sphi %s4655_s26, %s6968_s26   ;;  %s4572_s25 = sphi %s4653_s25, %s6967_s25   ;;  %s4568_s24 = sphi %s4651_s24, %s6966_s24   ;;  %s4564_s23 = sphi %s4649_s23, %s6965_s23   ;;  %s4560_s22 = sphi %s4647_s22, %s6964_s22   ;;  %s4556_s21 = sphi %s4645_s21, %s6956_s21   ;;  %s4552_s20 = sphi %s4643_s20, %s6955_s20   ;;  %s4548_s19 = sphi %s4641_s19, %s6954_s19   ;;  %s4544_s18 = sphi %s4639_s18, %s6953_s18   ;;  %s4540_s17 = sphi %s4637_s17, %s6963_s17   ;;  %s4536_s16 = sphi %s4635_s16, %s6962_s16   ;;  %s4532_s15 = sphi %s4633_s15, %s6951_s15   ;;  %s4528_s14 = sphi %s4631_s14, %s6960_s14   ;;  %s4524_s13 = sphi %s4629_s13, %s6959_s13   ;;  %s4520_s12 = sphi %s4627_s12, %s6950_s12  }
  0x13   : > { %6833 = sst [smem:[#allocation16_spill]] %s4524_s13  ;;  %s34_s6 = sadd.s32 1, %s4580_s27 }
  0x14   : > { %6834 = sst [smem:[#allocation17_spill]] %s4536_s16  ;;  %s37_s7 = sadd.s32 1, %s4584_s28 }
  0x15   : > { %6835 = sst [smem:[#allocation18_spill]] %s4548_s19  ;;  %p35_p0 = scmp.ge.s32.totalorder %s34_s6, 2 }
  0x16   : > { %6836 = sst [smem:[#allocation19_spill]] %s4552_s20  ;;  %p57_p1 = scmp.ne.s32.totalorder %s4564_s23, %s4560_s22 }
  0x17   : > { %6837 = sst [smem:[#allocation20_spill]] %s4560_s22  ;;  %p58_p2 = scmp.eq.s32.totalorder %s4592_s30, 0 }
  0x18   : > { %6838 = sst [smem:[#allocation21_spill]] %s4568_s24  ;;  %s6973_s6 = smov (%p35_p0, %s34_s6), 0 }
  0x19   : > { %6839 = sst [smem:[#allocation22_spill]] %s4572_s25  ;;  %s6975_s7 = smov (!%p35_p0, %s37_s7), %s4584_s28 }
  0x1a   : > { %6840 = sst [smem:[#allocation23_spill]] %s4576_s26  ;;  %s4737_s9 = ssub.s32 %s4580_s27, %s6973_s6 }
  0x1b   : > { %6841 = sst [smem:[#allocation24_spill]] %s4592_s30  ;;  %p4741_p3 = por %p58_p2, %p57_p1 }
  0x1c   : > { %6842 = sst [smem:[#allocation25_spill]] %s4721_s4  ;;  %p6792_p4 = scmp.ge.s32.totalorder %s6975_s7, 4 }
  0x1d   : > { %6843 = sst [smem:[#allocation26_spill]] %s6973_s6  ;;  %p63_p5 = scmp.ne.s32.totalorder %s4560_s22, %s4556_s21 }
  0x1e   : > { %p64_p6 = scmp.eq.s32.totalorder %s4721_s4, 0  ;;  %p74_p7 = scmp.eq.s32.totalorder %s4737_s9, 0 }
  0x1f   : > { %s4752_s11 = scalar_select %p6792_p4, 0, %s6975_s7  }
  0x20   : > { %p4756_p8 = por %p64_p6, %p63_p5  ;;  %s76_s5 = sadd.s32 1, %s4552_s20 }
  0x21   : > { %6845 = sst [smem:[#allocation27_spill]] %s4752_s11  ;;  %p83_p9 = scmp.ne.s32.totalorder %s4552_s20, %s4548_s19 }
  0x22   : > { %s6846_s8 = scalar_select %p4756_p8, 1, 0 }
  0x23   : > { %s4762_s21 = scalar_select %p74_p7, %s4552_s20, %s76_s5  }
  0x24   : > { %6847 = sst [smem:[#allocation28_spill]] %s6846_s8  ;;  %p89_p10 = scmp.ne.s32.totalorder %s4548_s19, %s4544_s18 }
  0x25   : > { %6848 = sst [smem:[#allocation29_spill]] %s4762_s21  ;;  %s4770_s6 = ssub.s32 %s4584_s28, %s4752_s11 }
  0x26   : > { %s104_s3 = sadd.s32 1, %s4540_s17  ;;  %p4775_p11 = por %p83_p9, %p58_p2 }
  0x27   : > { %p4781_p12 = por %p89_p10, %p64_p6  ;;  %s101_s21 = sor.u32 %s4770_s6, %s4737_s9 }
  0x28   : > { %p111_p13 = scmp.ne.s32.totalorder %s4540_s17, %s4536_s16  ;;  %p102_p0 = scmp.eq.s32.totalorder %s101_s21, 0 }
  0x29   : > { %s6850_s5 = scalar_select %p4781_p12, 1, 0 }
  0x2a   : > { %p117_p1 = scmp.ne.s32.totalorder %s4536_s16, %s4532_s15  ;;  %p4793_p5 = por %p111_p13, %p58_p2 }
  0x2b   : > { %6851 = sst [smem:[#allocation30_spill]] %s6850_s5  ;;  %p142_p7 = scmp.ne.s32.totalorder %s4528_s14, %s4524_s13 }
  0x2c   : > { %s4800_s11 = scalar_select %p102_p0, %s4540_s17, %s104_s3  }
  0x2d   : > { %p4804_p9 = por %p117_p1, %p64_p6  ;;  %p143_p10 = scmp.eq.s32.totalorder %s4721_s4, 15 }
  0x2e   : > { %6853 = sst [smem:[#allocation31_spill]] %s4800_s11  ;;  %p148_p4 = scmp.ne.s32.totalorder %s4524_s13, %s4520_s12 }
  0x2f   : > { %s6854_s25 = scalar_select %p4804_p9, 1, 0 }
  0x30   : > { %s6856_s21 = sadd.s32 4294967294, %s4592_s30   ;;  %p4813_p2 = por %p143_p10, %p142_p7 }
  0x31   : > { %6855 = sst [smem:[#allocation32_spill]] %s6854_s25  ;;  %p149_p12 = scmp.eq.s32.totalorder %s6856_s21, 15 }
  0x32   : > { %s6857_s15 = scalar_select %p4813_p2, 1, 0 }
  0x33   : > { %p4817_p13 = por %p149_p12, %p148_p4  ;;  %p4075_p6 = scmp.lt.s32.totalorder %s4592_s30, 16 }
  0x34   : > { %6858 = sst [smem:[#allocation33_spill]] %s6857_s15  ;;  %s193_s11 = sand.u32 1, %s4592_s30  }
  0x35   : > { %s6859_s3 = scalar_select %p4817_p13, 1, 0 }
  0x36   : > { %s195_s24 = sand.u32 1, %s4552_s20   ;;  %p4826_p0 = pnand %p4075_p6, %p4741_p3 }
  0x37   : > { %6860 = sst [smem:[#allocation34_spill]] %s6859_s3  ;;  %s3643_s12 = sshll.u32 %s195_s24, 2 }
  0x38   : > { %s3666_s13 = sshll.u32 %s4580_s27, 6  ;;  %s6862_s1 = sld [smem:[#allocation62_spill]] }
  0x39   : > { %s197_s15 = scalar_lea.vmem [#allocation7], %s3643_s12  ;;  %p4840_p3 = pnand %p4075_p6, %p4775_p11 }
  0x3a   : > { %s205_s3 = sshll.u32 %s197_s15, 4  ;;  %p4847_p4 = pnand %p4075_p6, %p4793_p5  ;;  %s4836_s3 = int_to_ptr.vmem [resolvable:$true] %s205_s3 }
  0x3b   : > { %s4852_s16 = scalar_lea.sflag [#allocation8], %s193_s11  ;;  %p4310_p7 = pneg %p4840_p3 }
  0x3c   : > { %6865 = sst [smem:[#allocation35_spill]] %s4852_s16 }
  0x3e   : > { %s4834_s5 = scalar_lea.hbm %s6862_s1, %s3666_s13  ;;  %s4313_s21 = scalar_lea.hbm %s6862_s1, 128 }
  0x3f   : > { %s6864_s13 = scalar_select %p4847_p4, 1, 0 }
  0x40   : > { %s4308_s12 = scalar_lea.hbm %s4834_s5, 64  ;;  %p4314_p5 = scmp.lt.u32.totalorder %s4834_s5, %s6862_s1 }
  0x41   : > { %p4309_p1 = scmp.ne.s32.totalorder %s4834_s5, %s4308_s12  ;;  %p4315_p6 = scmp.lt.u32.totalorder %s4313_s21, %s4308_s12 }
  0x42   : > { %p4317_p13 = scmp.lt.u32.totalorder %s4308_s12, %s4834_s5 }
  0x43   : > { %p4311_p11 = pnand %p4310_p7, %p4309_p1  ;;  %p4316_p12 = por %p4315_p6, %p4314_p5 }
  0x45   : > { %p4312_p10 = pneg %p4311_p11  ;;  %p4318_p2 = por %p4317_p13, %p4316_p12 }
  0x47   : > { %p4319_p9 = pnand %p4318_p2, %p4312_p10 }
  0x49   : > { %4322 = shalt.err (!%p4319_p9)
}
  0x4a   : > { %s4323_s11 = scalar_lea.vmem %s4836_s3, 64  ;;  %s4594_s26 = smov [#allocation7]  }
  0x4b   : > { %p4324_p1 = scmp.ne.s32.totalorder %s4836_s3, %s4323_s11  ;;  %s4328_s15 = sshll.u32 %s4594_s26, 4  ;;  %s4329_s15 = int_to_ptr.vmem [resolvable:$false] %s4328_s15 }
  0x4c   : > { %s4330_s24 = scalar_lea.vmem %s4329_s15, 128  ;;  %p4331_p4 = scmp.lt.s32.totalorder %s4836_s3, %s4329_s15 }
  0x4d   : > { %p4326_p11 = pnand %p4324_p1, %p4310_p7  ;;  %p4332_p5 = scmp.lt.s32.totalorder %s4330_s24, %s4323_s11 }
  0x4f   : > { %p4327_p8 = pneg %p4326_p11  ;;  %p4333_p6 = por %p4332_p5, %p4331_p4 }
  0x51   : > { %p4334_p13 = pnand %p4333_p6, %p4327_p8 }
  0x53   : > { %4337 = shalt.err (!%p4334_p13)
}
  0x54   : > { %4067 = dma.hbm_to_vmem [thread:$0]  (!%p4840_p3), %s4834_s5, 64, %s4836_s3, %s4852_s16  }
  0x55   : > { %p234_p8 = scmp.lt.s32.totalorder %s4592_s30, 17  ;;  %p6866_p9 = scmp.ge.s32.totalorder %s4592_s30, 1 }
  0x56   : > { %s41_s12 = sadd.s32 1, %s4588_s29  ;;  %p6869_p4 = scmp.ge.s32.totalorder %s6975_s7, 4 }
  0x57   : > { %p4883_p2 = pnand %p6866_p9, %p234_p8  ;;  %s132_s21 = sadd.s32 1, %s4528_s14 }
  0x58   : > { %s6977_s12 = smov (!%p6869_p4, %s41_s12), %s4588_s29  ;;  %s169_s18 = sand.u32 1, %s4564_s23  }
  0x59   : > { %s6867_s10 = scalar_select %p4883_p2, 1, 0 }
  0x5a   : > { %p43_p12 = scmp.ge.s32.totalorder %s6977_s12, 2  ;;  %s3638_s11 = sshll.u32 %s169_s18, 10 }
  0x5b   : > { %6868 = sst [smem:[#allocation36_spill]] %s6867_s10  ;;  %s3640_s26 = sshll.u32 %s4580_s27, 2 }
  0x5c   : > { %s6979_s12 = smov (%p43_p12, %s6977_s12), 0  ;;  %s3665_s3 = sshll.u32 %s4588_s29, 8 }
  0x5d   : > { %s6870_s5 = smov %s6979_s12  ;;  %s180_s24 = sadd.s32 %s3665_s3, %s3640_s26 }
  0x5e   : > { %s45_s15 = ssub.s32 %s4588_s29, %s6870_s5  ;;  %s3642_s20 = sshll.u32 %s180_s24, 7 }
  0x5f   : > { %s47_s1 = sor.u32 %s4737_s9, %s45_s15  ;;  %s129_s7 = sor.u32 %s4770_s6, %s45_s15 }
  0x60   : > { %p48_p3 = scmp.eq.s32.totalorder %s47_s1, 0  ;;  %p130_p7 = scmp.eq.s32.totalorder %s129_s7, 0 }
  0x61   : > { %s173_s30 = scalar_lea.vmem [#allocation4], %s3638_s11  ;;  %s6871_s4 = sadd.s32 1, %s4564_s23 }
  0x62   : > { %s183_s19 = sshll.u32 %s173_s30, 4  ;;  %s4912_s16 = scalar_lea.hbm %s6785_s0, %s3642_s20  ;;  %s4914_s19 = int_to_ptr.vmem [resolvable:$true] %s183_s19 }
  0x63   : > { %s4904_s8 = scalar_select %p48_p3, %s4564_s23, %s6871_s4  }
  0x64   : > { %s4907_s22 = scalar_select %p130_p7, %s4528_s14, %s132_s21  }
  0x65   : > { %s214_s1 = sand.u32 1, %s4540_s17   ;;  %s4917_s6 = scalar_lea.sflag [#allocation5], %s169_s18 }
  0x66   : > { %s4338_s30 = scalar_lea.hbm %s4912_s16, 16384  ;;  %p4340_p1 = pneg %p4826_p0 }
  0x67   : > { %p4339_p10 = scmp.ne.s32.totalorder %s4912_s16, %s4338_s30  ;;  %s4343_s9 = scalar_lea.hbm %s6785_s0, 65536 }
  0x68   : > { %p4344_p6 = scmp.lt.u32.totalorder %s4912_s16, %s6785_s0  ;;  %p4345_p13 = scmp.lt.u32.totalorder %s4343_s9, %s4338_s30 }
  0x69   : > { %p4341_p11 = pnand %p4340_p1, %p4339_p10  ;;  %p4347_p9 = scmp.lt.u32.totalorder %s4338_s30, %s4912_s16 }
  0x6a   : > { %p4346_p8 = por %p4345_p13, %p4344_p6 }
  0x6b   : > { %p4342_p5 = pneg %p4341_p11 }
  0x6c   : > { %p4348_p4 = por %p4347_p9, %p4346_p8 }
  0x6e   : > { %p4349_p12 = pnand %p4348_p4, %p4342_p5 }
  0x70   : > { %4352 = shalt.err (!%p4349_p12)
}
  0x71   : > { %s4353_s18 = scalar_lea.vmem %s4914_s19, 16384  ;;  %s4595_s11 = smov [#allocation4]  }
  0x72   : > { %p4354_p3 = scmp.ne.s32.totalorder %s4914_s19, %s4353_s18  ;;  %s4358_s26 = sshll.u32 %s4595_s11, 4  ;;  %s4359_s26 = int_to_ptr.vmem [resolvable:$false] %s4358_s26 }
  0x73   : > { %s4360_s3 = scalar_lea.vmem %s4359_s26, 32768  ;;  %p4361_p11 = scmp.lt.s32.totalorder %s4914_s19, %s4359_s26 }
  0x74   : > { %p4356_p7 = pnand %p4354_p3, %p4340_p1  ;;  %p4362_p6 = scmp.lt.s32.totalorder %s4360_s3, %s4353_s18 }
  0x76   : > { %p4357_p10 = pneg %p4356_p7  ;;  %p4363_p13 = por %p4362_p6, %p4361_p11 }
  0x78   : > { %p4364_p8 = pnand %p4363_p13, %p4357_p10 }
  0x7a   : > { %4367 = shalt.err (!%p4364_p8)
}
  0x7b   : > { %s4596_s15 = smov 1024   ;;  %s4597_s24 = smov 512  }
  0x7c   : > { %s4598_s7 = smov 32   ;;  %s3646_s12 = sshll.u32 %s214_s1, 11 }
  0x7d   : > { %4064 = dma.hbm_to_vmem [thread:$0]  (!%p4826_p0), %s4912_s16, 16384, %s4914_s19, %s4917_s6, %s4596_s15, %s4597_s24, %s4598_s7  }
  0x7e   : > { %s3648_s30 = sshll.u32 %s4584_s28, 2  ;;  %s6872_s4 = sshll.u32 %s4580_s27, 10 }
  0x7f   : > { %s223_s20 = sadd.s32 %s6872_s4, %s3648_s30  ;;  %s216_s10 = scalar_lea.vmem [#allocation9], %s3646_s12 }
  0x80   : > { %s3650_s9 = sshll.u32 %s223_s20, 7  ;;  %s226_s21 = sshll.u32 %s216_s10, 4  ;;  %s4957_s21 = int_to_ptr.vmem [resolvable:$true] %s226_s21 }
  0x81   : > { %s4955_s26 = scalar_lea.hbm %s6787_s2, %s3650_s9  ;;  %p6873_p1 = scmp.ne.s32.totalorder %s6864_s13, 0 }
  0x82   : > { %s4368_s19 = scalar_lea.hbm %s4955_s26, 32768  ;;  %s4373_s1 = scalar_lea.hbm %s6787_s2, 262144 }
  0x83   : > { %p4369_p0 = scmp.ne.s32.totalorder %s4955_s26, %s4368_s19  ;;  %p4370_p5 = pneg %p6873_p1 }
  0x84   : > { %p4374_p12 = scmp.lt.u32.totalorder %s4955_s26, %s6787_s2  ;;  %p4375_p3 = scmp.lt.u32.totalorder %s4373_s1, %s4368_s19 }
  0x85   : > { %p4371_p9 = pnand %p4370_p5, %p4369_p0  ;;  %p4377_p10 = scmp.lt.u32.totalorder %s4368_s19, %s4955_s26 }
  0x86   : > { %p4376_p7 = por %p4375_p3, %p4374_p12 }
  0x87   : > { %p4372_p4 = pneg %p4371_p9 }
  0x88   : > { %p4378_p11 = por %p4377_p10, %p4376_p7 }
  0x8a   : > { %p4379_p6 = pnand %p4378_p11, %p4372_p4 }
  0x8c   : > { %4382 = shalt.err (!%p4379_p6)
}
  0x8d   : > { %s4383_s15 = scalar_lea.vmem %s4957_s21, 32768  ;;  %s4599_s12 = smov [#allocation9]  }
  0x8e   : > { %p4384_p13 = scmp.ne.s32.totalorder %s4957_s21, %s4383_s15  ;;  %s4388_s30 = sshll.u32 %s4599_s12, 4  ;;  %s4389_s30 = int_to_ptr.vmem [resolvable:$false] %s4388_s30 }
  0x8f   : > { %s4390_s4 = scalar_lea.vmem %s4389_s30, 65536  ;;  %p4391_p9 = scmp.lt.s32.totalorder %s4957_s21, %s4389_s30 }
  0x90   : > { %p4386_p8 = pnand %p4384_p13, %p4370_p5  ;;  %p4392_p12 = scmp.lt.s32.totalorder %s4390_s4, %s4383_s15 }
  0x92   : > { %p4387_p0 = pneg %p4386_p8  ;;  %p4393_p3 = por %p4392_p12, %p4391_p9 }
  0x94   : > { %p4394_p7 = pnand %p4393_p3, %p4387_p0 }
  0x96   : > { %4397 = shalt.err (!%p4394_p7)
}
  0x97   : > { %s4600_s20 = smov 2048   ;;  %s6874_s9 = sld [smem:[#allocation35_spill]] }
  0x98   : > { %238 = sbr.rel (%p4883_p2) target bundleno = 1036 (0x40c), region = 32 }
  0x9d   : > { %4070 = dma.hbm_to_vmem [thread:$0]  (!%p6873_p1), %s4955_s26, 32768, %s4957_s21, %s6874_s9, %s4600_s20, %s4597_s24, %s4598_s7  }
  0x9f   : > { %s6876_s18 = sld [smem:[#allocation20_spill]]  ;;  %s6877_s11 = sld [smem:[#allocation28_spill]] }
  0xa5   : > { %s240_s19 = sand.u32 1, %s6876_s18   ;;  %p6878_p5 = scmp.ne.s32.totalorder %s6877_s11, 0 }
  0xa6   : > { %s3652_s25 = sshll.u32 %s240_s19, 10  ;;  %s241_s16 = scalar_lea.sflag [#allocation5], %s240_s19 }
  0xa7   : > { %s4990_s1 = scalar_lea.vmem [#allocation4], %s3652_s25 }
  0xa8   : > { %4503 = dma.done.wait (%p6878_p5), %s241_s16, 16384  }
  0xa9   : > { %4505 = vsyncadd (%p6878_p5), %s241_s16, 4294950912  ;;  %s6879_s13 = sld [smem:[#allocation25_spill]]  ;;  %s6880_s6 = sld [smem:[#allocation18_spill]] }
  0xaa   : > { %s6881_s3 = sld [smem:[#allocation30_spill]] }
  0xaf   : > { %s249_s15 = sand.u32 1, %s6879_s13   ;;  %s251_s24 = sand.u32 1, %s6880_s6  }
  0xb0   : > { %s4998_s7 = sshll.u32 %s251_s24, 2  ;;  %s250_s21 = scalar_lea.sflag [#allocation8], %s249_s15 }
  0xb1   : > { %s253_s26 = scalar_lea.vmem [#allocation7], %s4998_s7  ;;  %p6882_p2 = scmp.ne.s32.totalorder %s6881_s3, 0 }
  0xb3   : > { %4507 = dma.done.wait (%p6882_p2), %s250_s21, 64  }
  0xb4   : > { %4509 = vsyncadd (%p6882_p2), %s250_s21, 4294967232  ;;  %s6883_s12 = sld [smem:[#allocation17_spill]] }
  0xb5   : > { %s6884_s30 = sld [smem:[#allocation32_spill]] }
  0xba   : > { %s260_s4 = sand.u32 1, %s6883_s12  }
  0xbb   : > { %s3654_s20 = sshll.u32 %s260_s4, 11  ;;  %p6885_p1 = scmp.ne.s32.totalorder %s6884_s30, 0 }
  0xbc   : > { %s5006_s9 = scalar_lea.vmem [#allocation9], %s3654_s20 }
  0xbd   : > { %4511 = dma.done.wait (%p6885_p1), %s250_s21, 32768  }
  0xbe   : > { %4513 = vsyncadd (%p6885_p1), %s250_s21, 4294934528  ;;  %s6886_s10 = sld [smem:[#allocation16_spill]]  ;;  %s6887_s25 = sld [smem:[#allocation21_spill]] }
  0xc4   : > { %s292_s18 = sand.u32 1, %s6886_s10   ;;  %p3656_p4 = scmp.ne.s32.totalorder %s6887_s25, 0 }
  0xc5   : > { %s3655_s11 = sshll.u32 %s292_s18, 10  ;;  %vm434_vm0 = vcmask (!%p3656_p4), 7168   ;;  %v4601_v0 = vmov (!%p3656_p4), 0.0  }
  0xc6   : > { %s5015_s19 = scalar_lea.vmem [#allocation10], %s3655_s11  ;;  %305 = sbr.rel (%p3656_p4) target bundleno = 278 (0x116), region = 48  ;;  %306 = vst [vmem:[#allocation2] sm:$0xff] (!%p3656_p4), %v4601_v0  ;;  %307 = vst [vmem:[#allocation2 + $0x8] sm:$0xff] (!%p3656_p4), %v4601_v0 }
  0xc7   : > { %308 = vst [vmem:[#allocation2 + $0x10] sm:$0xff] (!%p3656_p4), %v4601_v0  ;;  %309 = vst [vmem:[#allocation2 + $0x18] sm:$0xff] (!%p3656_p4), %v4601_v0 }
  0xc8   : > { %310 = vst [vmem:[#allocation2 + $0x20] sm:$0xff] (!%p3656_p4), %v4601_v0  ;;  %311 = vst [vmem:[#allocation2 + $0x28] sm:$0xff] (!%p3656_p4), %v4601_v0 }
  0xc9   : > { %312 = vst [vmem:[#allocation2 + $0x30] sm:$0xff] (!%p3656_p4), %v4601_v0  ;;  %313 = vst [vmem:[#allocation2 + $0x38] sm:$0xff] (!%p3656_p4), %v4601_v0 }
  0xca   : > { %314 = vst [vmem:[#allocation2 + $0x40] sm:$0xff] (!%p3656_p4), %v4601_v0  ;;  %315 = vst [vmem:[#allocation2 + $0x48] sm:$0xff] (!%p3656_p4), %v4601_v0 }
  0xcb   : > { %316 = vst [vmem:[#allocation2 + $0x50] sm:$0xff] (!%p3656_p4), %v4601_v0  ;;  %317 = vst [vmem:[#allocation2 + $0x58] sm:$0xff] (!%p3656_p4), %v4601_v0 }
  0xcc   : > { %318 = vst [vmem:[#allocation2 + $0x60] sm:$0xff] (!%p3656_p4), %v4601_v0  ;;  %319 = vst [vmem:[#allocation2 + $0x68] sm:$0xff] (!%p3656_p4), %v4601_v0 }
  0xcd   : > { %320 = vst [vmem:[#allocation2 + $0x70] sm:$0xff] %v4601_v0  ;;  %321 = vst [vmem:[#allocation2 + $0x78] sm:$0xff] %v4601_v0 }
  0xce   : > { %322 = vst [vmem:[#allocation2 + $0x80] sm:$0xff] %v4601_v0  ;;  %323 = vst [vmem:[#allocation2 + $0x88] sm:$0xff] %v4601_v0 }
  0xcf   : > { %324 = vst [vmem:[#allocation2 + $0x90] sm:$0xff] %v4601_v0  ;;  %325 = vst [vmem:[#allocation2 + $0x98] sm:$0xff] %v4601_v0 }
  0xd0   : > { %326 = vst [vmem:[#allocation2 + $0xa0] sm:$0xff] %v4601_v0  ;;  %327 = vst [vmem:[#allocation2 + $0xa8] sm:$0xff] %v4601_v0 }
  0xd1   : > { %328 = vst [vmem:[#allocation2 + $0xb0] sm:$0xff] %v4601_v0  ;;  %329 = vst [vmem:[#allocation2 + $0xb8] sm:$0xff] %v4601_v0 }
  0xd2   : > { %330 = vst [vmem:[#allocation2 + $0xc0] sm:$0xff] %v4601_v0  ;;  %331 = vst [vmem:[#allocation2 + $0xc8] sm:$0xff] %v4601_v0 }
  0xd3   : > { %332 = vst [vmem:[#allocation2 + $0xd0] sm:$0xff] %v4601_v0  ;;  %333 = vst [vmem:[#allocation2 + $0xd8] sm:$0xff] %v4601_v0 }
  0xd4   : > { %334 = vst [vmem:[#allocation2 + $0xe0] sm:$0xff] %v4601_v0  ;;  %335 = vst [vmem:[#allocation2 + $0xe8] sm:$0xff] %v4601_v0 }
  0xd5   : > { %336 = vst [vmem:[#allocation2 + $0xf0] sm:$0xff] %v4601_v0  ;;  %337 = vst [vmem:[#allocation2 + $0xf8] sm:$0xff] %v4601_v0 }
  0xd6   : > { %338 = vst [vmem:[#allocation2 + $0x100] sm:$0xff] %v4601_v0  ;;  %339 = vst [vmem:[#allocation2 + $0x108] sm:$0xff] %v4601_v0 }
  0xd7   : > { %340 = vst [vmem:[#allocation2 + $0x110] sm:$0xff] %v4601_v0  ;;  %341 = vst [vmem:[#allocation2 + $0x118] sm:$0xff] %v4601_v0 }
  0xd8   : > { %342 = vst [vmem:[#allocation2 + $0x120] sm:$0xff] %v4601_v0  ;;  %343 = vst [vmem:[#allocation2 + $0x128] sm:$0xff] %v4601_v0 }
  0xd9   : > { %344 = vst [vmem:[#allocation2 + $0x130] sm:$0xff] %v4601_v0  ;;  %345 = vst [vmem:[#allocation2 + $0x138] sm:$0xff] %v4601_v0 }
  0xda   : > { %346 = vst [vmem:[#allocation2 + $0x140] sm:$0xff] %v4601_v0  ;;  %347 = vst [vmem:[#allocation2 + $0x148] sm:$0xff] %v4601_v0 }
  0xdb   : > { %348 = vst [vmem:[#allocation2 + $0x150] sm:$0xff] %v4601_v0  ;;  %349 = vst [vmem:[#allocation2 + $0x158] sm:$0xff] %v4601_v0 }
  0xdc   : > { %350 = vst [vmem:[#allocation2 + $0x160] sm:$0xff] %v4601_v0  ;;  %351 = vst [vmem:[#allocation2 + $0x168] sm:$0xff] %v4601_v0 }
  0xdd   : > { %352 = vst [vmem:[#allocation2 + $0x170] sm:$0xff] %v4601_v0  ;;  %353 = vst [vmem:[#allocation2 + $0x178] sm:$0xff] %v4601_v0 }
  0xde   : > { %354 = vst [vmem:[#allocation2 + $0x180] sm:$0xff] %v4601_v0  ;;  %355 = vst [vmem:[#allocation2 + $0x188] sm:$0xff] %v4601_v0 }
  0xdf   : > { %356 = vst [vmem:[#allocation2 + $0x190] sm:$0xff] %v4601_v0  ;;  %357 = vst [vmem:[#allocation2 + $0x198] sm:$0xff] %v4601_v0 }
  0xe0   : > { %358 = vst [vmem:[#allocation2 + $0x1a0] sm:$0xff] %v4601_v0  ;;  %359 = vst [vmem:[#allocation2 + $0x1a8] sm:$0xff] %v4601_v0 }
  0xe1   : > { %360 = vst [vmem:[#allocation2 + $0x1b0] sm:$0xff] %v4601_v0  ;;  %361 = vst [vmem:[#allocation2 + $0x1b8] sm:$0xff] %v4601_v0 }
  0xe2   : > { %362 = vst [vmem:[#allocation2 + $0x1c0] sm:$0xff] %v4601_v0  ;;  %363 = vst [vmem:[#allocation2 + $0x1c8] sm:$0xff] %v4601_v0 }
  0xe3   : > { %364 = vst [vmem:[#allocation2 + $0x1d0] sm:$0xff] %v4601_v0  ;;  %365 = vst [vmem:[#allocation2 + $0x1d8] sm:$0xff] %v4601_v0 }
  0xe4   : > { %366 = vst [vmem:[#allocation2 + $0x1e0] sm:$0xff] %v4601_v0  ;;  %367 = vst [vmem:[#allocation2 + $0x1e8] sm:$0xff] %v4601_v0 }
  0xe5   : > { %368 = vst [vmem:[#allocation2 + $0x1f0] sm:$0xff] %v4601_v0  ;;  %369 = vst [vmem:[#allocation2 + $0x1f8] sm:$0xff] %v4601_v0 }
  0xe6   : > { %370 = vst [vmem:[#allocation2 + $0x200] sm:$0xff] %v4601_v0  ;;  %371 = vst [vmem:[#allocation2 + $0x208] sm:$0xff] %v4601_v0 }
  0xe7   : > { %372 = vst [vmem:[#allocation2 + $0x210] sm:$0xff] %v4601_v0  ;;  %373 = vst [vmem:[#allocation2 + $0x218] sm:$0xff] %v4601_v0 }
  0xe8   : > { %374 = vst [vmem:[#allocation2 + $0x220] sm:$0xff] %v4601_v0  ;;  %375 = vst [vmem:[#allocation2 + $0x228] sm:$0xff] %v4601_v0 }
  0xe9   : > { %376 = vst [vmem:[#allocation2 + $0x230] sm:$0xff] %v4601_v0  ;;  %377 = vst [vmem:[#allocation2 + $0x238] sm:$0xff] %v4601_v0 }
  0xea   : > { %378 = vst [vmem:[#allocation2 + $0x240] sm:$0xff] %v4601_v0  ;;  %379 = vst [vmem:[#allocation2 + $0x248] sm:$0xff] %v4601_v0 }
  0xeb   : > { %380 = vst [vmem:[#allocation2 + $0x250] sm:$0xff] %v4601_v0  ;;  %381 = vst [vmem:[#allocation2 + $0x258] sm:$0xff] %v4601_v0 }
  0xec   : > { %382 = vst [vmem:[#allocation2 + $0x260] sm:$0xff] %v4601_v0  ;;  %383 = vst [vmem:[#allocation2 + $0x268] sm:$0xff] %v4601_v0 }
  0xed   : > { %384 = vst [vmem:[#allocation2 + $0x270] sm:$0xff] %v4601_v0  ;;  %385 = vst [vmem:[#allocation2 + $0x278] sm:$0xff] %v4601_v0 }
  0xee   : > { %386 = vst [vmem:[#allocation2 + $0x280] sm:$0xff] %v4601_v0  ;;  %387 = vst [vmem:[#allocation2 + $0x288] sm:$0xff] %v4601_v0 }
  0xef   : > { %388 = vst [vmem:[#allocation2 + $0x290] sm:$0xff] %v4601_v0  ;;  %389 = vst [vmem:[#allocation2 + $0x298] sm:$0xff] %v4601_v0 }
  0xf0   : > { %390 = vst [vmem:[#allocation2 + $0x2a0] sm:$0xff] %v4601_v0  ;;  %391 = vst [vmem:[#allocation2 + $0x2a8] sm:$0xff] %v4601_v0 }
  0xf1   : > { %392 = vst [vmem:[#allocation2 + $0x2b0] sm:$0xff] %v4601_v0  ;;  %393 = vst [vmem:[#allocation2 + $0x2b8] sm:$0xff] %v4601_v0 }
  0xf2   : > { %394 = vst [vmem:[#allocation2 + $0x2c0] sm:$0xff] %v4601_v0  ;;  %395 = vst [vmem:[#allocation2 + $0x2c8] sm:$0xff] %v4601_v0 }
  0xf3   : > { %396 = vst [vmem:[#allocation2 + $0x2d0] sm:$0xff] %v4601_v0  ;;  %397 = vst [vmem:[#allocation2 + $0x2d8] sm:$0xff] %v4601_v0 }
  0xf4   : > { %398 = vst [vmem:[#allocation2 + $0x2e0] sm:$0xff] %v4601_v0  ;;  %399 = vst [vmem:[#allocation2 + $0x2e8] sm:$0xff] %v4601_v0 }
  0xf5   : > { %400 = vst [vmem:[#allocation2 + $0x2f0] sm:$0xff] %v4601_v0  ;;  %401 = vst [vmem:[#allocation2 + $0x2f8] sm:$0xff] %v4601_v0 }
  0xf6   : > { %402 = vst [vmem:[#allocation2 + $0x300] sm:$0xff] %v4601_v0  ;;  %403 = vst [vmem:[#allocation2 + $0x308] sm:$0xff] %v4601_v0 }
  0xf7   : > { %404 = vst [vmem:[#allocation2 + $0x310] sm:$0xff] %v4601_v0  ;;  %405 = vst [vmem:[#allocation2 + $0x318] sm:$0xff] %v4601_v0 }
  0xf8   : > { %406 = vst [vmem:[#allocation2 + $0x320] sm:$0xff] %v4601_v0  ;;  %407 = vst [vmem:[#allocation2 + $0x328] sm:$0xff] %v4601_v0 }
  0xf9   : > { %408 = vst [vmem:[#allocation2 + $0x330] sm:$0xff] %v4601_v0  ;;  %409 = vst [vmem:[#allocation2 + $0x338] sm:$0xff] %v4601_v0 }
  0xfa   : > { %410 = vst [vmem:[#allocation2 + $0x340] sm:$0xff] %v4601_v0  ;;  %411 = vst [vmem:[#allocation2 + $0x348] sm:$0xff] %v4601_v0 }
  0xfb   : > { %412 = vst [vmem:[#allocation2 + $0x350] sm:$0xff] %v4601_v0  ;;  %413 = vst [vmem:[#allocation2 + $0x358] sm:$0xff] %v4601_v0 }
  0xfc   : > { %414 = vst [vmem:[#allocation2 + $0x360] sm:$0xff] %v4601_v0  ;;  %415 = vst [vmem:[#allocation2 + $0x368] sm:$0xff] %v4601_v0 }
  0xfd   : > { %416 = vst [vmem:[#allocation2 + $0x370] sm:$0xff] %v4601_v0  ;;  %417 = vst [vmem:[#allocation2 + $0x378] sm:$0xff] %v4601_v0 }
  0xfe   : > { %418 = vst [vmem:[#allocation2 + $0x380] sm:$0xff] %v4601_v0  ;;  %419 = vst [vmem:[#allocation2 + $0x388] sm:$0xff] %v4601_v0 }
  0xff   : > { %420 = vst [vmem:[#allocation2 + $0x390] sm:$0xff] %v4601_v0  ;;  %421 = vst [vmem:[#allocation2 + $0x398] sm:$0xff] %v4601_v0 }
 0x100   : > { %422 = vst [vmem:[#allocation2 + $0x3a0] sm:$0xff] %v4601_v0  ;;  %423 = vst [vmem:[#allocation2 + $0x3a8] sm:$0xff] %v4601_v0 }
 0x101   : > { %424 = vst [vmem:[#allocation2 + $0x3b0] sm:$0xff] %v4601_v0  ;;  %425 = vst [vmem:[#allocation2 + $0x3b8] sm:$0xff] %v4601_v0 }
 0x102   : > { %426 = vst [vmem:[#allocation2 + $0x3c0] sm:$0xff] %v4601_v0  ;;  %427 = vst [vmem:[#allocation2 + $0x3c8] sm:$0xff] %v4601_v0 }
 0x103   : > { %428 = vst [vmem:[#allocation2 + $0x3d0] sm:$0xff] %v4601_v0  ;;  %429 = vst [vmem:[#allocation2 + $0x3d8] sm:$0xff] %v4601_v0 }
 0x104   : > { %430 = vst [vmem:[#allocation2 + $0x3e0] sm:$0xff] %v4601_v0  ;;  %431 = vst [vmem:[#allocation2 + $0x3e8] sm:$0xff] %v4601_v0 }
 0x105   : > { %432 = vst [vmem:[#allocation2 + $0x3f0] sm:$0xff] %v4601_v0  ;;  %433 = vst [vmem:[#allocation2 + $0x3f8] sm:$0xff] %v4601_v0 }
 0x106   : > { %435 = vst.msk [vmem:[#allocation3] sm:$0xff] %vm434_vm0, %v4601_v0  ;;  %436 = vst.msk [vmem:[#allocation3 + $0x8] sm:$0xff] %vm434_vm0, %v4601_v0 }
 0x107   : > { %437 = vst.msk [vmem:[#allocation3 + $0x10] sm:$0xff] %vm434_vm0, %v4601_v0  ;;  %438 = vst.msk [vmem:[#allocation3 + $0x18] sm:$0xff] %vm434_vm0, %v4601_v0 }
 0x108   : > { %439 = vst.msk [vmem:[#allocation3 + $0x20] sm:$0xff] %vm434_vm0, %v4601_v0  ;;  %440 = vst.msk [vmem:[#allocation3 + $0x28] sm:$0xff] %vm434_vm0, %v4601_v0 }
 0x109   : > { %441 = vst.msk [vmem:[#allocation3 + $0x30] sm:$0xff] %vm434_vm0, %v4601_v0  ;;  %442 = vst.msk [vmem:[#allocation3 + $0x38] sm:$0xff] %vm434_vm0, %v4601_v0 }
 0x10a   : > { %443 = vst.msk [vmem:[#allocation3 + $0x40] sm:$0xff] %vm434_vm0, %v4601_v0  ;;  %444 = vst.msk [vmem:[#allocation3 + $0x48] sm:$0xff] %vm434_vm0, %v4601_v0 }
 0x10b   : > { %445 = vst.msk [vmem:[#allocation3 + $0x50] sm:$0xff] %vm434_vm0, %v4601_v0  ;;  %446 = vst.msk [vmem:[#allocation3 + $0x58] sm:$0xff] %vm434_vm0, %v4601_v0 }
 0x10c   : > { %447 = vst.msk [vmem:[#allocation3 + $0x60] sm:$0xff] %vm434_vm0, %v4601_v0  ;;  %448 = vst.msk [vmem:[#allocation3 + $0x68] sm:$0xff] %vm434_vm0, %v4601_v0 }
 0x10d   : > { %449 = vst.msk [vmem:[#allocation3 + $0x70] sm:$0xff] %vm434_vm0, %v4601_v0  ;;  %450 = vst.msk [vmem:[#allocation3 + $0x78] sm:$0xff] %vm434_vm0, %v4601_v0 }
 0x10e   : > { %451 = vst.msk [vmem:[#allocation3 + $0x80] sm:$0xff] %vm434_vm0, %v4601_v0  ;;  %452 = vst.msk [vmem:[#allocation3 + $0x88] sm:$0xff] %vm434_vm0, %v4601_v0 }
 0x10f   : > { %453 = vst.msk [vmem:[#allocation3 + $0x90] sm:$0xff] %vm434_vm0, %v4601_v0  ;;  %454 = vst.msk [vmem:[#allocation3 + $0x98] sm:$0xff] %vm434_vm0, %v4601_v0 }
 0x110   : > { %455 = vst.msk [vmem:[#allocation3 + $0xa0] sm:$0xff] %vm434_vm0, %v4601_v0  ;;  %456 = vst.msk [vmem:[#allocation3 + $0xa8] sm:$0xff] %vm434_vm0, %v4601_v0 }
 0x111   : > { %457 = vst.msk [vmem:[#allocation3 + $0xb0] sm:$0xff] %vm434_vm0, %v4601_v0  ;;  %458 = vst.msk [vmem:[#allocation3 + $0xb8] sm:$0xff] %vm434_vm0, %v4601_v0 }
 0x112   : > { %459 = vst.msk [vmem:[#allocation3 + $0xc0] sm:$0xff] %vm434_vm0, %v4601_v0  ;;  %460 = vst.msk [vmem:[#allocation3 + $0xc8] sm:$0xff] %vm434_vm0, %v4601_v0 }
 0x113   : > { %461 = vst.msk [vmem:[#allocation3 + $0xd0] sm:$0xff] %vm434_vm0, %v4601_v0  ;;  %462 = vst.msk [vmem:[#allocation3 + $0xd8] sm:$0xff] %vm434_vm0, %v4601_v0 }
 0x114   : > { %463 = vst.msk [vmem:[#allocation3 + $0xe0] sm:$0xff] %vm434_vm0, %v4601_v0  ;;  %464 = vst.msk [vmem:[#allocation3 + $0xe8] sm:$0xff] %vm434_vm0, %v4601_v0 }
 0x115   : > { %465 = vst.msk [vmem:[#allocation3 + $0xf0] sm:$0xff] %vm434_vm0, %v4601_v0  ;;  %466 = vst.msk [vmem:[#allocation3 + $0xf8] sm:$0xff] %vm434_vm0, %v4601_v0 }
 0x116 PF: > { %v1259_v1 = vld [vmem:[%s5006_s9 + $0x8] sm:$0xff]  ;;  %v1261_v3 = vld [vmem:[%s5006_s9 + $0x18] sm:$0xff]  ;;  %v1258_v6 = vld [vmem:[%s5006_s9] sm:$0xff]  ;;  %vm947_vm1 = vcmask 7168   ;;  %s6938_s16 = sld [smem:[#allocation21_spill]] }
 0x117   : > { %v1263_v2 = vld [vmem:[%s5006_s9 + $0x28] sm:$0xff]  ;;  %v1265_v5 = vld [vmem:[%s5006_s9 + $0x38] sm:$0xff]  ;;  %v1262_v7 = vld [vmem:[%s5006_s9 + $0x20] sm:$0xff] }
 0x118   : > { %v3669_v4 = vpack.c.bf16 %v1263_v2, %v1259_v1  ;;  %v3797_v8 = vpack.c.bf16 %v1265_v5, %v1261_v3  ;;  %v3671_v9 = vpack.c.bf16 %v1262_v7, %v1258_v6  ;;  %v1260_v10 = vld [vmem:[%s5006_s9 + $0x10] sm:$0xff]  ;;  %v1267_v12 = vld [vmem:[%s5006_s9 + $0x48] sm:$0xff]  ;;  %v1269_v15 = vld [vmem:[%s5006_s9 + $0x58] sm:$0xff] }
 0x119   : > { %v1264_v11 = vld [vmem:[%s5006_s9 + $0x30] sm:$0xff]  ;;  %v1271_v14 = vld [vmem:[%s5006_s9 + $0x68] sm:$0xff]  ;;  %v1273_v16 = vld [vmem:[%s5006_s9 + $0x78] sm:$0xff] }
 0x11a   : > { %3670 = vmatprep.subr.bf16.mxu0 %v3669_v4  ;;  %v3799_v13 = vpack.c.bf16 %v1264_v11, %v1260_v10  ;;  %3798 = vmatprep.subr.bf16.mxu1 %v3797_v8  ;;  %v3673_v17 = vpack.c.bf16 %v1271_v14, %v1267_v12  ;;  %v3801_v18 = vpack.c.bf16 %v1273_v16, %v1269_v15  ;;  %v1266_v19 = vld [vmem:[%s5006_s9 + $0x40] sm:$0xff]  ;;  %v1268_v21 = vld [vmem:[%s5006_s9 + $0x50] sm:$0xff]  ;;  %v1275_v24 = vld [vmem:[%s5006_s9 + $0x88] sm:$0xff] }
 0x11b   : > { %3672 = vmatpush1.bf16.msra.mxu0 %v3671_v9  ;;  %v1270_v20 = vld [vmem:[%s5006_s9 + $0x60] sm:$0xff]  ;;  %v1272_v23 = vld [vmem:[%s5006_s9 + $0x70] sm:$0xff]  ;;  %v1279_v25 = vld [vmem:[%s5006_s9 + $0xa8] sm:$0xff] }
 0x11c   : > { %3800 = vmatpush1.bf16.msra.mxu1 %v3799_v13  ;;  %v3675_v22 = vpack.c.bf16 %v1270_v20, %v1266_v19  ;;  %3674 = vmatprep.subr.bf16.mxu0 %v3673_v17  ;;  %v3803_v26 = vpack.c.bf16 %v1272_v23, %v1268_v21  ;;  %v3677_v27 = vpack.c.bf16 %v1279_v25, %v1275_v24  ;;  %v1277_v28 = vld [vmem:[%s5006_s9 + $0x98] sm:$0xff]  ;;  %v1274_v30 = vld [vmem:[%s5006_s9 + $0x80] sm:$0xff]  ;;  %v1276_v33 = vld [vmem:[%s5006_s9 + $0x90] sm:$0xff]  ;;  %p3657_p10 = scmp.ne.s32.totalorder %s6938_s16, 1 }
 0x11d   : > { %3802 = vmatprep.subr.bf16.mxu1 %v3801_v18  ;;  %v1281_v29 = vld [vmem:[%s5006_s9 + $0xb8] sm:$0xff]  ;;  %v1278_v32 = vld [vmem:[%s5006_s9 + $0xa0] sm:$0xff]  ;;  %v1280_v34 = vld [vmem:[%s5006_s9 + $0xb0] sm:$0xff] }
 0x11e   : > { %v3805_v31 = vpack.c.bf16 %v1281_v29, %v1277_v28  ;;  %v3679_v35 = vpack.c.bf16 %v1278_v32, %v1274_v30  ;;  %v1283_v36 = vld [vmem:[%s5006_s9 + $0xc8] sm:$0xff]  ;;  %v1285_v38 = vld [vmem:[%s5006_s9 + $0xd8] sm:$0xff]  ;;  %v3807_v39 = vpack.c.bf16 %v1280_v34, %v1276_v33  ;;  %v1282_v42 = vld [vmem:[%s5006_s9 + $0xc0] sm:$0xff] }
 0x11f   : > { %3676 = vmatpush1.bf16.msra.mxu0 %v3675_v22  ;;  %v1287_v37 = vld [vmem:[%s5006_s9 + $0xe8] sm:$0xff]  ;;  %v1289_v41 = vld [vmem:[%s5006_s9 + $0xf8] sm:$0xff]  ;;  %v1286_v43 = vld [vmem:[%s5006_s9 + $0xe0] sm:$0xff] }
 0x120   : > { %3804 = vmatpush1.bf16.msra.mxu1 %v3803_v26  ;;  %3678 = vmatprep.subr.bf16.mxu0 %v3677_v27  ;;  %v3681_v40 = vpack.c.bf16 %v1287_v37, %v1283_v36  ;;  %v3809_v44 = vpack.c.bf16 %v1289_v41, %v1285_v38  ;;  %v1284_v45 = vld [vmem:[%s5006_s9 + $0xd0] sm:$0xff]  ;;  %v1291_v47 = vld [vmem:[%s5006_s9 + $0x108] sm:$0xff]  ;;  %v1293_v49 = vld [vmem:[%s5006_s9 + $0x118] sm:$0xff]  ;;  %v3683_v51 = vpack.c.bf16 %v1286_v43, %v1282_v42 }
 0x121   : > { %3806 = vmatprep.subr.bf16.mxu1 %v3805_v31  ;;  %v1288_v46 = vld [vmem:[%s5006_s9 + $0xf0] sm:$0xff]  ;;  %v1295_v48 = vld [vmem:[%s5006_s9 + $0x128] sm:$0xff]  ;;  %v1297_v50 = vld [vmem:[%s5006_s9 + $0x138] sm:$0xff] }
 0x122   : > { %v3811_v52 = vpack.c.bf16 %v1288_v46, %v1284_v45  ;;  %v3685_v53 = vpack.c.bf16 %v1295_v48, %v1291_v47  ;;  %v1290_v54 = vld [vmem:[%s5006_s9 + $0x100] sm:$0xff]  ;;  %v1292_v56 = vld [vmem:[%s5006_s9 + $0x110] sm:$0xff]  ;;  %v3813_v57 = vpack.c.bf16 %v1297_v50, %v1293_v49  ;;  %v1299_v59 = vld [vmem:[%s5006_s9 + $0x148] sm:$0xff]  ;;  %v982_v48 = vlaneseq }
 0x123   : > { %3680 = vmatpush1.bf16.msra.mxu0 %v3679_v35  ;;  %v1294_v55 = vld [vmem:[%s5006_s9 + $0x120] sm:$0xff]  ;;  %v1296_v58 = vld [vmem:[%s5006_s9 + $0x130] sm:$0xff]  ;;  %v1303_v60 = vld [vmem:[%s5006_s9 + $0x168] sm:$0xff] }
 0x124   : > { %3808 = vmatpush1.bf16.msra.mxu1 %v3807_v39  ;;  %3682 = vmatprep.subr.bf16.mxu0 %v3681_v40  ;;  %v1301_v61 = vld [vmem:[%s5006_s9 + $0x158] sm:$0xff]  ;;  %v3687_v63 = vpack.c.bf16 %v1294_v55, %v1290_v54  ;;  %v3815_v0 = vpack.c.bf16 %v1296_v58, %v1292_v56  ;;  %v3689_v1 = vpack.c.bf16 %v1303_v60, %v1299_v59  ;;  %v1298_v2 = vld [vmem:[%s5006_s9 + $0x140] sm:$0xff]  ;;  %v1300_v4 = vld [vmem:[%s5006_s9 + $0x150] sm:$0xff] }
 0x125   : > { %3810 = vmatprep.subr.bf16.mxu1 %v3809_v44  ;;  %v1305_v62 = vld [vmem:[%s5006_s9 + $0x178] sm:$0xff]  ;;  %v1302_v3 = vld [vmem:[%s5006_s9 + $0x160] sm:$0xff]  ;;  %v1304_v6 = vld [vmem:[%s5006_s9 + $0x170] sm:$0xff] }
 0x126   : > { %v3817_v5 = vpack.c.bf16 %v1305_v62, %v1301_v61  ;;  %v1307_v7 = vld [vmem:[%s5006_s9 + $0x188] sm:$0xff]  ;;  %v1309_v9 = vld [vmem:[%s5006_s9 + $0x198] sm:$0xff]  ;;  %v3691_v11 = vpack.c.bf16 %v1302_v3, %v1298_v2  ;;  %v3819_v12 = vpack.c.bf16 %v1304_v6, %v1300_v4  ;;  %v1306_v14 = vld [vmem:[%s5006_s9 + $0x180] sm:$0xff]  ;;  %v5294_v61 = vshrl.u32 %v982_v48, 7 }
 0x127   : > { %3684 = vmatpush1.bf16.msra.mxu0 %v3683_v51  ;;  %v1311_v8 = vld [vmem:[%s5006_s9 + $0x1a8] sm:$0xff]  ;;  %v1313_v10 = vld [vmem:[%s5006_s9 + $0x1b8] sm:$0xff]  ;;  %v1310_v15 = vld [vmem:[%s5006_s9 + $0x1a0] sm:$0xff] }
 0x128   : > { %3812 = vmatpush1.bf16.msra.mxu1 %v3811_v52  ;;  %3686 = vmatprep.subr.bf16.mxu0 %v3685_v53  ;;  %v3693_v13 = vpack.c.bf16 %v1311_v8, %v1307_v7  ;;  %v1308_v16 = vld [vmem:[%s5006_s9 + $0x190] sm:$0xff]  ;;  %v3821_v17 = vpack.c.bf16 %v1313_v10, %v1309_v9  ;;  %v1315_v19 = vld [vmem:[%s5006_s9 + $0x1c8] sm:$0xff]  ;;  %v1317_v21 = vld [vmem:[%s5006_s9 + $0x1d8] sm:$0xff]  ;;  %v3695_v23 = vpack.c.bf16 %v1310_v15, %v1306_v14 }
 0x129   : > { %3814 = vmatprep.subr.bf16.mxu1 %v3813_v57  ;;  %v1312_v18 = vld [vmem:[%s5006_s9 + $0x1b0] sm:$0xff]  ;;  %v1319_v20 = vld [vmem:[%s5006_s9 + $0x1e8] sm:$0xff]  ;;  %v1321_v22 = vld [vmem:[%s5006_s9 + $0x1f8] sm:$0xff] }
 0x12a   : > { %v3823_v24 = vpack.c.bf16 %v1312_v18, %v1308_v16  ;;  %v3697_v25 = vpack.c.bf16 %v1319_v20, %v1315_v19  ;;  %v1314_v26 = vld [vmem:[%s5006_s9 + $0x1c0] sm:$0xff]  ;;  %v1316_v28 = vld [vmem:[%s5006_s9 + $0x1d0] sm:$0xff]  ;;  %v3825_v29 = vpack.c.bf16 %v1321_v22, %v1317_v21  ;;  %v1323_v31 = vld [vmem:[%s5006_s9 + $0x208] sm:$0xff] }
 0x12b   : > { %3688 = vmatpush1.bf16.msra.mxu0 %v3687_v63  ;;  %v1318_v27 = vld [vmem:[%s5006_s9 + $0x1e0] sm:$0xff]  ;;  %v1320_v30 = vld [vmem:[%s5006_s9 + $0x1f0] sm:$0xff]  ;;  %v1327_v32 = vld [vmem:[%s5006_s9 + $0x228] sm:$0xff] }
 0x12c   : > { %3816 = vmatpush1.bf16.msra.mxu1 %v3815_v0  ;;  %3690 = vmatprep.subr.bf16.mxu0 %v3689_v1  ;;  %v1325_v33 = vld [vmem:[%s5006_s9 + $0x218] sm:$0xff]  ;;  %v3699_v35 = vpack.c.bf16 %v1318_v27, %v1314_v26  ;;  %v3827_v36 = vpack.c.bf16 %v1320_v30, %v1316_v28  ;;  %v3701_v37 = vpack.c.bf16 %v1327_v32, %v1323_v31  ;;  %v1322_v38 = vld [vmem:[%s5006_s9 + $0x200] sm:$0xff]  ;;  %v1324_v40 = vld [vmem:[%s5006_s9 + $0x210] sm:$0xff] }
 0x12d   : > { %3818 = vmatprep.subr.bf16.mxu1 %v3817_v5  ;;  %v1329_v34 = vld [vmem:[%s5006_s9 + $0x238] sm:$0xff]  ;;  %v1326_v39 = vld [vmem:[%s5006_s9 + $0x220] sm:$0xff]  ;;  %v1328_v42 = vld [vmem:[%s5006_s9 + $0x230] sm:$0xff] }
 0x12e   : > { %v3829_v41 = vpack.c.bf16 %v1329_v34, %v1325_v33  ;;  %v1331_v43 = vld [vmem:[%s5006_s9 + $0x248] sm:$0xff]  ;;  %v1333_v45 = vld [vmem:[%s5006_s9 + $0x258] sm:$0xff]  ;;  %v3703_v47 = vpack.c.bf16 %v1326_v39, %v1322_v38  ;;  %v3831_v49 = vpack.c.bf16 %v1328_v42, %v1324_v40  ;;  %v1330_v51 = vld [vmem:[%s5006_s9 + $0x240] sm:$0xff] }
 0x12f   : > { %3692 = vmatpush1.bf16.msra.mxu0 %v3691_v11  ;;  %v1335_v44 = vld [vmem:[%s5006_s9 + $0x268] sm:$0xff]  ;;  %v1337_v46 = vld [vmem:[%s5006_s9 + $0x278] sm:$0xff]  ;;  %v1334_v52 = vld [vmem:[%s5006_s9 + $0x260] sm:$0xff]  ;;  %v988_v11 = vsub.s32 1, %v5294_v61 }
 0x130   : > { %3820 = vmatpush1.bf16.msra.mxu1 %v3819_v12  ;;  %3694 = vmatprep.subr.bf16.mxu0 %v3693_v13  ;;  %v3705_v50 = vpack.c.bf16 %v1335_v44, %v1331_v43  ;;  %v1332_v53 = vld [vmem:[%s5006_s9 + $0x250] sm:$0xff]  ;;  %v3833_v54 = vpack.c.bf16 %v1337_v46, %v1333_v45  ;;  %v1339_v56 = vld [vmem:[%s5006_s9 + $0x288] sm:$0xff]  ;;  %v1341_v58 = vld [vmem:[%s5006_s9 + $0x298] sm:$0xff]  ;;  %v3707_v60 = vpack.c.bf16 %v1334_v52, %v1330_v51  ;;  %v992_v12 = vsub.s32 2, %v5294_v61 }
 0x131   : > { %3822 = vmatprep.subr.bf16.mxu1 %v3821_v17  ;;  %v1336_v55 = vld [vmem:[%s5006_s9 + $0x270] sm:$0xff]  ;;  %v1343_v57 = vld [vmem:[%s5006_s9 + $0x2a8] sm:$0xff]  ;;  %v1345_v59 = vld [vmem:[%s5006_s9 + $0x2b8] sm:$0xff] }
 0x132   : > { %v3835_v62 = vpack.c.bf16 %v1336_v55, %v1332_v53  ;;  %v3709_v63 = vpack.c.bf16 %v1343_v57, %v1339_v56  ;;  %v1338_v0 = vld [vmem:[%s5006_s9 + $0x280] sm:$0xff]  ;;  %v1340_v2 = vld [vmem:[%s5006_s9 + $0x290] sm:$0xff]  ;;  %v3837_v3 = vpack.c.bf16 %v1345_v59, %v1341_v58  ;;  %v1347_v5 = vld [vmem:[%s5006_s9 + $0x2c8] sm:$0xff] }
 0x133   : > { %3696 = vmatpush1.bf16.msra.mxu0 %v3695_v23  ;;  %v1342_v1 = vld [vmem:[%s5006_s9 + $0x2a0] sm:$0xff]  ;;  %v1344_v4 = vld [vmem:[%s5006_s9 + $0x2b0] sm:$0xff]  ;;  %v1351_v6 = vld [vmem:[%s5006_s9 + $0x2e8] sm:$0xff] }
 0x134   : > { %3824 = vmatpush1.bf16.msra.mxu1 %v3823_v24  ;;  %3698 = vmatprep.subr.bf16.mxu0 %v3697_v25  ;;  %v1349_v7 = vld [vmem:[%s5006_s9 + $0x2d8] sm:$0xff]  ;;  %v3711_v9 = vpack.c.bf16 %v1342_v1, %v1338_v0  ;;  %v1346_v10 = vld [vmem:[%s5006_s9 + $0x2c0] sm:$0xff]  ;;  %v3839_v13 = vpack.c.bf16 %v1344_v4, %v1340_v2  ;;  %v3713_v14 = vpack.c.bf16 %v1351_v6, %v1347_v5  ;;  %v1348_v16 = vld [vmem:[%s5006_s9 + $0x2d0] sm:$0xff]  ;;  %v984_v1 = vsub.s32 0, %v5294_v61 }
 0x135   : > { %3826 = vmatprep.subr.bf16.mxu1 %v3825_v29  ;;  %v1353_v8 = vld [vmem:[%s5006_s9 + $0x2f8] sm:$0xff]  ;;  %v1350_v15 = vld [vmem:[%s5006_s9 + $0x2e0] sm:$0xff]  ;;  %v1352_v17 = vld [vmem:[%s5006_s9 + $0x2f0] sm:$0xff] }
 0x136   : > { %v3841_v18 = vpack.c.bf16 %v1353_v8, %v1349_v7  ;;  %v1355_v19 = vld [vmem:[%s5006_s9 + $0x308] sm:$0xff]  ;;  %v1357_v21 = vld [vmem:[%s5006_s9 + $0x318] sm:$0xff]  ;;  %v468_v23 = vld [vmem:[%s4990_s1 + $0x8] sm:$0xff]  ;;  %v3715_v25 = vpack.c.bf16 %v1350_v15, %v1346_v10  ;;  %v3843_v28 = vpack.c.bf16 %v1352_v17, %v1348_v16 }
 0x137   : > { %3700 = vmatpush1.bf16.msra.mxu0 %v3699_v35  ;;  %v1359_v20 = vld [vmem:[%s5006_s9 + $0x328] sm:$0xff]  ;;  %v1361_v22 = vld [vmem:[%s5006_s9 + $0x338] sm:$0xff]  ;;  %v1354_v30 = vld [vmem:[%s5006_s9 + $0x300] sm:$0xff] }
 0x138   : > { %3828 = vmatpush1.bf16.msra.mxu1 %v3827_v36  ;;  %3702 = vmatprep.subr.bf16.mxu0 %v3701_v37  ;;  %v5317_v24 = vld [vmem:[%s253_s26] sm:$0xf]  ;;  %v3717_v29 = vpack.c.bf16 %v1359_v20, %v1355_v19  ;;  %v1358_v31 = vld [vmem:[%s5006_s9 + $0x320] sm:$0xff]  ;;  %v1356_v32 = vld [vmem:[%s5006_s9 + $0x310] sm:$0xff]  ;;  %v3845_v33 = vpack.c.bf16 %v1361_v22, %v1357_v21 }
 0x139   : > { %3830 = vmatprep.subr.bf16.mxu1 %v3829_v41  ;;  %v5320_v26 = vrot.slane %v5317_v24, %v988_v11  ;;  %v5323_v27 = vrot.slane %v5317_v24, %v992_v12  ;;  %v1360_v34 = vld [vmem:[%s5006_s9 + $0x330] sm:$0xff]  ;;  %v1363_v35 = vld [vmem:[%s5006_s9 + $0x348] sm:$0xff]  ;;  %v1365_v38 = vld [vmem:[%s5006_s9 + $0x358] sm:$0xff]  ;;  %v3719_v40 = vpack.c.bf16 %v1358_v31, %v1354_v30  ;;  %v5358_v12 = vrot.slane %v5317_v24, %v984_v1 }
 0x13a   : > { %v1367_v36 = vld [vmem:[%s5006_s9 + $0x368] sm:$0xff]  ;;  %v1369_v39 = vld [vmem:[%s5006_s9 + $0x378] sm:$0xff]  ;;  %v3847_v41 = vpack.c.bf16 %v1360_v34, %v1356_v32  ;;  %v1362_v43 = vld [vmem:[%s5006_s9 + $0x340] sm:$0xff] }
 0x13b   : > { %3704 = vmatpush1.bf16.msra.mxu0 %v3703_v47  ;;  %v1003_v37 = vmul.f32 %v5320_v26, %v468_v23  ;;  %v3721_v42 = vpack.c.bf16 %v1367_v36, %v1363_v35  ;;  %v1366_v44 = vld [vmem:[%s5006_s9 + $0x360] sm:$0xff]  ;;  %v1364_v45 = vld [vmem:[%s5006_s9 + $0x350] sm:$0xff]  ;;  %v3849_v46 = vpack.c.bf16 %v1369_v39, %v1365_v38  ;;  %v1371_v48 = vld [vmem:[%s5006_s9 + $0x388] sm:$0xff] }
 0x13c   : > { %3832 = vmatpush1.bf16.msra.mxu1 %v3831_v49  ;;  %3706 = vmatprep.subr.bf16.mxu0 %v3705_v50  ;;  %v1368_v47 = vld [vmem:[%s5006_s9 + $0x370] sm:$0xff]  ;;  %v1375_v49 = vld [vmem:[%s5006_s9 + $0x3a8] sm:$0xff]  ;;  %v1373_v50 = vld [vmem:[%s5006_s9 + $0x398] sm:$0xff]  ;;  %v3723_v52 = vpack.c.bf16 %v1366_v44, %v1362_v43 }
 0x13d   : > { %3834 = vmatprep.subr.bf16.mxu1 %v3833_v54  ;;  %1578 = vmatprep.mubr.f32.mxu0 %v1003_v37  ;;  %v1377_v51 = vld [vmem:[%s5006_s9 + $0x3b8] sm:$0xff]  ;;  %v3851_v53 = vpack.c.bf16 %v1368_v47, %v1364_v45  ;;  %v3725_v54 = vpack.c.bf16 %v1375_v49, %v1371_v48  ;;  %v1370_v55 = vld [vmem:[%s5006_s9 + $0x380] sm:$0xff]  ;;  %v1372_v57 = vld [vmem:[%s5006_s9 + $0x390] sm:$0xff] }
 0x13e   : > { %2092 = vmatprep.mubr.f32.mxu1 %v1003_v37  ;;  %v1374_v56 = vld [vmem:[%s5006_s9 + $0x3a0] sm:$0xff]  ;;  %v3853_v58 = vpack.c.bf16 %v1377_v51, %v1373_v50  ;;  %v1376_v59 = vld [vmem:[%s5006_s9 + $0x3b0] sm:$0xff]  ;;  %v1385_v0 = vld [vmem:[%s5006_s9 + $0x3f8] sm:$0xff] }
 0x13f   : > { %3708 = vmatpush1.bf16.msra.mxu0 %v3707_v60  ;;  %v1379_v60 = vld [vmem:[%s5006_s9 + $0x3c8] sm:$0xff]  ;;  %v3727_v2 = vpack.c.bf16 %v1374_v56, %v1370_v55  ;;  %v1378_v5 = vld [vmem:[%s5006_s9 + $0x3c0] sm:$0xff]  ;;  %v1380_v7 = vld [vmem:[%s5006_s9 + $0x3d0] sm:$0xff] }
 0x140   : > { %3836 = vmatpush1.bf16.msra.mxu1 %v3835_v62  ;;  %3710 = vmatprep.subr.bf16.mxu0 %v3709_v63  ;;  %v1383_v62 = vld [vmem:[%s5006_s9 + $0x3e8] sm:$0xff]  ;;  %v1381_v63 = vld [vmem:[%s5006_s9 + $0x3d8] sm:$0xff]  ;;  %v1382_v6 = vld [vmem:[%s5006_s9 + $0x3e0] sm:$0xff] }
 0x141   : > { %3838 = vmatprep.subr.bf16.mxu1 %v3837_v3  ;;  %v3855_v3 = vpack.c.bf16 %v1376_v59, %v1372_v57  ;;  %v3729_v4 = vpack.c.bf16 %v1383_v62, %v1379_v60  ;;  %v3857_v8 = vpack.c.bf16 %v1385_v0, %v1381_v63  ;;  %v1387_v10 = vld [vmem:[%s5006_s9 + $0x408] sm:$0xff]  ;;  %v3731_v15 = vpack.c.bf16 %v1382_v6, %v1378_v5  ;;  %v467_v16 = vld [vmem:[%s4990_s1] sm:$0xff]  ;;  %v1386_v19 = vld [vmem:[%s5006_s9 + $0x400] sm:$0xff] }
 0x142   : > { %v1391_v11 = vld [vmem:[%s5006_s9 + $0x428] sm:$0xff]  ;;  %v1390_v20 = vld [vmem:[%s5006_s9 + $0x420] sm:$0xff]  ;;  %v1388_v22 = vld [vmem:[%s5006_s9 + $0x410] sm:$0xff] }
 0x143   : > { %3712 = vmatpush1.bf16.msra.mxu0 %v3711_v9  ;;  %v1384_v9 = vld [vmem:[%s5006_s9 + $0x3f0] sm:$0xff]  ;;  %v1395_v30 = vld [vmem:[%s5006_s9 + $0x448] sm:$0xff]  ;;  %v3735_v32 = vpack.c.bf16 %v1390_v20, %v1386_v19  ;;  %v1397_v34 = vld [vmem:[%s5006_s9 + $0x458] sm:$0xff] }
 0x144   : > { %3840 = vmatpush1.bf16.msra.mxu1 %v3839_v13  ;;  %3714 = vmatprep.subr.bf16.mxu0 %v3713_v14  ;;  %v1389_v13 = vld [vmem:[%s5006_s9 + $0x418] sm:$0xff]  ;;  %v3859_v17 = vpack.c.bf16 %v1384_v9, %v1380_v7  ;;  %v1392_v23 = vld [vmem:[%s5006_s9 + $0x430] sm:$0xff]  ;;  %v1399_v31 = vld [vmem:[%s5006_s9 + $0x468] sm:$0xff] }
 0x145   : > { %3842 = vmatprep.subr.bf16.mxu1 %v3841_v18  ;;  %v1393_v14 = vld [vmem:[%s5006_s9 + $0x438] sm:$0xff]  ;;  %v3733_v18 = vpack.c.bf16 %v1391_v11, %v1387_v10  ;;  %v3863_v36 = vpack.c.bf16 %v1392_v23, %v1388_v22  ;;  %v476_v37 = vld [vmem:[%s4990_s1 + $0x48] sm:$0xff]  ;;  %v3737_v38 = vpack.c.bf16 %v1399_v31, %v1395_v30  ;;  %v1400_v45 = vld [vmem:[%s5006_s9 + $0x470] sm:$0xff] }
 0x146   : > { %v3861_v21 = vpack.c.bf16 %v1393_v14, %v1389_v13  ;;  %v1401_v35 = vld [vmem:[%s5006_s9 + $0x478] sm:$0xff]  ;;  %v1394_v39 = vld [vmem:[%s5006_s9 + $0x440] sm:$0xff]  ;;  %v1407_v47 = vld [vmem:[%s5006_s9 + $0x4a8] sm:$0xff]  ;;  %v1011_v48 = vmul.f32 %v5320_v26, %v476_v37 }
 0x147   : > { %3716 = vmatpush1.bf16.msra.mxu0 %v3715_v25  ;;  %v5368_v25 = vld [vmem:[%s4990_s1 + $0x28] sm:$0xff]  ;;  %v3865_v44 = vpack.c.bf16 %v1401_v35, %v1397_v34  ;;  %v475_v49 = vld [vmem:[%s4990_s1 + $0x40] sm:$0xff]  ;;  %v1404_v57 = vld [vmem:[%s5006_s9 + $0x490] sm:$0xff] }
 0x148   : > { %3844 = vmatpush1.bf16.msra.mxu1 %v3843_v28  ;;  %3718 = vmatprep.subr.bf16.mxu0 %v3717_v29  ;;  %v996_v28 = vsub.s32 3, %v5294_v61  ;;  %v1002_v29 = vmul.f32 %v5358_v12, %v467_v16  ;;  %v1007_v61 = vmul.f32 %v5320_v26, %v5368_v25  ;;  %v1405_v50 = vld [vmem:[%s5006_s9 + $0x498] sm:$0xff]  ;;  %v1402_v55 = vld [vmem:[%s5006_s9 + $0x480] sm:$0xff]  ;;  %v1408_v60 = vld [vmem:[%s5006_s9 + $0x4b0] sm:$0xff] }
 0x149   : > { %3846 = vmatprep.subr.bf16.mxu1 %v3845_v33  ;;  %v5375_v33 = vld [vmem:[%s4990_s1 + $0x20] sm:$0xff]  ;;  %v1406_v56 = vld [vmem:[%s5006_s9 + $0x4a0] sm:$0xff]  ;;  %v1411_v62 = vld [vmem:[%s5006_s9 + $0x4c8] sm:$0xff]  ;;  %v3871_v6 = vpack.c.bf16 %v1408_v60, %v1404_v57 }
 0x14a   : > { %v1006_v43 = vmul.f32 %v5358_v12, %v5375_v33  ;;  %v1415_v63 = vld [vmem:[%s5006_s9 + $0x4e8] sm:$0xff]  ;;  %v5410_v1 = vld [vmem:[%s4990_s1 + $0x60] sm:$0xff]  ;;  %v3743_v5 = vpack.c.bf16 %v1406_v56, %v1402_v55  ;;  %v1414_v9 = vld [vmem:[%s5006_s9 + $0x4e0] sm:$0xff] }
 0x14b   : > { %3720 = vmatpush1.bf16.msra.mxu0 %v3719_v40  ;;  %v1398_v40 = vld [vmem:[%s5006_s9 + $0x460] sm:$0xff]  ;;  %v3745_v7 = vpack.c.bf16 %v1415_v63, %v1411_v62  ;;  %v1412_v10 = vld [vmem:[%s5006_s9 + $0x4d0] sm:$0xff]  ;;  %v1014_v11 = vmul.f32 %v5358_v12, %v5410_v1  ;;  %v1423_v16 = vld [vmem:[%s5006_s9 + $0x528] sm:$0xff] }
 0x14c   : > { %3848 = vmatpush1.bf16.msra.mxu1 %v3847_v41  ;;  %3722 = vmatprep.subr.bf16.mxu0 %v3721_v42  ;;  %v1396_v41 = vld [vmem:[%s5006_s9 + $0x450] sm:$0xff]  ;;  %v5386_v42 = vrot.slane %v5317_v24, %v996_v28  ;;  %v1409_v24 = vld [vmem:[%s5006_s9 + $0x4b8] sm:$0xff]  ;;  %v3739_v51 = vpack.c.bf16 %v1398_v40, %v1394_v39  ;;  %v1422_v30 = vld [vmem:[%s5006_s9 + $0x520] sm:$0xff] }
 0x14d   : > { %3850 = vmatprep.subr.bf16.mxu1 %v3849_v46  ;;  %v1403_v46 = vld [vmem:[%s5006_s9 + $0x488] sm:$0xff]  ;;  %v3869_v59 = vpack.c.bf16 %v1409_v24, %v1405_v50  ;;  %v1416_v14 = vld [vmem:[%s5006_s9 + $0x4f0] sm:$0xff]  ;;  %v1421_v19 = vld [vmem:[%s5006_s9 + $0x518] sm:$0xff] }
 0x14e   : > { %v1425_v20 = vld [vmem:[%s5006_s9 + $0x538] sm:$0xff]  ;;  %v3875_v23 = vpack.c.bf16 %v1416_v14, %v1412_v10  ;;  %v1420_v31 = vld [vmem:[%s5006_s9 + $0x510] sm:$0xff]  ;;  %v1434_v63 = vld [vmem:[%s5006_s9 + $0x580] sm:$0xff] }
 0x14f   : > { %3724 = vmatpush1.bf16.msra.mxu0 %v3723_v52  ;;  %v5398_v52 = vld [vmem:[%s4990_s1 + $0x68] sm:$0xff]  ;;  %v3877_v34 = vpack.c.bf16 %v1425_v20, %v1421_v19  ;;  %v1424_v35 = vld [vmem:[%s5006_s9 + $0x530] sm:$0xff]  ;;  %v1429_v39 = vld [vmem:[%s5006_s9 + $0x558] sm:$0xff] }
 0x150   : > { %3852 = vmatpush1.bf16.msra.mxu1 %v3851_v53  ;;  %3726 = vmatprep.subr.bf16.mxu0 %v3725_v54  ;;  %v3867_v53 = vpack.c.bf16 %v1400_v45, %v1396_v41  ;;  %v3741_v54 = vpack.c.bf16 %v1407_v47, %v1403_v46  ;;  %v1015_v0 = vmul.f32 %v5320_v26, %v5398_v52  ;;  %v1433_v40 = vld [vmem:[%s5006_s9 + $0x578] sm:$0xff]  ;;  %v5451_v41 = vld [vmem:[%s4990_s1 + $0xc8] sm:$0xff]  ;;  %v1432_v24 = vld [vmem:[%s5006_s9 + $0x570] sm:$0xff] }
 0x151   : > { %3854 = vmatprep.subr.bf16.mxu1 %v3853_v58  ;;  %v1010_v58 = vmul.f32 %v5358_v12, %v475_v49  ;;  %v1426_v46 = vld [vmem:[%s5006_s9 + $0x540] sm:$0xff]  ;;  %v3881_v50 = vpack.c.bf16 %v1433_v40, %v1429_v39  ;;  %v5464_v55 = vld [vmem:[%s4990_s1 + $0xc0] sm:$0xff] }
 0x152   : > { %v1430_v47 = vld [vmem:[%s5006_s9 + $0x560] sm:$0xff]  ;;  %v1437_v56 = vld [vmem:[%s5006_s9 + $0x598] sm:$0xff] }
 0x153   : > { %3728 = vmatpush1.bf16.msra.mxu0 %v3727_v2  ;;  %v1413_v2 = vld [vmem:[%s5006_s9 + $0x4d8] sm:$0xff]  ;;  %v5487_v14 = vld [vmem:[%s4990_s1 + $0x108] sm:$0xff] }
 0x154   : > { %3856 = vmatpush1.bf16.msra.mxu1 %v3855_v3  ;;  %3730 = vmatprep.subr.bf16.mxu0 %v3729_v4  ;;  %v1417_v3 = vld [vmem:[%s5006_s9 + $0x4f8] sm:$0xff]  ;;  %v5415_v4 = vld [vmem:[%s4990_s1 + $0x88] sm:$0xff] }
 0x155   : > { %3858 = vmatprep.subr.bf16.mxu1 %v3857_v8  ;;  %v1410_v8 = vld [vmem:[%s5006_s9 + $0x4c0] sm:$0xff]  ;;  %v3873_v13 = vpack.c.bf16 %v1417_v3, %v1413_v2  ;;  %v1441_v57 = vld [vmem:[%s5006_s9 + $0x5b8] sm:$0xff]  ;;  %v1436_v2 = vld [vmem:[%s5006_s9 + $0x590] sm:$0xff]  ;;  %v1026_v3 = vmul.f32 %v5358_v12, %v5464_v55 }
 0x156   : > { %v3747_v22 = vpack.c.bf16 %v1414_v9, %v1410_v8  ;;  %v1447_v8 = vld [vmem:[%s5006_s9 + $0x5e8] sm:$0xff]  ;;  %v5482_v10 = vld [vmem:[%s4990_s1 + $0xe0] sm:$0xff]  ;;  %v1442_v19 = vld [vmem:[%s5006_s9 + $0x5c0] sm:$0xff] }
 0x157   : > { %3732 = vmatpush1.bf16.msra.mxu0 %v3731_v15  ;;  %v1419_v15 = vld [vmem:[%s5006_s9 + $0x508] sm:$0xff]  ;;  %v1446_v20 = vld [vmem:[%s5006_s9 + $0x5e0] sm:$0xff] }
 0x158   : > { %3860 = vmatpush1.bf16.msra.mxu1 %v3859_v17  ;;  %3734 = vmatprep.subr.bf16.mxu0 %v3733_v18  ;;  %v1019_v17 = vmul.f32 %v5320_v26, %v5415_v4  ;;  %v5428_v18 = vld [vmem:[%s4990_s1 + $0x80] sm:$0xff]  ;;  %v3749_v28 = vpack.c.bf16 %v1423_v16, %v1419_v15 }
 0x159   : > { %3862 = vmatprep.subr.bf16.mxu1 %v3861_v21  ;;  %v5433_v21 = vld [vmem:[%s4990_s1 + $0xa8] sm:$0xff] }
 0x15a   : > { %1579 = vmatmul.mubr.f32.vlgmr.msra.gmra.mrb[0].mxu0 %v1002_v29  ;;  %v1023_v37 = vmul.f32 %v5320_v26, %v5433_v21 }
 0x15b   : > { %2093 = vmatmul.mubr.f32.vlgmr.msra.gmra.mrb[0].mxu1 %v1002_v29  ;;  %3736 = vmatpush1.bf16.msra.mxu0 %v3735_v32  ;;  %v1418_v29 = vld [vmem:[%s5006_s9 + $0x500] sm:$0xff]  ;;  %v1018_v32 = vmul.f32 %v5358_v12, %v5428_v18 }
 0x15c   : > { %3864 = vmatpush1.bf16.msra.mxu1 %v3863_v36  ;;  %1584 = vmatprep.mubr.f32.mxu0 %v1007_v61  ;;  %v1427_v36 = vld [vmem:[%s5006_s9 + $0x548] sm:$0xff] }
 0x15d   : > { %2098 = vmatprep.mubr.f32.mxu1 %v1007_v61  ;;  %3738 = vmatprep.subr.bf16.mxu0 %v3737_v38  ;;  %v1431_v61 = vld [vmem:[%s5006_s9 + $0x568] sm:$0xff]  ;;  %v5446_v38 = vld [vmem:[%s4990_s1 + $0xa0] sm:$0xff] }
 0x15e   : > { %1585 = vmatmul.mubr.f32.gmra.mrb[2].mxu0 %v1006_v43  ;;  %3866 = vmatprep.subr.bf16.mxu1 %v3865_v44  ;;  %v3879_v44 = vpack.c.bf16 %v1424_v35, %v1420_v31  ;;  %v3753_v45 = vpack.c.bf16 %v1431_v61, %v1427_v36  ;;  %v1022_v49 = vmul.f32 %v5358_v12, %v5446_v38  ;;  %v1455_v31 = vld [vmem:[%s5006_s9 + $0x628] sm:$0xff]  ;;  %v1453_v35 = vld [vmem:[%s5006_s9 + $0x618] sm:$0xff]  ;;  %v5505_v61 = vld [vmem:[%s4990_s1 + $0x128] sm:$0xff] }
 0x15f   : > { %2099 = vmatmul.mubr.f32.gmra.mrb[2].mxu1 %v1006_v43  ;;  %1590 = vmatprep.mubr.f32.mxu0 %v1011_v48  ;;  %v3751_v43 = vpack.c.bf16 %v1422_v30, %v1418_v29  ;;  %v1448_v29 = vld [vmem:[%s5006_s9 + $0x5f0] sm:$0xff]  ;;  %v1451_v30 = vld [vmem:[%s5006_s9 + $0x608] sm:$0xff]  ;;  %v1457_v36 = vld [vmem:[%s5006_s9 + $0x638] sm:$0xff] }
 0x160   : > { %2104 = vmatprep.mubr.f32.mxu1 %v1011_v48  ;;  %3740 = vmatpush1.bf16.msra.mxu0 %v3739_v51  ;;  %v1428_v48 = vld [vmem:[%s5006_s9 + $0x550] sm:$0xff]  ;;  %v1435_v51 = vld [vmem:[%s5006_s9 + $0x588] sm:$0xff]  ;;  %v3765_v40 = vpack.c.bf16 %v1455_v31, %v1451_v30 }
 0x161   : > { %3868 = vmatpush1.bf16.msra.mxu1 %v3867_v53  ;;  %3742 = vmatprep.subr.bf16.mxu0 %v3741_v54  ;;  %v1439_v53 = vld [vmem:[%s5006_s9 + $0x5a8] sm:$0xff]  ;;  %v1027_v54 = vmul.f32 %v5320_v26, %v5451_v41  ;;  %v3883_v60 = vpack.c.bf16 %v1432_v24, %v1428_v48  ;;  %v1456_v48 = vld [vmem:[%s5006_s9 + $0x630] sm:$0xff]  ;;  %v1039_v24 = vmul.f32 %v5320_v26, %v5505_v61 }
 0x162   : > { %1591 = vmatmul.mubr.f32.gmra.mrb[4].mxu0 %v1010_v58  ;;  %3870 = vmatprep.subr.bf16.mxu1 %v3869_v59  ;;  %v3755_v59 = vpack.c.bf16 %v1430_v47, %v1426_v46  ;;  %v3757_v62 = vpack.c.bf16 %v1439_v53, %v1435_v51  ;;  %v3893_v47 = vpack.c.bf16 %v1457_v36, %v1453_v35  ;;  %v5518_v51 = vld [vmem:[%s4990_s1 + $0x120] sm:$0xff]  ;;  %v1472_v30 = vld [vmem:[%s5006_s9 + $0x6b0] sm:$0xff]  ;;  %v1475_v31 = vld [vmem:[%s5006_s9 + $0x6c8] sm:$0xff] }
 0x163   : > { %2105 = vmatmul.mubr.f32.gmra.mrb[4].mxu1 %v1010_v58  ;;  %1596 = vmatprep.mubr.f32.mxu0 %v1015_v0  ;;  %v5469_v58 = vld [vmem:[%s4990_s1 + $0xe8] sm:$0xff]  ;;  %v1461_v53 = vld [vmem:[%s5006_s9 + $0x658] sm:$0xff] }
 0x164   : > { %2110 = vmatprep.mubr.f32.mxu1 %v1015_v0  ;;  %3744 = vmatpush1.bf16.msra.mxu0 %v3743_v5  ;;  %v1438_v0 = vld [vmem:[%s5006_s9 + $0x5a0] sm:$0xff]  ;;  %v3885_v5 = vpack.c.bf16 %v1441_v57, %v1437_v56  ;;  %v1031_v9 = vmul.f32 %v5320_v26, %v5469_v58  ;;  %v5554_v36 = vld [vmem:[%s4990_s1 + $0x160] sm:$0xff] }
 0x165   : > { %3872 = vmatpush1.bf16.msra.mxu1 %v3871_v6  ;;  %3746 = vmatprep.subr.bf16.mxu0 %v3745_v7  ;;  %v1440_v6 = vld [vmem:[%s5006_s9 + $0x5b0] sm:$0xff]  ;;  %v1443_v7 = vld [vmem:[%s5006_s9 + $0x5c8] sm:$0xff]  ;;  %v3759_v15 = vpack.c.bf16 %v1438_v0, %v1434_v63  ;;  %v5523_v56 = vld [vmem:[%s4990_s1 + $0x148] sm:$0xff] }
 0x166   : > { %1597 = vmatmul.mubr.f32.gmra.mrb[6].mxu0 %v1014_v11  ;;  %3874 = vmatprep.subr.bf16.mxu1 %v3873_v13  ;;  %v1449_v13 = vld [vmem:[%s5006_s9 + $0x5f8] sm:$0xff]  ;;  %v3887_v16 = vpack.c.bf16 %v1440_v6, %v1436_v2  ;;  %v1462_v63 = vld [vmem:[%s5006_s9 + $0x660] sm:$0xff]  ;;  %v1460_v0 = vld [vmem:[%s5006_s9 + $0x650] sm:$0xff]  ;;  %v1038_v2 = vmul.f32 %v5358_v12, %v5518_v51 }
 0x167   : > { %2111 = vmatmul.mubr.f32.gmra.mrb[6].mxu1 %v1014_v11  ;;  %1602 = vmatprep.mubr.f32.mxu0 %v1019_v17  ;;  %v1445_v11 = vld [vmem:[%s5006_s9 + $0x5d8] sm:$0xff]  ;;  %v1467_v6 = vld [vmem:[%s5006_s9 + $0x688] sm:$0xff] }
 0x168   : > { %2116 = vmatprep.mubr.f32.mxu1 %v1019_v17  ;;  %3748 = vmatpush1.bf16.msra.mxu0 %v3747_v22  ;;  %v3761_v17 = vpack.c.bf16 %v1447_v8, %v1443_v7  ;;  %v1444_v22 = vld [vmem:[%s5006_s9 + $0x5d0] sm:$0xff]  ;;  %v1471_v7 = vld [vmem:[%s5006_s9 + $0x6a8] sm:$0xff]  ;;  %v1043_v8 = vmul.f32 %v5320_v26, %v5523_v56 }
 0x169   : > { %3876 = vmatpush1.bf16.msra.mxu1 %v3875_v23  ;;  %3750 = vmatprep.subr.bf16.mxu0 %v3749_v28  ;;  %v1030_v23 = vmul.f32 %v5358_v12, %v5482_v10  ;;  %v3889_v28 = vpack.c.bf16 %v1449_v13, %v1445_v11  ;;  %v3891_v39 = vpack.c.bf16 %v1448_v29, %v1444_v22  ;;  %v1469_v11 = vld [vmem:[%s5006_s9 + $0x698] sm:$0xff]  ;;  %v1470_v22 = vld [vmem:[%s5006_s9 + $0x6a0] sm:$0xff] }
 0x16a   : > { %1603 = vmatmul.mubr.f32.gmra.mrb[8].mxu0 %v1018_v32  ;;  %3878 = vmatprep.subr.bf16.mxu1 %v3877_v34  ;;  %v5500_v34 = vld [vmem:[%s4990_s1 + $0x100] sm:$0xff] }
 0x16b   : > { %2117 = vmatmul.mubr.f32.gmra.mrb[8].mxu1 %v1018_v32  ;;  %1608 = vmatprep.mubr.f32.mxu0 %v1023_v37  ;;  %v1035_v32 = vmul.f32 %v5320_v26, %v5487_v14  ;;  %v1034_v46 = vmul.f32 %v5358_v12, %v5500_v34  ;;  %v1473_v13 = vld [vmem:[%s5006_s9 + $0x6b8] sm:$0xff] }
 0x16c   : > { %2122 = vmatprep.mubr.f32.mxu1 %v1023_v37  ;;  %3752 = vmatpush1.bf16.msra.mxu0 %v3751_v43  ;;  %v3763_v37 = vpack.c.bf16 %v1446_v20, %v1442_v19  ;;  %v1450_v43 = vld [vmem:[%s5006_s9 + $0x600] sm:$0xff]  ;;  %v3773_v19 = vpack.c.bf16 %v1471_v7, %v1467_v6  ;;  %v3901_v29 = vpack.c.bf16 %v1473_v13, %v1469_v11  ;;  %v1484_v7 = vld [vmem:[%s5006_s9 + $0x710] sm:$0xff] }
 0x16d   : > { %3880 = vmatpush1.bf16.msra.mxu1 %v3879_v44  ;;  %3754 = vmatprep.subr.bf16.mxu0 %v3753_v45  ;;  %v1454_v44 = vld [vmem:[%s5006_s9 + $0x620] sm:$0xff]  ;;  %v1452_v45 = vld [vmem:[%s5006_s9 + $0x610] sm:$0xff] }
 0x16e   : > { %1609 = vmatmul.mubr.f32.gmra.mrb[10].mxu0 %v1022_v49  ;;  %3882 = vmatprep.subr.bf16.mxu1 %v3881_v50  ;;  %v1463_v50 = vld [vmem:[%s5006_s9 + $0x668] sm:$0xff]  ;;  %v3767_v57 = vpack.c.bf16 %v1454_v44, %v1450_v43  ;;  %v1466_v20 = vld [vmem:[%s5006_s9 + $0x680] sm:$0xff]  ;;  %v1488_v13 = vld [vmem:[%s5006_s9 + $0x730] sm:$0xff] }
 0x16f   : > { %2123 = vmatmul.mubr.f32.gmra.mrb[10].mxu1 %v1022_v49  ;;  %1614 = vmatprep.mubr.f32.mxu0 %v1027_v54  ;;  %v1459_v49 = vld [vmem:[%s5006_s9 + $0x648] sm:$0xff]  ;;  %v3775_v43 = vpack.c.bf16 %v1470_v22, %v1466_v20  ;;  %v1486_v6 = vld [vmem:[%s5006_s9 + $0x720] sm:$0xff]  ;;  %v5590_v20 = vld [vmem:[%s4990_s1 + $0x1a0] sm:$0xff] }
 0x170   : > { %2128 = vmatprep.mubr.f32.mxu1 %v1027_v54  ;;  %3756 = vmatpush1.bf16.msra.mxu0 %v3755_v59  ;;  %v1465_v54 = vld [vmem:[%s5006_s9 + $0x678] sm:$0xff]  ;;  %v3895_v59 = vpack.c.bf16 %v1456_v48, %v1452_v45  ;;  %v1476_v48 = vld [vmem:[%s5006_s9 + $0x6d0] sm:$0xff] }
 0x171   : > { %3884 = vmatpush1.bf16.msra.mxu1 %v3883_v60  ;;  %3758 = vmatprep.subr.bf16.mxu0 %v3757_v62  ;;  %v3769_v60 = vpack.c.bf16 %v1463_v50, %v1459_v49  ;;  %v1458_v62 = vld [vmem:[%s5006_s9 + $0x640] sm:$0xff]  ;;  %v1046_v49 = vmul.f32 %v5358_v12, %v5554_v36  ;;  %v1493_v22 = vld [vmem:[%s5006_s9 + $0x758] sm:$0xff] }
 0x172   : > { %1615 = vmatmul.mubr.f32.gmra.mrb[12].mxu0 %v1026_v3  ;;  %3886 = vmatprep.subr.bf16.mxu1 %v3885_v5  ;;  %v1464_v5 = vld [vmem:[%s5006_s9 + $0x670] sm:$0xff] }
 0x173   : > { %2129 = vmatmul.mubr.f32.gmra.mrb[12].mxu1 %v1026_v3  ;;  %1620 = vmatprep.mubr.f32.mxu0 %v1031_v9  ;;  %v3897_v3 = vpack.c.bf16 %v1465_v54, %v1461_v53  ;;  %v1483_v53 = vld [vmem:[%s5006_s9 + $0x708] sm:$0xff] }
 0x174   : > { %2134 = vmatprep.mubr.f32.mxu1 %v1031_v9  ;;  %3760 = vmatpush1.bf16.msra.mxu0 %v3759_v15  ;;  %v5536_v9 = vld [vmem:[%s4990_s1 + $0x140] sm:$0xff]  ;;  %v5541_v15 = vld [vmem:[%s4990_s1 + $0x168] sm:$0xff]  ;;  %v1487_v54 = vld [vmem:[%s5006_s9 + $0x728] sm:$0xff] }
 0x175   : > { %3888 = vmatpush1.bf16.msra.mxu1 %v3887_v16  ;;  %3762 = vmatprep.subr.bf16.mxu0 %v3761_v17  ;;  %v3771_v16 = vpack.c.bf16 %v1462_v63, %v1458_v62  ;;  %v3899_v17 = vpack.c.bf16 %v1464_v5, %v1460_v0  ;;  %v1047_v35 = vmul.f32 %v5320_v26, %v5541_v15  ;;  %v1489_v62 = vld [vmem:[%s5006_s9 + $0x738] sm:$0xff]  ;;  %v5577_v63 = vld [vmem:[%s4990_s1 + $0x1a8] sm:$0xff] }
 0x176   : > { %1621 = vmatmul.mubr.f32.gmra.mrb[14].mxu0 %v1030_v23  ;;  %3890 = vmatprep.subr.bf16.mxu1 %v3889_v28  ;;  %v1042_v28 = vmul.f32 %v5358_v12, %v5536_v9  ;;  %v1482_v5 = vld [vmem:[%s5006_s9 + $0x700] sm:$0xff] }
 0x177   : > { %2135 = vmatmul.mubr.f32.gmra.mrb[14].mxu1 %v1030_v23  ;;  %1626 = vmatprep.mubr.f32.mxu0 %v1035_v32  ;;  %v1468_v23 = vld [vmem:[%s5006_s9 + $0x690] sm:$0xff] }
 0x178   : > { %2140 = vmatprep.mubr.f32.mxu1 %v1035_v32  ;;  %3764 = vmatpush1.bf16.msra.mxu0 %v3763_v37  ;;  %v1479_v32 = vld [vmem:[%s5006_s9 + $0x6e8] sm:$0xff]  ;;  %v1477_v37 = vld [vmem:[%s5006_s9 + $0x6d8] sm:$0xff]  ;;  %v3903_v44 = vpack.c.bf16 %v1472_v30, %v1468_v23  ;;  %v3911_v30 = vpack.c.bf16 %v1488_v13, %v1484_v7 }
 0x179   : > { %3892 = vmatpush1.bf16.msra.mxu1 %v3891_v39  ;;  %3766 = vmatprep.subr.bf16.mxu0 %v3765_v40  ;;  %v1481_v39 = vld [vmem:[%s5006_s9 + $0x6f8] sm:$0xff]  ;;  %v5559_v40 = vld [vmem:[%s4990_s1 + $0x188] sm:$0xff]  ;;  %v3777_v45 = vpack.c.bf16 %v1479_v32, %v1475_v31  ;;  %v1511_v7 = vld [vmem:[%s5006_s9 + $0x7e8] sm:$0xff] }
 0x17a   : > { %1627 = vmatmul.mubr.f32.gmra.mrb[16].mxu0 %v1034_v46  ;;  %3894 = vmatprep.subr.bf16.mxu1 %v3893_v47  ;;  %v1478_v47 = vld [vmem:[%s5006_s9 + $0x6e0] sm:$0xff]  ;;  %v3905_v50 = vpack.c.bf16 %v1481_v39, %v1477_v37  ;;  %v1497_v23 = vld [vmem:[%s5006_s9 + $0x778] sm:$0xff]  ;;  %v1492_v37 = vld [vmem:[%s5006_s9 + $0x750] sm:$0xff]  ;;  %v1054_v39 = vmul.f32 %v5358_v12, %v5590_v20 }
 0x17b   : > { %2141 = vmatmul.mubr.f32.gmra.mrb[16].mxu1 %v1034_v46  ;;  %1632 = vmatprep.mubr.f32.mxu0 %v1039_v24  ;;  %v1474_v46 = vld [vmem:[%s5006_s9 + $0x6c0] sm:$0xff]  ;;  %v1509_v13 = vld [vmem:[%s5006_s9 + $0x7d8] sm:$0xff] }
 0x17c   : > { %2146 = vmatprep.mubr.f32.mxu1 %v1039_v24  ;;  %3768 = vmatpush1.bf16.msra.mxu0 %v3767_v57  ;;  %v1480_v24 = vld [vmem:[%s5006_s9 + $0x6f0] sm:$0xff]  ;;  %v1051_v57 = vmul.f32 %v5320_v26, %v5559_v40  ;;  %v3779_v0 = vpack.c.bf16 %v1478_v47, %v1474_v46  ;;  %v1490_v32 = vld [vmem:[%s5006_s9 + $0x740] sm:$0xff]  ;;  %v1503_v46 = vld [vmem:[%s5006_s9 + $0x7a8] sm:$0xff] }
 0x17d   : > { %3896 = vmatpush1.bf16.msra.mxu1 %v3895_v59  ;;  %3770 = vmatprep.subr.bf16.mxu0 %v3769_v60  ;;  %v5572_v59 = vld [vmem:[%s4990_s1 + $0x180] sm:$0xff] }
 0x17e   : > { %1633 = vmatmul.mubr.f32.gmra.mrb[18].mxu0 %v1038_v2  ;;  %3898 = vmatprep.subr.bf16.mxu1 %v3897_v3  ;;  %v1485_v60 = vld [vmem:[%s5006_s9 + $0x718] sm:$0xff]  ;;  %v3781_v3 = vpack.c.bf16 %v1487_v54, %v1483_v53 }
 0x17f   : > { %2147 = vmatmul.mubr.f32.gmra.mrb[18].mxu1 %v1038_v2  ;;  %1638 = vmatprep.mubr.f32.mxu0 %v1043_v8  ;;  %v3907_v2 = vpack.c.bf16 %v1480_v24, %v1476_v48  ;;  %v3909_v11 = vpack.c.bf16 %v1489_v62, %v1485_v60  ;;  %v5608_v48 = vld [vmem:[%s4990_s1 + $0x1c0] sm:$0xff]  ;;  %v5613_v24 = vld [vmem:[%s4990_s1 + $0x1e8] sm:$0xff] }
 0x180   : > { %2152 = vmatprep.mubr.f32.mxu1 %v1043_v8  ;;  %3772 = vmatpush1.bf16.msra.mxu0 %v3771_v16  ;;  %v1050_v8 = vmul.f32 %v5358_v12, %v5572_v59  ;;  %v1491_v16 = vld [vmem:[%s5006_s9 + $0x748] sm:$0xff]  ;;  %v1498_v60 = vld [vmem:[%s5006_s9 + $0x780] sm:$0xff] }
 0x181   : > { %3900 = vmatpush1.bf16.msra.mxu1 %v3899_v17  ;;  %3774 = vmatprep.subr.bf16.mxu0 %v3773_v19  ;;  %v1495_v17 = vld [vmem:[%s5006_s9 + $0x768] sm:$0xff]  ;;  %v1055_v19 = vmul.f32 %v5320_v26, %v5577_v63  ;;  %v1502_v62 = vld [vmem:[%s5006_s9 + $0x7a0] sm:$0xff] }
 0x182   : > { %1639 = vmatmul.mubr.f32.gmra.mrb[20].mxu0 %v1042_v28  ;;  %3902 = vmatprep.subr.bf16.mxu1 %v3901_v29  ;;  %v3783_v29 = vpack.c.bf16 %v1486_v6, %v1482_v5  ;;  %v3785_v31 = vpack.c.bf16 %v1495_v17, %v1491_v16  ;;  %v1504_v5 = vld [vmem:[%s5006_s9 + $0x7b0] sm:$0xff]  ;;  %v1507_v6 = vld [vmem:[%s5006_s9 + $0x7c8] sm:$0xff]  ;;  %v1513_v16 = vld [vmem:[%s5006_s9 + $0x7f8] sm:$0xff] }
 0x183   : > { %2153 = vmatmul.mubr.f32.gmra.mrb[20].mxu1 %v1042_v28  ;;  %1644 = vmatprep.mubr.f32.mxu0 %v1047_v35  ;;  %v5595_v28 = vld [vmem:[%s4990_s1 + $0x1c8] sm:$0xff] }
 0x184   : > { %2158 = vmatprep.mubr.f32.mxu1 %v1047_v35  ;;  %3776 = vmatpush1.bf16.msra.mxu0 %v3775_v43  ;;  %v1494_v35 = vld [vmem:[%s5006_s9 + $0x760] sm:$0xff]  ;;  %v3913_v43 = vpack.c.bf16 %v1497_v23, %v1493_v22  ;;  %v1059_v47 = vmul.f32 %v5320_v26, %v5595_v28  ;;  %v3793_v23 = vpack.c.bf16 %v1511_v7, %v1507_v6 }
 0x185   : > { %3904 = vmatpush1.bf16.msra.mxu1 %v3903_v44  ;;  %3778 = vmatprep.subr.bf16.mxu0 %v3777_v45  ;;  %v1496_v44 = vld [vmem:[%s5006_s9 + $0x770] sm:$0xff]  ;;  %v1499_v45 = vld [vmem:[%s5006_s9 + $0x788] sm:$0xff]  ;;  %v3787_v53 = vpack.c.bf16 %v1494_v35, %v1490_v32  ;;  %v5631_v17 = vld [vmem:[%s4990_s1 + $0x208] sm:$0xff]  ;;  %v3921_v32 = vpack.c.bf16 %v1513_v16, %v1509_v13 }
 0x186   : > { %1645 = vmatmul.mubr.f32.gmra.mrb[22].mxu0 %v1046_v49  ;;  %3906 = vmatprep.subr.bf16.mxu1 %v3905_v50  ;;  %v1505_v50 = vld [vmem:[%s5006_s9 + $0x7b8] sm:$0xff]  ;;  %v3915_v54 = vpack.c.bf16 %v1496_v44, %v1492_v37  ;;  %v1508_v35 = vld [vmem:[%s5006_s9 + $0x7d0] sm:$0xff]  ;;  %v5645_v44 = vld [vmem:[%s4990_s1 + $0x228] sm:$0xff] }
 0x187   : > { %2159 = vmatmul.mubr.f32.gmra.mrb[22].mxu1 %v1046_v49  ;;  %1650 = vmatprep.mubr.f32.mxu0 %v1051_v57  ;;  %v1501_v49 = vld [vmem:[%s5006_s9 + $0x798] sm:$0xff]  ;;  %v1512_v37 = vld [vmem:[%s5006_s9 + $0x7f0] sm:$0xff]  ;;  %v5685_v13 = vld [vmem:[%s4990_s1 + $0x2a8] sm:$0xff] }
 0x188   : > { %2164 = vmatprep.mubr.f32.mxu1 %v1051_v57  ;;  %3780 = vmatpush1.bf16.msra.mxu0 %v3779_v0  ;;  %v3789_v57 = vpack.c.bf16 %v1503_v46, %v1499_v45  ;;  %v1500_v0 = vld [vmem:[%s5006_s9 + $0x790] sm:$0xff]  ;;  %v3923_v46 = vpack.c.bf16 %v1512_v37, %v1508_v35 }
 0x189   : > { %3908 = vmatpush1.bf16.msra.mxu1 %v3907_v2  ;;  %3782 = vmatprep.subr.bf16.mxu0 %v3781_v3  ;;  %v1058_v2 = vmul.f32 %v5358_v12, %v5608_v48  ;;  %v3917_v3 = vpack.c.bf16 %v1505_v50, %v1501_v49  ;;  %v3919_v22 = vpack.c.bf16 %v1504_v5, %v1500_v0  ;;  %v5652_v50 = vld [vmem:[%s4990_s1 + $0x220] sm:$0xff]  ;;  %v5675_v5 = vld [vmem:[%s4990_s1 + $0x288] sm:$0xff] }
 0x18a   : > { %1651 = vmatmul.mubr.f32.gmra.mrb[24].mxu0 %v1050_v8  ;;  %3910 = vmatprep.subr.bf16.mxu1 %v3909_v11  ;;  %v5626_v11 = vld [vmem:[%s4990_s1 + $0x1e0] sm:$0xff]  ;;  %v1071_v49 = vmul.f32 %v5320_v26, %v5645_v44  ;;  %v1083_v7 = vmul.f32 %v5320_v26, %v5675_v5 }
 0x18b   : > { %2165 = vmatmul.mubr.f32.gmra.mrb[24].mxu1 %v1050_v8  ;;  %1656 = vmatprep.mubr.f32.mxu0 %v1055_v19  ;;  %v1063_v8 = vmul.f32 %v5320_v26, %v5613_v24 }
 0x18c   : > { %2170 = vmatprep.mubr.f32.mxu1 %v1055_v19  ;;  %3784 = vmatpush1.bf16.msra.mxu0 %v3783_v29  ;;  %v3791_v19 = vpack.c.bf16 %v1502_v62, %v1498_v60  ;;  %v1506_v29 = vld [vmem:[%s5006_s9 + $0x7c0] sm:$0xff]  ;;  %v5662_v60 = vld [vmem:[%s4990_s1 + $0x240] sm:$0xff] }
 0x18d   : > { %3912 = vmatpush1.bf16.msra.mxu1 %v3911_v30  ;;  %3786 = vmatprep.subr.bf16.mxu0 %v3785_v31  ;;  %v1510_v30 = vld [vmem:[%s5006_s9 + $0x7e0] sm:$0xff]  ;;  %v1062_v31 = vmul.f32 %v5358_v12, %v5626_v11  ;;  %v1074_v0 = vmul.f32 %v5358_v12, %v5662_v60 }
 0x18e   : > { %1657 = vmatmul.mubr.f32.gmra.mrb[26].mxu0 %v1054_v39  ;;  %3914 = vmatprep.subr.bf16.mxu1 %v3913_v43  ;;  %v5642_v43 = vld [vmem:[%s4990_s1 + $0x200] sm:$0xff]  ;;  %v3795_v45 = vpack.c.bf16 %v1510_v30, %v1506_v29  ;;  %v5665_v62 = vld [vmem:[%s4990_s1 + $0x268] sm:$0xff] }
 0x18f   : > { %2171 = vmatmul.mubr.f32.gmra.mrb[26].mxu1 %v1054_v39  ;;  %1662 = vmatprep.mubr.f32.mxu0 %v1059_v47  ;;  %v1067_v39 = vmul.f32 %v5320_v26, %v5631_v17 }
 0x190   : > { %2176 = vmatprep.mubr.f32.mxu1 %v1059_v47  ;;  %3788 = vmatpush1.bf16.msra.mxu0 %v3787_v53  ;;  %v1066_v47 = vmul.f32 %v5358_v12, %v5642_v43  ;;  %v5655_v53 = vld [vmem:[%s4990_s1 + $0x248] sm:$0xff] }
 0x191   : > { %3916 = vmatpush1.bf16.msra.mxu1 %v3915_v54  ;;  %3790 = vmatprep.subr.bf16.mxu0 %v3789_v57  ;;  %v1070_v54 = vmul.f32 %v5358_v12, %v5652_v50  ;;  %v1075_v57 = vmul.f32 %v5320_v26, %v5655_v53 }
 0x192   : > { %1663 = vmatmul.mubr.f32.gmra.mrb[28].mxu0 %v1058_v2  ;;  %3918 = vmatprep.subr.bf16.mxu1 %v3917_v3  ;;  %v5672_v3 = vld [vmem:[%s4990_s1 + $0x260] sm:$0xff] }
 0x193   : > { %2177 = vmatmul.mubr.f32.gmra.mrb[28].mxu1 %v1058_v2  ;;  %1668 = vmatprep.mubr.f32.mxu0 %v1063_v8  ;;  %v1079_v2 = vmul.f32 %v5320_v26, %v5665_v62  ;;  %v1078_v6 = vmul.f32 %v5358_v12, %v5672_v3 }
 0x194   : > { %2182 = vmatprep.mubr.f32.mxu1 %v1063_v8  ;;  %3792 = vmatpush1.bf16.msra.mxu0 %v3791_v19  ;;  %v5682_v8 = vld [vmem:[%s4990_s1 + $0x280] sm:$0xff]  ;;  %v1087_v19 = vmul.f32 %v5320_v26, %v5685_v13 }
 0x195   : > { %3920 = vmatpush1.bf16.msra.mxu1 %v3919_v22  ;;  %3794 = vmatprep.subr.bf16.mxu0 %v3793_v23  ;;  %v1082_v16 = vmul.f32 %v5358_v12, %v5682_v8  ;;  %v5692_v22 = vld [vmem:[%s4990_s1 + $0x2a0] sm:$0xff]  ;;  %v5695_v23 = vld [vmem:[%s4990_s1 + $0x2c8] sm:$0xff] }
 0x196   : > { %1669 = vmatmul.mubr.f32.gmra.mrb[30].mxu0 %v1062_v31  ;;  %3922 = vmatprep.subr.bf16.mxu1 %v3921_v32  ;;  %v1086_v29 = vmul.f32 %v5358_v12, %v5692_v22  ;;  %v1091_v30 = vmul.f32 %v5320_v26, %v5695_v23  ;;  %v5705_v32 = vld [vmem:[%s4990_s1 + $0x2e8] sm:$0xff] }
 0x197   : > { %2183 = vmatmul.mubr.f32.gmra.mrb[30].mxu1 %v1062_v31  ;;  %1674 = vmatprep.mubr.f32.mxu0 %v1067_v39  ;;  %v5702_v31 = vld [vmem:[%s4990_s1 + $0x2c0] sm:$0xff]  ;;  %v1095_v37 = vmul.f32 %v5320_v26, %v5705_v32 }
 0x198   : > { %2188 = vmatprep.mubr.f32.mxu1 %v1067_v39  ;;  %3796 = vmatpush1.bf16.msra.mxu0 %v3795_v45  ;;  %v1090_v35 = vmul.f32 %v5358_v12, %v5702_v31  ;;  %v5712_v39 = vld [vmem:[%s4990_s1 + $0x2e0] sm:$0xff]  ;;  %v5715_v45 = vld [vmem:[%s4990_s1 + $0x308] sm:$0xff] }
 0x199   : > { %3924 = vmatpush1.bf16.msra.mxu1 %v3923_v46  ;;  %v1094_v46 = vmul.f32 %v5358_v12, %v5712_v39 }
 0x19a   : > { %1675 = vmatmul.mubr.f32.gmra.mrb[32].mxu0 %v1066_v47 }
 0x19b   : > { %2189 = vmatmul.mubr.f32.gmra.mrb[32].mxu1 %v1066_v47  ;;  %1680 = vmatprep.mubr.f32.mxu0 %v1071_v49  ;;  %v1099_v47 = vmul.f32 %v5320_v26, %v5715_v45 }
 0x19c   : > { %2194 = vmatprep.mubr.f32.mxu1 %v1071_v49  ;;  %v5722_v49 = vld [vmem:[%s4990_s1 + $0x300] sm:$0xff] }
 0x19e   : > { %1681 = vmatmul.mubr.f32.gmra.mrb[34].mxu0 %v1070_v54 }
 0x19f   : > { %2195 = vmatmul.mubr.f32.gmra.mrb[34].mxu1 %v1070_v54  ;;  %1686 = vmatprep.mubr.f32.mxu0 %v1075_v57  ;;  %v5725_v54 = vld [vmem:[%s4990_s1 + $0x328] sm:$0xff] }
 0x1a0   : > { %2200 = vmatprep.mubr.f32.mxu1 %v1075_v57  ;;  %v1098_v57 = vmul.f32 %v5358_v12, %v5722_v49 }
 0x1a2   : > { %1687 = vmatmul.mubr.f32.gmra.mrb[36].mxu0 %v1074_v0 }
 0x1a3   : > { %2201 = vmatmul.mubr.f32.gmra.mrb[36].mxu1 %v1074_v0  ;;  %1692 = vmatprep.mubr.f32.mxu0 %v1079_v2  ;;  %v1103_v0 = vmul.f32 %v5320_v26, %v5725_v54 }
 0x1a4   : > { %2206 = vmatprep.mubr.f32.mxu1 %v1079_v2  ;;  %v5732_v2 = vld [vmem:[%s4990_s1 + $0x320] sm:$0xff] }
 0x1a6   : > { %1693 = vmatmul.mubr.f32.gmra.mrb[38].mxu0 %v1078_v6 }
 0x1a7   : > { %2207 = vmatmul.mubr.f32.gmra.mrb[38].mxu1 %v1078_v6  ;;  %1698 = vmatprep.mubr.f32.mxu0 %v1083_v7  ;;  %v5735_v6 = vld [vmem:[%s4990_s1 + $0x348] sm:$0xff] }
 0x1a8   : > { %2212 = vmatprep.mubr.f32.mxu1 %v1083_v7  ;;  %v1102_v7 = vmul.f32 %v5358_v12, %v5732_v2 }
 0x1aa   : > { %1699 = vmatmul.mubr.f32.gmra.mrb[40].mxu0 %v1082_v16 }
 0x1ab   : > { %2213 = vmatmul.mubr.f32.gmra.mrb[40].mxu1 %v1082_v16  ;;  %1704 = vmatprep.mubr.f32.mxu0 %v1087_v19  ;;  %v1107_v16 = vmul.f32 %v5320_v26, %v5735_v6 }
 0x1ac   : > { %2218 = vmatprep.mubr.f32.mxu1 %v1087_v19  ;;  %v5742_v19 = vld [vmem:[%s4990_s1 + $0x340] sm:$0xff] }
 0x1ad   : > { %6888 = vst [vmem:[#allocation37_spill] sm:$0xff] %v5742_v19 }
 0x1ae   : > { %1705 = vmatmul.mubr.f32.gmra.mrb[42].mxu0 %v1086_v29 }
 0x1af   : > { %2219 = vmatmul.mubr.f32.gmra.mrb[42].mxu1 %v1086_v29  ;;  %1710 = vmatprep.mubr.f32.mxu0 %v1091_v30  ;;  %v5745_v29 = vld [vmem:[%s4990_s1 + $0x368] sm:$0xff] }
 0x1b0   : > { %2224 = vmatprep.mubr.f32.mxu1 %v1091_v30  ;;  %6889 = vst [vmem:[#allocation38_spill] sm:$0xff] %v5745_v29  ;;  %v1106_v30 = vmul.f32 %v5358_v12, %v5742_v19 }
 0x1b2   : > { %1711 = vmatmul.mubr.f32.gmra.mrb[44].mxu0 %v1090_v35 }
 0x1b3   : > { %2225 = vmatmul.mubr.f32.gmra.mrb[44].mxu1 %v1090_v35  ;;  %1716 = vmatprep.mubr.f32.mxu0 %v1095_v37  ;;  %v1111_v35 = vmul.f32 %v5320_v26, %v5745_v29  ;;  %v4238_v29 = vld [vmem:[%s4990_s1 + $0x8] sm:$0xff] }
 0x1b4   : > { %2230 = vmatprep.mubr.f32.mxu1 %v1095_v37  ;;  %v5752_v37 = vld [vmem:[%s4990_s1 + $0x360] sm:$0xff]  ;;  %v5770_v19 = vmul.f32 %v4238_v29, %v4238_v29  ;;  %v5791_v29 = vmul.f32 %v5410_v1, %v5410_v1  ;;  %v5810_v1 = vmul.f32 %v5446_v38, %v5446_v38  ;;  %v5828_v38 = vmul.f32 %v5482_v10, %v5482_v10 }
 0x1b5   : > { %6890 = vst [vmem:[#allocation39_spill] sm:$0xff] %v5752_v37  ;;  %v5849_v10 = vmul.f32 %v5518_v51, %v5518_v51  ;;  %v5868_v51 = vmul.f32 %v5554_v36, %v5554_v36 }
 0x1b6   : > { %1717 = vmatmul.mubr.f32.gmra.mrb[46].mxu0 %v1094_v46 }
 0x1b7   : > { %2231 = vmatmul.mubr.f32.gmra.mrb[46].mxu1 %v1094_v46  ;;  %1722 = vmatprep.mubr.f32.mxu0 %v1099_v47  ;;  %v5755_v46 = vld [vmem:[%s4990_s1 + $0x388] sm:$0xff] }
 0x1b8   : > { %2236 = vmatprep.mubr.f32.mxu1 %v1099_v47  ;;  %6891 = vst [vmem:[#allocation40_spill] sm:$0xff] %v5755_v46  ;;  %v1110_v47 = vmul.f32 %v5358_v12, %v5752_v37  ;;  %v5775_v37 = vld [vmem:[%s4990_s1 + $0x3a0] sm:$0xff] }
 0x1b9   : > { %6894 = vst [vmem:[#allocation43_spill] sm:$0xff] %v5775_v37 }
 0x1ba   : > { %1723 = vmatmul.mubr.f32.gmra.mrb[48].mxu0 %v1098_v57 }
 0x1bb   : > { %2237 = vmatmul.mubr.f32.gmra.mrb[48].mxu1 %v1098_v57  ;;  %1728 = vmatprep.mubr.f32.mxu0 %v1103_v0  ;;  %v1115_v57 = vmul.f32 %v5320_v26, %v5755_v46  ;;  %v5779_v46 = vmul.f32 %v5368_v25, %v5368_v25  ;;  %v5798_v25 = vmul.f32 %v5415_v4, %v5415_v4 }
 0x1bc   : > { %2242 = vmatprep.mubr.f32.mxu1 %v1103_v0  ;;  %v5762_v0 = vld [vmem:[%s4990_s1 + $0x380] sm:$0xff]  ;;  %v5818_v4 = vmul.f32 %v5464_v55, %v5464_v55 }
 0x1bd   : > { %6892 = vst [vmem:[#allocation41_spill] sm:$0xff] %v5762_v0 }
 0x1be   : > { %1729 = vmatmul.mubr.f32.gmra.mrb[50].mxu0 %v1102_v7 }
 0x1bf   : > { %2243 = vmatmul.mubr.f32.gmra.mrb[50].mxu1 %v1102_v7  ;;  %1734 = vmatprep.mubr.f32.mxu0 %v1107_v16  ;;  %v5765_v7 = vld [vmem:[%s4990_s1 + $0x3a8] sm:$0xff] }
 0x1c0   : > { %2248 = vmatprep.mubr.f32.mxu1 %v1107_v16  ;;  %6893 = vst [vmem:[#allocation42_spill] sm:$0xff] %v5765_v7  ;;  %v1114_v16 = vmul.f32 %v5358_v12, %v5762_v0  ;;  %v5787_v0 = vmul.f32 %v5398_v52, %v5398_v52  ;;  %v5806_v52 = vmul.f32 %v5433_v21, %v5433_v21 }
 0x1c1   : > { %v1118_v21 = vmul.f32 %v5358_v12, %v5775_v37  ;;  %v5845_v37 = vmul.f32 %v5505_v61, %v5505_v61  ;;  %v5864_v61 = vmul.f32 %v5541_v15, %v5541_v15  ;;  %v5884_v15 = vmul.f32 %v5590_v20, %v5590_v20 }
 0x1c2   : > { %1735 = vmatmul.mubr.f32.gmra.mrb[52].mxu0 %v1106_v30  ;;  %v5903_v20 = vmul.f32 %v5613_v24, %v5613_v24  ;;  %v5920_v24 = vmul.f32 %v5645_v44, %v5645_v44  ;;  %v5940_v44 = vmul.f32 %v5672_v3, %v5672_v3 }
 0x1c3   : > { %2249 = vmatmul.mubr.f32.gmra.mrb[52].mxu1 %v1106_v30  ;;  %1740 = vmatprep.mubr.f32.mxu0 %v1111_v35  ;;  %v1119_v30 = vmul.f32 %v5320_v26, %v5765_v7  ;;  %v5837_v7 = vld [vmem:[%s4990_s1 + $0x3c0] sm:$0xff] }
 0x1c4   : > { %2254 = vmatprep.mubr.f32.mxu1 %v1111_v35  ;;  %v5783_v35 = vmul.f32 %v5375_v33, %v5375_v33  ;;  %v5802_v33 = vmul.f32 %v5428_v18, %v5428_v18  ;;  %v5822_v18 = vmul.f32 %v5469_v58, %v5469_v58  ;;  %6896 = vst [vmem:[#allocation45_spill] sm:$0xff] %v5837_v7 }
 0x1c5   : > { %v5841_v58 = vmul.f32 %v5500_v34, %v5500_v34  ;;  %v5860_v34 = vmul.f32 %v5536_v9, %v5536_v9  ;;  %v5880_v9 = vmul.f32 %v5577_v63, %v5577_v63  ;;  %v1122_v36 = vmul.f32 %v5358_v12, %v5837_v7 }
 0x1c6   : > { %1741 = vmatmul.mubr.f32.gmra.mrb[54].mxu0 %v1110_v47  ;;  %v5907_v7 = vmul.f32 %v5626_v11, %v5626_v11  ;;  %v5924_v11 = vmul.f32 %v5652_v50, %v5652_v50  ;;  %v5944_v50 = vmul.f32 %v5675_v5, %v5675_v5  ;;  %v469_v5 = vld [vmem:[%s4990_s1 + $0x10] sm:$0xff] }
 0x1c7   : > { %2255 = vmatmul.mubr.f32.gmra.mrb[54].mxu1 %v1110_v47  ;;  %1746 = vmatprep.mubr.f32.mxu0 %v1115_v57  ;;  %v5794_v47 = vld [vmem:[%s4990_s1 + $0x3c8] sm:$0xff] }
 0x1c8   : > { %2260 = vmatprep.mubr.f32.mxu1 %v1115_v57  ;;  %6895 = vst [vmem:[#allocation44_spill] sm:$0xff] %v5794_v47  ;;  %v5814_v57 = vmul.f32 %v5451_v41, %v5451_v41  ;;  %v5832_v41 = vmul.f32 %v5487_v14, %v5487_v14  ;;  %v1123_v55 = vmul.f32 %v5320_v26, %v5794_v47  ;;  %v5899_v47 = vld [vmem:[%s4990_s1 + $0x3e0] sm:$0xff]  ;;  %6900 = vst [vmem:[#allocation49_spill] sm:$0xff] %v5944_v50 }
 0x1c9   : > { %v5853_v14 = vmul.f32 %v5523_v56, %v5523_v56  ;;  %v5872_v56 = vmul.f32 %v5559_v40, %v5559_v40  ;;  %v5890_v40 = vmul.f32 %v5595_v28, %v5595_v28  ;;  %6898 = vst [vmem:[#allocation47_spill] sm:$0xff] %v5899_v47  ;;  %v5911_v28 = vmul.f32 %v5631_v17, %v5631_v17 }
 0x1ca   : > { %1747 = vmatmul.mubr.f32.gmra.mrb[56].mxu0 %v1114_v16  ;;  %v5928_v17 = vmul.f32 %v5655_v53, %v5655_v53  ;;  %v1126_v53 = vmul.f32 %v5358_v12, %v5899_v47  ;;  %v5965_v12 = vmul.f32 %v5695_v23, %v5695_v23  ;;  %v5985_v23 = vmul.f32 %v5722_v49, %v5722_v49  ;;  %v478_v47 = vld [vmem:[%s4990_s1 + $0x58] sm:$0xff] }
 0x1cb   : > { %2261 = vmatmul.mubr.f32.gmra.mrb[56].mxu1 %v1114_v16  ;;  %1752 = vmatprep.mubr.f32.mxu0 %v1119_v30  ;;  %v5856_v16 = vld [vmem:[%s4990_s1 + $0x3e8] sm:$0xff]  ;;  %v638_v50 = vmul.f32 %v478_v47, %v478_v47 }
 0x1cc   : > { %2266 = vmatprep.mubr.f32.mxu1 %v1119_v30  ;;  %6897 = vst [vmem:[#allocation46_spill] sm:$0xff] %v5856_v16  ;;  %v5876_v30 = vmul.f32 %v5572_v59, %v5572_v59  ;;  %v5894_v59 = vmul.f32 %v5608_v48, %v5608_v48  ;;  %v1127_v63 = vmul.f32 %v5320_v26, %v5856_v16  ;;  %v470_v26 = vld [vmem:[%s4990_s1 + $0x18] sm:$0xff]  ;;  %6899 = vst [vmem:[#allocation48_spill] sm:$0xff] %v5928_v17 }
 0x1cd   : > { %v5915_v48 = vmul.f32 %v5642_v43, %v5642_v43  ;;  %v5932_v43 = vmul.f32 %v5662_v60, %v5662_v60  ;;  %v5950_v60 = vmul.f32 %v5682_v8, %v5682_v8  ;;  %v1005_v3 = vmul.f32 %v5386_v42, %v470_v26  ;;  %6904 = vst [vmem:[#allocation53_spill] sm:$0xff] %v5965_v12 }
 0x1ce   : > { %1753 = vmatmul.mubr.f32.gmra.mrb[58].mxu0 %v1118_v21  ;;  %v5961_v16 = vmul.f32 %v5692_v22, %v5692_v22  ;;  %v5969_v8 = vmul.f32 %v5702_v31, %v5702_v31  ;;  %v5981_v22 = vmul.f32 %v5715_v45, %v5715_v45  ;;  %6909 = vst [vmem:[#allocation58_spill] sm:$0xff] %v5985_v23 }
 0x1cf   : > { %2267 = vmatmul.mubr.f32.gmra.mrb[58].mxu1 %v1118_v21  ;;  %1758 = vmatprep.mubr.f32.mxu0 %v1123_v55  ;;  %v5936_v21 = vmul.f32 %v5665_v62, %v5665_v62  ;;  %6901 = vst [vmem:[#allocation50_spill] sm:$0xff] %v5950_v60  ;;  %v5954_v62 = vmul.f32 %v5685_v13, %v5685_v13 }
 0x1d0   : > { %2272 = vmatprep.mubr.f32.mxu1 %v1123_v55  ;;  %v474_v55 = vld [vmem:[%s4990_s1 + $0x38] sm:$0xff]  ;;  %6903 = vst [vmem:[#allocation52_spill] sm:$0xff] %v5961_v16  ;;  %6905 = vst [vmem:[#allocation54_spill] sm:$0xff] %v5969_v8  ;;  %v5973_v13 = vmul.f32 %v5705_v32, %v5705_v32  ;;  %v5989_v31 = vmul.f32 %v5725_v54, %v5725_v54  ;;  %v473_v32 = vld [vmem:[%s4990_s1 + $0x30] sm:$0xff]  ;;  %v1004_v45 = vmul.f32 %v5323_v27, %v469_v5 }
 0x1d1   : > { %6902 = vst [vmem:[#allocation51_spill] sm:$0xff] %v5954_v62  ;;  %6908 = vst [vmem:[#allocation57_spill] sm:$0xff] %v5981_v22  ;;  %v1009_v49 = vmul.f32 %v5386_v42, %v474_v55  ;;  %v477_v22 = vld [vmem:[%s4990_s1 + $0x50] sm:$0xff]  ;;  %v4239_v54 = vld [vmem:[%s4990_s1 + $0x40] sm:$0xff]  ;;  %v1008_v12 = vmul.f32 %v5323_v27, %v473_v32  ;;  %v633_v16 = vmul.f32 %v473_v32, %v473_v32 }
 0x1d2   : > { %1759 = vmatmul.mubr.f32.gmra.mrb[60].mxu0 %v1122_v36  ;;  %6906 = vst [vmem:[#allocation55_spill] sm:$0xff] %v5973_v13  ;;  %6910 = vst [vmem:[#allocation59_spill] sm:$0xff] %v5989_v31  ;;  %v635_v23 = vmul.f32 %v4239_v54, %v4239_v54  ;;  %v4240_v31 = vld [vmem:[%s4990_s1 + $0x48] sm:$0xff]  ;;  %v4241_v8 = vld [vmem:[%s4990_s1] sm:$0xff]  ;;  %v770_v54 = vadd.f32 %v5787_v0, %v5791_v29  ;;  %v760_v17 = vadd.f32 %v5779_v46, %v5783_v35 }
 0x1d3   : > { %2273 = vmatmul.mubr.f32.gmra.mrb[60].mxu1 %v1122_v36  ;;  %1764 = vmatprep.mubr.f32.mxu0 %v1127_v63  ;;  %v5977_v36 = vmul.f32 %v5712_v39, %v5712_v39  ;;  %v5999_v39 = vmul.f32 %v5735_v6, %v5735_v6  ;;  %v1013_v6 = vmul.f32 %v5386_v42, %v478_v47  ;;  %v485_v29 = vld [vmem:[%s4990_s1 + $0x90] sm:$0xff]  ;;  %v490_v46 = vld [vmem:[%s4990_s1 + $0xb8] sm:$0xff] }
 0x1d4   : > { %2278 = vmatprep.mubr.f32.mxu1 %v1127_v63  ;;  %v5995_v63 = vmul.f32 %v5732_v2, %v5732_v2  ;;  %v636_v2 = vmul.f32 %v4240_v31, %v4240_v31  ;;  %v627_v13 = vmul.f32 %v4241_v8, %v4241_v8  ;;  %v6013_v31 = vld [vmem:[%s4990_s1 + $0xb0] sm:$0xff]  ;;  %v1012_v47 = vmul.f32 %v5323_v27, %v477_v22 }
 0x1d5   : > { %6907 = vst [vmem:[#allocation56_spill] sm:$0xff] %v5977_v36  ;;  %6912 = vst [vmem:[#allocation61_spill] sm:$0xff] %v5999_v39  ;;  %v481_v39 = vld [vmem:[%s4990_s1 + $0x70] sm:$0xff]  ;;  %v629_v36 = vmul.f32 %v469_v5, %v469_v5  ;;  %v482_v5 = vld [vmem:[%s4990_s1 + $0x78] sm:$0xff]  ;;  %v649_v0 = vmul.f32 %v6013_v31, %v6013_v31  ;;  %v634_v32 = vmul.f32 %v474_v55, %v474_v55 }
 0x1d6   : > { %6911 = vst [vmem:[#allocation60_spill] sm:$0xff] %v5995_v63  ;;  %1765 = vmatmul.mubr.f32.gmra.mrb[62].mxu0 %v1126_v53  ;;  %v637_v63 = vmul.f32 %v477_v22, %v477_v22  ;;  %v765_v60 = vadd.f32 %v636_v2, %v635_v23  ;;  %v755_v62 = vadd.f32 %v5770_v19, %v627_v13  ;;  %v6042_v55 = vld [vmem:[%s4990_s1 + $0xd0] sm:$0xff] }
 0x1d7   : > { %2279 = vmatmul.mubr.f32.gmra.mrb[62].mxu1 %v1126_v53  ;;  %1835 = vmatprep.mubr.f32.mxu0 %v1005_v3  ;;  %v641_v53 = vmul.f32 %v481_v39, %v481_v39  ;;  %v642_v23 = vmul.f32 %v482_v5, %v482_v5  ;;  %v780_v13 = vadd.f32 %v5806_v52, %v5810_v1 }
 0x1d8   : > { %2349 = vmatprep.mubr.f32.mxu1 %v1005_v3  ;;  %v630_v3 = vmul.f32 %v470_v26, %v470_v26  ;;  %v766_v8 = vadd.f32 %v765_v60, %v637_v63  ;;  %v756_v26 = vadd.f32 %v755_v62, %v629_v36  ;;  %v645_v22 = vmul.f32 %v485_v29, %v485_v29  ;;  %v6028_v63 = vld [vmem:[%s4990_s1 + $0xf0] sm:$0xff]  ;;  %v486_v36 = vld [vmem:[%s4990_s1 + $0x98] sm:$0xff] }
 0x1d9   : > { %v771_v19 = vadd.f32 %v770_v54, %v641_v53  ;;  %v1017_v60 = vmul.f32 %v5386_v42, %v482_v5  ;;  %v650_v2 = vmul.f32 %v490_v46, %v490_v46  ;;  %v775_v62 = vadd.f32 %v5798_v25, %v5802_v33 }
 0x1da   : > { %1836 = vmatmul.mubr.f32.vlgmr.msra.gmra.mrb[0].mxu0 %v1004_v45  ;;  %v767_v35 = vadd.f32 %v766_v8, %v638_v50  ;;  %v781_v52 = vadd.f32 %v780_v13, %v649_v0  ;;  %v657_v1 = vmul.f32 %v6028_v63, %v6028_v63  ;;  %v646_v33 = vmul.f32 %v486_v36, %v486_v36  ;;  %v6055_v8 = vld [vmem:[%s4990_s1 + $0xf8] sm:$0xff] }
 0x1db   : > { %2350 = vmatmul.mubr.f32.vlgmr.msra.gmra.mrb[0].mxu1 %v1004_v45  ;;  %1841 = vmatprep.mubr.f32.mxu0 %v1009_v49  ;;  %v761_v45 = vadd.f32 %v760_v17, %v633_v16  ;;  %v790_v16 = vadd.f32 %v5822_v18, %v5828_v38  ;;  %v6913_v17 = vld [vmem:[#allocation37_spill] sm:$0xff]  ;;  %v772_v25 = vadd.f32 %v771_v19, %v642_v23  ;;  %v6914_v38 = vld [vmem:[#allocation38_spill] sm:$0xff] }
 0x1dc   : > { %2355 = vmatprep.mubr.f32.mxu1 %v1009_v49  ;;  %v757_v49 = vadd.f32 %v756_v26, %v630_v3  ;;  %v6039_v50 = vmul.f32 %v6913_v17, %v6913_v17  ;;  %768 = vadd.xlane.f32.xlu1 %v767_v35  ;;  %v776_v53 = vadd.f32 %v775_v62, %v645_v22  ;;  %v494_v26 = vld [vmem:[%s4990_s1 + $0xd8] sm:$0xff]  ;;  %v6061_v23 = vld [vmem:[%s4990_s1 + $0x130] sm:$0xff] }
 0x1dd   : > { %v653_v54 = vmul.f32 %v6042_v55, %v6042_v55  ;;  %v785_v18 = vadd.f32 %v5814_v57, %v5818_v4  ;;  %v1016_v3 = vmul.f32 %v5323_v27, %v481_v39  ;;  %v1021_v5 = vmul.f32 %v5386_v42, %v486_v36  ;;  %v6066_v39 = vld [vmem:[%s4990_s1 + $0x110] sm:$0xff]  ;;  %v6915_v22 = vld [vmem:[#allocation39_spill] sm:$0xff] }
 0x1de   : > { %1842 = vmatmul.mubr.f32.gmra.mrb[2].mxu0 %v1008_v12  ;;  %758 = vadd.xlane.f32.xlu0 %v757_v49  ;;  %v800_v0 = vadd.f32 %v5845_v37, %v5849_v10  ;;  %v782_v57 = vadd.f32 %v781_v52, %v650_v2  ;;  %v658_v4 = vmul.f32 %v6055_v8, %v6055_v8  ;;  %v6091_v36 = vld [vmem:[%s4990_s1 + $0x170] sm:$0xff] }
 0x1df   : > { %2356 = vmatmul.mubr.f32.gmra.mrb[2].mxu1 %v1008_v12  ;;  %1847 = vmatprep.mubr.f32.mxu0 %v1013_v6  ;;  %v762_v12 = vadd.f32 %v761_v45, %v634_v32  ;;  %v791_v19 = vadd.f32 %v790_v16, %v657_v1  ;;  %v654_v13 = vmul.f32 %v494_v26, %v494_v26 }
 0x1e0   : > { %2361 = vmatprep.mubr.f32.mxu1 %v1013_v6  ;;  %v6050_v6 = vmul.f32 %v6914_v38, %v6914_v38  ;;  %773 = vadd.xlane.f32.xlu1 %v772_v25  ;;  %v665_v37 = vmul.f32 %v6061_v23, %v6061_v23  ;;  %v795_v10 = vadd.f32 %v5832_v41, %v5841_v58  ;;  %v6083_v41 = vld [vmem:[%s4990_s1 + $0x118] sm:$0xff]  ;;  %v6123_v38 = vld [vmem:[%s4990_s1 + $0x1b0] sm:$0xff] }
 0x1e1   : > { %v786_v35 = vadd.f32 %v785_v18, %v653_v54  ;;  %v661_v32 = vmul.f32 %v6066_v39, %v6066_v39  ;;  %v810_v45 = vadd.f32 %v5864_v61, %v5868_v51  ;;  %v1020_v49 = vmul.f32 %v5323_v27, %v485_v29  ;;  %v6086_v58 = vld [vmem:[%s4990_s1 + $0x138] sm:$0xff] }
 0x1e2   : > { %1848 = vmatmul.mubr.f32.gmra.mrb[4].mxu0 %v1012_v47  ;;  %763 = vadd.xlane.f32.xlu0 %v762_v12  ;;  %v1025_v2 = vmul.f32 %v5386_v42, %v490_v46  ;;  %v805_v62 = vadd.f32 %v5853_v14, %v5860_v34  ;;  %v792_v61 = vadd.f32 %v791_v19, %v658_v4  ;;  %v6098_v46 = vld [vmem:[%s4990_s1 + $0x150] sm:$0xff]  ;;  %v6120_v18 = vld [vmem:[%s4990_s1 + $0x178] sm:$0xff] }
 0x1e3   : > { %2362 = vmatmul.mubr.f32.gmra.mrb[4].mxu1 %v1012_v47  ;;  %1853 = vmatprep.mubr.f32.mxu0 %v1017_v60  ;;  %v777_v47 = vadd.f32 %v776_v53, %v646_v33  ;;  %v666_v51 = vmul.f32 %v6086_v58, %v6086_v58  ;;  %v662_v29 = vmul.f32 %v6083_v41, %v6083_v41  ;;  %v6916_v33 = vld [vmem:[#allocation40_spill] sm:$0xff]  ;;  %v6917_v53 = vld [vmem:[#allocation41_spill] sm:$0xff] }
 0x1e4   : > { %2367 = vmatprep.mubr.f32.mxu1 %v1017_v60  ;;  %v6078_v60 = vmul.f32 %v6915_v22, %v6915_v22  ;;  %783 = vadd.xlane.f32.xlu1 %v782_v57  ;;  %v801_v52 = vadd.f32 %v800_v0, %v665_v37  ;;  %v673_v14 = vmul.f32 %v6091_v36, %v6091_v36 }
 0x1e5   : > { %v820_v34 = vadd.f32 %v5880_v9, %v5884_v15  ;;  %v787_v1 = vadd.f32 %v786_v35, %v654_v13  ;;  %v796_v16 = vadd.f32 %v795_v10, %v661_v32  ;;  %v669_v17 = vmul.f32 %v6098_v46, %v6098_v46  ;;  %v6918_v13 = vld [vmem:[#allocation42_spill] sm:$0xff]  ;;  %v6157_v35 = vld [vmem:[%s4990_s1 + $0x198] sm:$0xff] }
 0x1e6   : > { %1854 = vmatmul.mubr.f32.gmra.mrb[6].mxu0 %v1016_v3  ;;  %778 = vadd.xlane.f32.xlu0 %v777_v47  ;;  %v815_v25 = vadd.f32 %v5872_v56, %v5876_v30  ;;  %v6110_v12 = vmul.f32 %v6916_v33, %v6916_v33  ;;  %v6114_v54 = vmul.f32 %v6917_v53, %v6917_v53  ;;  %v6160_v32 = vld [vmem:[%s4990_s1 + $0x1f0] sm:$0xff] }
 0x1e7   : > { %2368 = vmatmul.mubr.f32.gmra.mrb[6].mxu1 %v1016_v3  ;;  %1859 = vmatprep.mubr.f32.mxu0 %v1021_v5  ;;  %v1024_v9 = vmul.f32 %v5323_v27, %v6013_v31  ;;  %v1029_v15 = vmul.f32 %v5386_v42, %v494_v26  ;;  %v674_v56 = vmul.f32 %v6120_v18, %v6120_v18  ;;  %v6132_v31 = vld [vmem:[%s4990_s1 + $0x158] sm:$0xff] }
 0x1e8   : > { %2373 = vmatprep.mubr.f32.mxu1 %v1021_v5  ;;  %v681_v30 = vmul.f32 %v6123_v38, %v6123_v38  ;;  %v830_v3 = vadd.f32 %v5903_v20, %v5907_v7  ;;  %v6135_v5 = vld [vmem:[%s4990_s1 + $0x190] sm:$0xff]  ;;  %793 = vadd.xlane.f32.xlu1 %v792_v61  ;;  %v802_v0 = vadd.f32 %v801_v52, %v666_v51  ;;  %v6919_v61 = vld [vmem:[#allocation43_spill] sm:$0xff] }
 0x1e9   : > { %v811_v26 = vadd.f32 %v810_v45, %v673_v14  ;;  %v825_v57 = vadd.f32 %v5890_v40, %v5894_v59  ;;  %v797_v4 = vadd.f32 %v796_v16, %v662_v29  ;;  %v670_v19 = vmul.f32 %v6132_v31, %v6132_v31  ;;  %v6152_v59 = vld [vmem:[%s4990_s1 + $0x1b8] sm:$0xff] }
 0x1ea   : > { %1860 = vmatmul.mubr.f32.gmra.mrb[8].mxu0 %v1020_v49  ;;  %788 = vadd.xlane.f32.xlu0 %v787_v1  ;;  %v806_v7 = vadd.f32 %v805_v62, %v669_v17  ;;  %v677_v20 = vmul.f32 %v6135_v5, %v6135_v5  ;;  %v6145_v37 = vmul.f32 %v6918_v13, %v6918_v13  ;;  %v6186_v14 = vld [vmem:[%s4990_s1 + $0x1f8] sm:$0xff] }
 0x1eb   : > { %2374 = vmatmul.mubr.f32.gmra.mrb[8].mxu1 %v1020_v49  ;;  %1865 = vmatprep.mubr.f32.mxu0 %v1025_v2  ;;  %v1028_v10 = vmul.f32 %v5323_v27, %v6042_v55  ;;  %v1033_v40 = vmul.f32 %v5386_v42, %v6055_v8  ;;  %v840_v47 = vadd.f32 %v5920_v24, %v5924_v11  ;;  %v6167_v8 = vld [vmem:[%s4990_s1 + $0x1d0] sm:$0xff]  ;;  %v6229_v13 = vld [vmem:[%s4990_s1 + $0x238] sm:$0xff] }
 0x1ec   : > { %2379 = vmatprep.mubr.f32.mxu1 %v1025_v2  ;;  %v682_v45 = vmul.f32 %v6152_v59, %v6152_v59  ;;  %v821_v22 = vadd.f32 %v820_v34, %v681_v30  ;;  %v835_v55 = vadd.f32 %v5911_v28, %v5915_v48  ;;  %803 = vadd.xlane.f32.xlu1 %v802_v0  ;;  %v6920_v34 = vld [vmem:[#allocation48_spill] sm:$0xff]  ;;  %v6923_v0 = vld [vmem:[#allocation50_spill] sm:$0xff] }
 0x1ed   : > { %v812_v49 = vadd.f32 %v811_v26, %v674_v56  ;;  %v678_v24 = vmul.f32 %v6157_v35, %v6157_v35  ;;  %v689_v11 = vmul.f32 %v6160_v32, %v6160_v32  ;;  %v807_v2 = vadd.f32 %v806_v7, %v670_v19  ;;  %v6924_v26 = vld [vmem:[#allocation49_spill] sm:$0xff]  ;;  %v6925_v19 = vld [vmem:[#allocation44_spill] sm:$0xff] }
 0x1ee   : > { %1866 = vmatmul.mubr.f32.gmra.mrb[10].mxu0 %v1024_v9  ;;  %798 = vadd.xlane.f32.xlu0 %v797_v4  ;;  %v816_v62 = vadd.f32 %v815_v25, %v677_v20  ;;  %v685_v28 = vmul.f32 %v6167_v8, %v6167_v8  ;;  %v850_v48 = vadd.f32 %v5936_v21, %v5940_v44  ;;  %v6193_v21 = vld [vmem:[%s4990_s1 + $0x1d8] sm:$0xff]  ;;  %v6196_v44 = vld [vmem:[%s4990_s1 + $0x230] sm:$0xff] }
 0x1ef   : > { %2380 = vmatmul.mubr.f32.gmra.mrb[10].mxu1 %v1024_v9  ;;  %1871 = vmatprep.mubr.f32.mxu0 %v1029_v15  ;;  %v6179_v51 = vmul.f32 %v6919_v61, %v6919_v61  ;;  %v1032_v29 = vmul.f32 %v5323_v27, %v6028_v63  ;;  %v1037_v52 = vmul.f32 %v5386_v42, %v6083_v41  ;;  %v6921_v63 = vld [vmem:[#allocation52_spill] sm:$0xff]  ;;  %v6922_v25 = vld [vmem:[#allocation51_spill] sm:$0xff]  ;;  %v6205_v41 = vld [vmem:[%s4990_s1 + $0x210] sm:$0xff] }
 0x1f0   : > { %2385 = vmatprep.mubr.f32.mxu1 %v1029_v15  ;;  %v6190_v1 = vadd.f32 %v6920_v34, %v5932_v43  ;;  %v822_v16 = vadd.f32 %v821_v22, %v682_v45  ;;  %v690_v17 = vmul.f32 %v6186_v14, %v6186_v14  ;;  %v6202_v33 = vadd.f32 %v6922_v25, %v6921_v63  ;;  %v6927_v45 = vld [vmem:[#allocation55_spill] sm:$0xff]  ;;  %v6930_v25 = vld [vmem:[#allocation60_spill] sm:$0xff] }
 0x1f1   : > { %813 = vadd.xlane.f32.xlu1 %v812_v49  ;;  %v831_v43 = vadd.f32 %v830_v3, %v689_v11  ;;  %v686_v53 = vmul.f32 %v6193_v21, %v6193_v21  ;;  %v697_v9 = vmul.f32 %v6196_v44, %v6196_v44  ;;  %v817_v15 = vadd.f32 %v816_v62, %v678_v24  ;;  %v6245_v24 = vld [vmem:[%s4990_s1 + $0x250] sm:$0xff] }
 0x1f2   : > { %1872 = vmatmul.mubr.f32.gmra.mrb[12].mxu0 %v1028_v10  ;;  %808 = vadd.xlane.f32.xlu0 %v807_v2  ;;  %v826_v56 = vadd.f32 %v825_v57, %v685_v28  ;;  %v693_v30 = vmul.f32 %v6205_v41, %v6205_v41  ;;  %v6215_v4 = vadd.f32 %v6924_v26, %v6923_v0  ;;  %v6226_v57 = vld [vmem:[%s4990_s1 + $0x218] sm:$0xff]  ;;  %v6928_v62 = vld [vmem:[#allocation54_spill] sm:$0xff]  ;;  %v6929_v28 = vld [vmem:[#allocation53_spill] sm:$0xff] }
 0x1f3   : > { %2386 = vmatmul.mubr.f32.gmra.mrb[12].mxu1 %v1028_v10  ;;  %1877 = vmatprep.mubr.f32.mxu0 %v1033_v40  ;;  %v6219_v3 = vmul.f32 %v6925_v19, %v6925_v19  ;;  %v1036_v7 = vmul.f32 %v5323_v27, %v6066_v39  ;;  %v1041_v20 = vmul.f32 %v5386_v42, %v6086_v58  ;;  %v6232_v10 = vld [vmem:[%s4990_s1 + $0x270] sm:$0xff]  ;;  %v6931_v0 = vld [vmem:[#allocation59_spill] sm:$0xff]  ;;  %v6932_v26 = vld [vmem:[#allocation45_spill] sm:$0xff] }
 0x1f4   : > { %2391 = vmatprep.mubr.f32.mxu1 %v1033_v40  ;;  %v6926_v40 = vld [vmem:[#allocation56_spill] sm:$0xff]  ;;  %v698_v49 = vmul.f32 %v6229_v13, %v6229_v13  ;;  %v694_v39 = vmul.f32 %v6226_v57, %v6226_v57  ;;  %v705_v58 = vmul.f32 %v6232_v10, %v6232_v10  ;;  %v832_v11 = vadd.f32 %v831_v43, %v690_v17  ;;  %v6264_v43 = vld [vmem:[%s4990_s1 + $0x258] sm:$0xff] }
 0x1f5   : > { %v6236_v22 = vadd.f32 %v6927_v45, %v6926_v40  ;;  %823 = vadd.xlane.f32.xlu1 %v822_v16  ;;  %v841_v2 = vadd.f32 %v840_v47, %v697_v9  ;;  %v6249_v61 = vadd.f32 %v6929_v28, %v6928_v62  ;;  %v836_v34 = vadd.f32 %v835_v55, %v693_v30  ;;  %v6267_v55 = vld [vmem:[%s4990_s1 + $0x278] sm:$0xff]  ;;  %v6934_v9 = vld [vmem:[#allocation57_spill] sm:$0xff] }
 0x1f6   : > { %1878 = vmatmul.mubr.f32.gmra.mrb[14].mxu0 %v1032_v29  ;;  %818 = vadd.xlane.f32.xlu0 %v817_v15  ;;  %v701_v63 = vmul.f32 %v6245_v24, %v6245_v24  ;;  %v747_v16 = vmul.f32 %v6932_v26, %v6932_v26  ;;  %v1040_v47 = vmul.f32 %v5323_v27, %v6061_v23  ;;  %v6937_v28 = vld [vmem:[#allocation47_spill] sm:$0xff] }
 0x1f7   : > { %2392 = vmatmul.mubr.f32.gmra.mrb[14].mxu1 %v1032_v29  ;;  %1883 = vmatprep.mubr.f32.mxu0 %v1037_v52  ;;  %v827_v29 = vadd.f32 %v826_v56, %v686_v53  ;;  %v1045_v17 = vmul.f32 %v5386_v42, %v6132_v31  ;;  %v6933_v53 = vld [vmem:[#allocation58_spill] sm:$0xff]  ;;  %v706_v30 = vmul.f32 %v6267_v55, %v6267_v55 }
 0x1f8   : > { %2397 = vmatprep.mubr.f32.mxu1 %v1037_v52  ;;  %v6255_v52 = vadd.f32 %v6931_v0, %v6930_v25  ;;  %v6271_v15 = vadd.f32 %v6934_v9, %v6933_v53  ;;  %v6274_v56 = vld [vmem:[%s4990_s1 + $0x2b0] sm:$0xff]  ;;  %v851_v19 = vadd.f32 %v850_v48, %v705_v58  ;;  %v702_v23 = vmul.f32 %v6264_v43, %v6264_v43  ;;  %v6935_v58 = vld [vmem:[#allocation61_spill] sm:$0xff]  ;;  %v6337_v53 = vld [vmem:[%s4990_s1 + $0x2f8] sm:$0xff] }
 0x1f9   : > { %v6281_v31 = vld [vmem:[%s4990_s1 + $0x290] sm:$0xff]  ;;  %833 = vadd.xlane.f32.xlu1 %v832_v11  ;;  %v842_v40 = vadd.f32 %v841_v2, %v698_v49  ;;  %v6287_v45 = vadd.f32 %v6050_v6, %v6078_v60  ;;  %v837_v62 = vadd.f32 %v836_v34, %v694_v39  ;;  %v846_v48 = vadd.f32 %v6190_v1, %v701_v63  ;;  %v6305_v39 = vld [vmem:[%s4990_s1 + $0x2b8] sm:$0xff] }
 0x1fa   : > { %1884 = vmatmul.mubr.f32.gmra.mrb[16].mxu0 %v1036_v7  ;;  %828 = vadd.xlane.f32.xlu0 %v827_v29  ;;  %v6294_v49 = vadd.f32 %v6935_v58, %v6039_v50  ;;  %v6936_v11 = vld [vmem:[#allocation46_spill] sm:$0xff]  ;;  %v751_v6 = vmul.f32 %v6937_v28, %v6937_v28  ;;  %v1044_v60 = vmul.f32 %v5323_v27, %v6098_v46  ;;  %v6317_v46 = vld [vmem:[%s4990_s1 + $0x298] sm:$0xff] }
 0x1fb   : > { %2398 = vmatmul.mubr.f32.gmra.mrb[16].mxu1 %v1036_v7  ;;  %1889 = vmatprep.mubr.f32.mxu0 %v1041_v20  ;;  %v713_v7 = vmul.f32 %v6274_v56, %v6274_v56  ;;  %v752_v2 = vmul.f32 %v6936_v11, %v6936_v11  ;;  %v1049_v1 = vmul.f32 %v5386_v42, %v6120_v18  ;;  %v6308_v29 = vld [vmem:[%s4990_s1 + $0x2f0] sm:$0xff]  ;;  %v6378_v11 = vld [vmem:[%s4990_s1 + $0x318] sm:$0xff] }
 0x1fc   : > { %2403 = vmatprep.mubr.f32.mxu1 %v1041_v20  ;;  %v709_v20 = vmul.f32 %v6281_v31, %v6281_v31  ;;  %v852_v50 = vadd.f32 %v851_v19, %v706_v30  ;;  %v714_v34 = vmul.f32 %v6305_v39, %v6305_v39  ;;  %v6314_v63 = vadd.f32 %v6145_v37, %v6179_v51  ;;  %v6320_v25 = vld [vmem:[%s4990_s1 + $0x2d0] sm:$0xff] }
 0x1fd   : > { %843 = vadd.xlane.f32.xlu1 %v842_v40  ;;  %v861_v18 = vadd.f32 %v6202_v33, %v713_v7  ;;  %v721_v0 = vmul.f32 %v6308_v29, %v6308_v29  ;;  %v6327_v26 = vadd.f32 %v6110_v12, %v6114_v54  ;;  %v847_v37 = vadd.f32 %v846_v48, %v702_v23  ;;  %v6344_v9 = vld [vmem:[%s4990_s1 + $0x330] sm:$0xff] }
 0x1fe   : > { %1890 = vmatmul.mubr.f32.gmra.mrb[18].mxu0 %v1040_v47  ;;  %838 = vadd.xlane.f32.xlu0 %v837_v62  ;;  %v710_v51 = vmul.f32 %v6317_v46, %v6317_v46  ;;  %v1048_v33 = vmul.f32 %v5323_v27, %v6091_v36  ;;  %v6339_v12 = vadd.f32 %v752_v2, %v751_v6  ;;  %v6352_v36 = vld [vmem:[%s4990_s1 + $0x2d8] sm:$0xff]  ;;  %v6355_v19 = vld [vmem:[%s4990_s1 + $0x310] sm:$0xff] }
 0x1ff   : > { %2404 = vmatmul.mubr.f32.gmra.mrb[18].mxu1 %v1040_v47  ;;  %1895 = vmatprep.mubr.f32.mxu0 %v1045_v17  ;;  %v856_v47 = vadd.f32 %v6215_v4, %v709_v20  ;;  %v1053_v54 = vmul.f32 %v5386_v42, %v6157_v35  ;;  %v722_v4 = vmul.f32 %v6337_v53, %v6337_v53  ;;  %v6373_v58 = vld [vmem:[%s4990_s1 + $0x370] sm:$0xff] }
 0x200   : > { %2409 = vmatprep.mubr.f32.mxu1 %v1045_v17  ;;  %v717_v17 = vmul.f32 %v6320_v25, %v6320_v25  ;;  %v6349_v30 = vadd.f32 %v6219_v3, %v747_v16  ;;  %v862_v23 = vadd.f32 %v861_v18, %v714_v34  ;;  %v871_v40 = vadd.f32 %v6236_v22, %v721_v0  ;;  %v6368_v22 = vld [vmem:[%s4990_s1 + $0x338] sm:$0xff]  ;;  %v6381_v2 = vld [vmem:[%s4990_s1 + $0x350] sm:$0xff] }
 0x201   : > { %853 = vadd.xlane.f32.xlu1 %v852_v50  ;;  %v729_v35 = vmul.f32 %v6344_v9, %v6344_v9  ;;  %v857_v7 = vadd.f32 %v856_v47, %v710_v51  ;;  %v718_v3 = vmul.f32 %v6352_v36, %v6352_v36  ;;  %v725_v62 = vmul.f32 %v6355_v19, %v6355_v19  ;;  %v6399_v0 = vld [vmem:[%s4990_s1 + $0x3b0] sm:$0xff] }
 0x202   : > { %1896 = vmatmul.mubr.f32.gmra.mrb[20].mxu0 %v1044_v60  ;;  %848 = vadd.xlane.f32.xlu0 %v847_v37  ;;  %v866_v16 = vadd.f32 %v6249_v61, %v717_v17  ;;  %v1052_v48 = vmul.f32 %v5323_v27, %v6135_v5  ;;  %v1057_v20 = vmul.f32 %v5386_v42, %v6152_v59  ;;  %v6404_v37 = vld [vmem:[%s4990_s1 + $0x358] sm:$0xff]  ;;  %v6407_v51 = vld [vmem:[%s4990_s1 + $0x390] sm:$0xff] }
 0x203   : > { %2410 = vmatmul.mubr.f32.gmra.mrb[20].mxu1 %v1044_v60  ;;  %1901 = vmatprep.mubr.f32.mxu0 %v1049_v1  ;;  %v730_v61 = vmul.f32 %v6368_v22, %v6368_v22  ;;  %v872_v5 = vadd.f32 %v871_v40, %v722_v4  ;;  %v881_v28 = vadd.f32 %v6255_v52, %v729_v35  ;;  %v6394_v52 = vld [vmem:[%s4990_s1 + $0x378] sm:$0xff]  ;;  %v6425_v35 = vld [vmem:[%s4990_s1 + $0x3f0] sm:$0xff] }
 0x204   : > { %2415 = vmatprep.mubr.f32.mxu1 %v1049_v1  ;;  %v737_v59 = vmul.f32 %v6373_v58, %v6373_v58  ;;  %v867_v6 = vadd.f32 %v866_v16, %v718_v3  ;;  %v726_v60 = vmul.f32 %v6378_v11, %v6378_v11  ;;  %v876_v1 = vadd.f32 %v6271_v15, %v725_v62  ;;  %v6433_v3 = vld [vmem:[%s4990_s1 + $0x3d0] sm:$0xff] }
 0x205   : > { %863 = vadd.xlane.f32.xlu1 %v862_v23  ;;  %v733_v50 = vmul.f32 %v6381_v2, %v6381_v2  ;;  %v1056_v34 = vmul.f32 %v5323_v27, %v6123_v38  ;;  %v1061_v18 = vmul.f32 %v5386_v42, %v6193_v21  ;;  %v738_v15 = vmul.f32 %v6394_v52, %v6394_v52 }
 0x206   : > { %1902 = vmatmul.mubr.f32.gmra.mrb[22].mxu0 %v1048_v33  ;;  %858 = vadd.xlane.f32.xlu0 %v857_v7  ;;  %v882_v38 = vadd.f32 %v881_v28, %v730_v61  ;;  %v891_v47 = vadd.f32 %v6287_v45, %v737_v59  ;;  %v745_v21 = vmul.f32 %v6399_v0, %v6399_v0  ;;  %v6420_v45 = vld [vmem:[%s4990_s1 + $0x3b8] sm:$0xff] }
 0x207   : > { %2416 = vmatmul.mubr.f32.gmra.mrb[22].mxu1 %v1048_v33  ;;  %1907 = vmatprep.mubr.f32.mxu0 %v1053_v54  ;;  %v877_v17 = vadd.f32 %v876_v1, %v726_v60  ;;  %v734_v33 = vmul.f32 %v6404_v37, %v6404_v37  ;;  %v741_v4 = vmul.f32 %v6407_v51, %v6407_v51  ;;  %v6448_v28 = vld [vmem:[%s4990_s1 + $0x3f8] sm:$0xff] }
 0x208   : > { %2421 = vmatprep.mubr.f32.mxu1 %v1053_v54  ;;  %v886_v54 = vadd.f32 %v6294_v49, %v733_v50  ;;  %v1060_v23 = vmul.f32 %v5323_v27, %v6167_v8  ;;  %v1065_v40 = vmul.f32 %v5386_v42, %v6186_v14  ;;  %v746_v7 = vmul.f32 %v6420_v45, %v6420_v45  ;;  %v6430_v49 = vld [vmem:[%s4990_s1 + $0x398] sm:$0xff] }
 0x209   : > { %873 = vadd.xlane.f32.xlu1 %v872_v5  ;;  %v892_v8 = vadd.f32 %v891_v47, %v738_v15  ;;  %v901_v16 = vadd.f32 %v6314_v63, %v745_v21  ;;  %v753_v62 = vmul.f32 %v6425_v35, %v6425_v35  ;;  %v749_v61 = vmul.f32 %v6433_v3, %v6433_v3  ;;  %v6451_v59 = vld [vmem:[%s4990_s1 + $0x3d8] sm:$0xff]  ;;  %v597_v21 = vld [vmem:[#allocation3 + $0x10] sm:$0xff] }
 0x20a   : > { %1908 = vmatmul.mubr.f32.gmra.mrb[24].mxu0 %v1052_v48  ;;  %868 = vadd.xlane.f32.xlu0 %v867_v6  ;;  %v887_v14 = vadd.f32 %v886_v54, %v734_v33  ;;  %v1064_v5 = vmul.f32 %v5323_v27, %v6160_v32  ;;  %v1069_v63 = vmul.f32 %v5386_v42, %v6226_v57 }
 0x20b   : > { %2422 = vmatmul.mubr.f32.gmra.mrb[24].mxu1 %v1052_v48  ;;  %1913 = vmatprep.mubr.f32.mxu0 %v1057_v20  ;;  %v742_v48 = vmul.f32 %v6430_v49, %v6430_v49  ;;  %v902_v6 = vadd.f32 %v901_v16, %v746_v7  ;;  %v911_v60 = vadd.f32 %v6339_v12, %v753_v62  ;;  %v599_v62 = vld [vmem:[#allocation3 + $0x20] sm:$0xff] }
 0x20c   : > { %2427 = vmatprep.mubr.f32.mxu1 %v1057_v20  ;;  %v896_v20 = vadd.f32 %v6327_v26, %v741_v4  ;;  %v754_v26 = vmul.f32 %v6448_v28, %v6448_v28  ;;  %v750_v32 = vmul.f32 %v6451_v59, %v6451_v59  ;;  %v906_v50 = vadd.f32 %v6349_v30, %v749_v61  ;;  %v595_v4 = vld [vmem:[#allocation3] sm:$0xff] }
 0x20d   : > { %883 = vadd.xlane.f32.xlu1 %v882_v38  ;;  %v1068_v57 = vmul.f32 %v5323_v27, %v6205_v41  ;;  %v1072_v15 = vmul.f32 %v5323_v27, %v6196_v44  ;;  %v1077_v30 = vmul.f32 %v5386_v42, %v6264_v43  ;;  %v1076_v41 = vmul.f32 %v5323_v27, %v6245_v24 }
 0x20e   : > { %1914 = vmatmul.mubr.f32.gmra.mrb[26].mxu0 %v1056_v34  ;;  %878 = vadd.xlane.f32.xlu0 %v877_v17  ;;  %v897_v1 = vadd.f32 %v896_v20, %v742_v48  ;;  %v907_v12 = vadd.f32 %v906_v50, %v750_v32  ;;  %v1080_v44 = vmul.f32 %v5323_v27, %v6232_v10  ;;  %v602_v48 = vld [vmem:[#allocation3 + $0x38] sm:$0xff] }
 0x20f   : > { %2428 = vmatmul.mubr.f32.gmra.mrb[26].mxu1 %v1056_v34  ;;  %1919 = vmatprep.mubr.f32.mxu0 %v1061_v18  ;;  %v1073_v34 = vmul.f32 %v5386_v42, %v6229_v13  ;;  %v1081_v13 = vmul.f32 %v5386_v42, %v6267_v55  ;;  %v1085_v43 = vmul.f32 %v5386_v42, %v6317_v46  ;;  %v606_v50 = vld [vmem:[#allocation3 + $0x58] sm:$0xff] }
 0x210   : > { %2433 = vmatprep.mubr.f32.mxu1 %v1061_v18  ;;  %v912_v18 = vadd.f32 %v911_v60, %v754_v26  ;;  %v1084_v24 = vmul.f32 %v5323_v27, %v6281_v31  ;;  %v1089_v55 = vmul.f32 %v5386_v42, %v6305_v39  ;;  %v1088_v10 = vmul.f32 %v5323_v27, %v6274_v56 }
 0x211   : > { %893 = vadd.xlane.f32.xlu1 %v892_v8  ;;  %v1093_v46 = vmul.f32 %v5386_v42, %v6352_v36  ;;  %v1092_v31 = vmul.f32 %v5323_v27, %v6320_v25  ;;  %v1097_v39 = vmul.f32 %v5386_v42, %v6337_v53  ;;  %v1096_v56 = vmul.f32 %v5323_v27, %v6308_v29 }
 0x212   : > { %1920 = vmatmul.mubr.f32.gmra.mrb[28].mxu0 %v1060_v23  ;;  %888 = vadd.xlane.f32.xlu0 %v887_v14  ;;  %v1101_v36 = vmul.f32 %v5386_v42, %v6378_v11  ;;  %v1100_v25 = vmul.f32 %v5323_v27, %v6355_v19  ;;  %v1105_v53 = vmul.f32 %v5386_v42, %v6368_v22 }
 0x213   : > { %2434 = vmatmul.mubr.f32.gmra.mrb[28].mxu1 %v1060_v23  ;;  %1925 = vmatprep.mubr.f32.mxu0 %v1065_v40  ;;  %v1104_v29 = vmul.f32 %v5323_v27, %v6344_v9  ;;  %v1109_v11 = vmul.f32 %v5386_v42, %v6404_v37  ;;  %v1108_v19 = vmul.f32 %v5323_v27, %v6381_v2 }
 0x214   : > { %2439 = vmatprep.mubr.f32.mxu1 %v1065_v40  ;;  %v1113_v22 = vmul.f32 %v5386_v42, %v6394_v52  ;;  %v1112_v9 = vmul.f32 %v5323_v27, %v6373_v58  ;;  %v1117_v37 = vmul.f32 %v5386_v42, %v6430_v49  ;;  %v1116_v2 = vmul.f32 %v5323_v27, %v6407_v51  ;;  %v600_v49 = vld [vmem:[#allocation3 + $0x28] sm:$0xff] }
 0x215   : > { %903 = vadd.xlane.f32.xlu1 %v902_v6  ;;  %v1121_v52 = vmul.f32 %v5386_v42, %v6420_v45  ;;  %v1120_v58 = vmul.f32 %v5323_v27, %v6399_v0  ;;  %v1125_v38 = vmul.f32 %v5386_v42, %v6451_v59  ;;  %v1124_v51 = vmul.f32 %v5323_v27, %v6433_v3  ;;  %v604_v59 = vld [vmem:[#allocation3 + $0x48] sm:$0xff] }
 0x216   : > { %1926 = vmatmul.mubr.f32.gmra.mrb[30].mxu0 %v1064_v5  ;;  %898 = vadd.xlane.f32.xlu0 %v897_v1  ;;  %v1129_v47 = vmul.f32 %v5386_v42, %v6448_v28  ;;  %v1128_v0 = vmul.f32 %v5323_v27, %v6425_v35  ;;  %v598_v42 = vld [vmem:[#allocation3 + $0x18] sm:$0xff]  ;;  %v596_v35 = vld [vmem:[#allocation3 + $0x8] sm:$0xff]  ;;  %v603_v1 = vld [vmem:[#allocation3 + $0x40] sm:$0xff] }
 0x217   : > { %2440 = vmatmul.mubr.f32.gmra.mrb[30].mxu1 %v1064_v5  ;;  %1931 = vmatprep.mubr.f32.mxu0 %v1069_v63 }
 0x218   : > { %2445 = vmatprep.mubr.f32.mxu1 %v1069_v63  ;;  %v601_v63 = vld [vmem:[#allocation3 + $0x30] sm:$0xff] }
 0x219   : > { %913 = vadd.xlane.f32.xlu1 %v912_v18 }
 0x21a   : > { %1932 = vmatmul.mubr.f32.gmra.mrb[32].mxu0 %v1068_v57  ;;  %908 = vadd.xlane.f32.xlu0 %v907_v12  ;;  %v605_v12 = vld [vmem:[#allocation3 + $0x50] sm:$0xff] }
 0x21b   : > { %2446 = vmatmul.mubr.f32.gmra.mrb[32].mxu1 %v1068_v57  ;;  %1937 = vmatprep.mubr.f32.mxu0 %v1073_v34 }
 0x21c   : > { %2451 = vmatprep.mubr.f32.mxu1 %v1073_v34 }
 0x21e   : > { %1938 = vmatmul.mubr.f32.gmra.mrb[34].mxu0 %v1072_v15 }
 0x21f   : > { %2452 = vmatmul.mubr.f32.gmra.mrb[34].mxu1 %v1072_v15  ;;  %1943 = vmatprep.mubr.f32.mxu0 %v1077_v30 }
 0x220   : > { %2457 = vmatprep.mubr.f32.mxu1 %v1077_v30  ;;  %v608_v30 = vld [vmem:[#allocation3 + $0x68] sm:$0xff] }
 0x222   : > { %1944 = vmatmul.mubr.f32.gmra.mrb[36].mxu0 %v1076_v41 }
 0x223   : > { %2458 = vmatmul.mubr.f32.gmra.mrb[36].mxu1 %v1076_v41  ;;  %1949 = vmatprep.mubr.f32.mxu0 %v1081_v13 }
 0x224   : > { %2463 = vmatprep.mubr.f32.mxu1 %v1081_v13 }
 0x226   : > { %1950 = vmatmul.mubr.f32.gmra.mrb[38].mxu0 %v1080_v44 }
 0x227   : > { %2464 = vmatmul.mubr.f32.gmra.mrb[38].mxu1 %v1080_v44  ;;  %1955 = vmatprep.mubr.f32.mxu0 %v1085_v43 }
 0x228   : > { %2469 = vmatprep.mubr.f32.mxu1 %v1085_v43  ;;  %v607_v43 = vld [vmem:[#allocation3 + $0x60] sm:$0xff] }
 0x22a   : > { %1956 = vmatmul.mubr.f32.gmra.mrb[40].mxu0 %v1084_v24 }
 0x22b   : > { %2470 = vmatmul.mubr.f32.gmra.mrb[40].mxu1 %v1084_v24  ;;  %1961 = vmatprep.mubr.f32.mxu0 %v1089_v55 }
 0x22c   : > { %2475 = vmatprep.mubr.f32.mxu1 %v1089_v55  ;;  %v610_v55 = vld [vmem:[#allocation3 + $0x78] sm:$0xff] }
 0x22e   : > { %1962 = vmatmul.mubr.f32.gmra.mrb[42].mxu0 %v1088_v10 }
 0x22f   : > { %2476 = vmatmul.mubr.f32.gmra.mrb[42].mxu1 %v1088_v10  ;;  %1967 = vmatprep.mubr.f32.mxu0 %v1093_v46 }
 0x230   : > { %2481 = vmatprep.mubr.f32.mxu1 %v1093_v46 }
 0x232   : > { %1968 = vmatmul.mubr.f32.gmra.mrb[44].mxu0 %v1092_v31 }
 0x233   : > { %2482 = vmatmul.mubr.f32.gmra.mrb[44].mxu1 %v1092_v31  ;;  %1973 = vmatprep.mubr.f32.mxu0 %v1097_v39 }
 0x234   : > { %2487 = vmatprep.mubr.f32.mxu1 %v1097_v39  ;;  %v609_v39 = vld [vmem:[#allocation3 + $0x70] sm:$0xff] }
 0x236   : > { %1974 = vmatmul.mubr.f32.gmra.mrb[46].mxu0 %v1096_v56 }
 0x237   : > { %2488 = vmatmul.mubr.f32.gmra.mrb[46].mxu1 %v1096_v56  ;;  %1979 = vmatprep.mubr.f32.mxu0 %v1101_v36 }
 0x238   : > { %2493 = vmatprep.mubr.f32.mxu1 %v1101_v36  ;;  %v612_v36 = vld [vmem:[#allocation3 + $0x88] sm:$0xff] }
 0x23a   : > { %1980 = vmatmul.mubr.f32.gmra.mrb[48].mxu0 %v1100_v25 }
 0x23b   : > { %2494 = vmatmul.mubr.f32.gmra.mrb[48].mxu1 %v1100_v25  ;;  %1985 = vmatprep.mubr.f32.mxu0 %v1105_v53 }
 0x23c   : > { %2499 = vmatprep.mubr.f32.mxu1 %v1105_v53 }
 0x23e   : > { %1986 = vmatmul.mubr.f32.gmra.mrb[50].mxu0 %v1104_v29 }
 0x23f   : > { %2500 = vmatmul.mubr.f32.gmra.mrb[50].mxu1 %v1104_v29  ;;  %1991 = vmatprep.mubr.f32.mxu0 %v1109_v11 }
 0x240   : > { %2505 = vmatprep.mubr.f32.mxu1 %v1109_v11  ;;  %v611_v11 = vld [vmem:[#allocation3 + $0x80] sm:$0xff] }
 0x242   : > { %1992 = vmatmul.mubr.f32.gmra.mrb[52].mxu0 %v1108_v19 }
 0x243   : > { %2506 = vmatmul.mubr.f32.gmra.mrb[52].mxu1 %v1108_v19  ;;  %1997 = vmatprep.mubr.f32.mxu0 %v1113_v22 }
 0x244   : > { %2511 = vmatprep.mubr.f32.mxu1 %v1113_v22  ;;  %v614_v22 = vld [vmem:[#allocation3 + $0x98] sm:$0xff] }
 0x246   : > { %1998 = vmatmul.mubr.f32.gmra.mrb[54].mxu0 %v1112_v9 }
 0x247   : > { %2512 = vmatmul.mubr.f32.gmra.mrb[54].mxu1 %v1112_v9  ;;  %2003 = vmatprep.mubr.f32.mxu0 %v1117_v37 }
 0x248   : > { %2517 = vmatprep.mubr.f32.mxu1 %v1117_v37 }
 0x24a   : > { %2004 = vmatmul.mubr.f32.gmra.mrb[56].mxu0 %v1116_v2 }
 0x24b   : > { %2518 = vmatmul.mubr.f32.gmra.mrb[56].mxu1 %v1116_v2  ;;  %2009 = vmatprep.mubr.f32.mxu0 %v1121_v52 }
 0x24c   : > { %2523 = vmatprep.mubr.f32.mxu1 %v1121_v52  ;;  %v613_v52 = vld [vmem:[#allocation3 + $0x90] sm:$0xff] }
 0x24e   : > { %2010 = vmatmul.mubr.f32.gmra.mrb[58].mxu0 %v1120_v58 }
 0x24f   : > { %2524 = vmatmul.mubr.f32.gmra.mrb[58].mxu1 %v1120_v58  ;;  %2015 = vmatprep.mubr.f32.mxu0 %v1125_v38 }
 0x250   : > { %2529 = vmatprep.mubr.f32.mxu1 %v1125_v38  ;;  %v616_v38 = vld [vmem:[#allocation3 + $0xa8] sm:$0xff] }
 0x252   : > { %2016 = vmatmul.mubr.f32.gmra.mrb[60].mxu0 %v1124_v51 }
 0x253   : > { %2530 = vmatmul.mubr.f32.gmra.mrb[60].mxu1 %v1124_v51  ;;  %2021 = vmatprep.mubr.f32.mxu0 %v1129_v47 }
 0x254   : > { %2535 = vmatprep.mubr.f32.mxu1 %v1129_v47 }
 0x256   : > { %2022 = vmatmul.mubr.f32.gmra.mrb[62].mxu0 %v1128_v0 }
 0x257   : > { %2536 = vmatmul.mubr.f32.gmra.mrb[62].mxu1 %v1128_v0 }
 0x269   : > { %v769_v17 = vpop.xlane.xlu1 %768 }
 0x26a   : > { %v917_v54 = vadd.f32 %v769_v17, %v597_v21  ;;  %v615_v21 = vld [vmem:[#allocation3 + $0xa0] sm:$0xff] }
 0x26b   : > { %v759_v33 = vpop.xlane.xlu0 %758 }
 0x26c   : > { %v915_v23 = vadd.f32 %v759_v33, %v595_v4  ;;  %950 = vst.msk [vmem:[#allocation3 + $0x10] sm:$0xff] %vm947_vm1, %v917_v54  ;;  %v618_v33 = vld [vmem:[#allocation3 + $0xb8] sm:$0xff] }
 0x26d   : > { %v774_v45 = vpop.xlane.xlu1 %773 }
 0x26e   : > { %948 = vst.msk [vmem:[#allocation3] sm:$0xff] %vm947_vm1, %v915_v23  ;;  %v918_v27 = vadd.f32 %v774_v45, %v598_v42  ;;  %v617_v42 = vld [vmem:[#allocation3 + $0xb0] sm:$0xff] }
 0x26f   : > { %v764_v40 = vpop.xlane.xlu0 %763 }
 0x270   : > { %v916_v7 = vadd.f32 %v764_v40, %v596_v35  ;;  %951 = vst.msk [vmem:[#allocation3 + $0x18] sm:$0xff] %vm947_vm1, %v918_v27  ;;  %v620_v40 = vld [vmem:[#allocation3 + $0xc8] sm:$0xff] }
 0x271   : > { %v784_v3 = vpop.xlane.xlu1 %783 }
 0x272   : > { %949 = vst.msk [vmem:[#allocation3 + $0x8] sm:$0xff] %vm947_vm1, %v916_v7  ;;  %v920_v16 = vadd.f32 %v784_v3, %v600_v49  ;;  %v619_v49 = vld [vmem:[#allocation3 + $0xc0] sm:$0xff] }
 0x273   : > { %v779_v8 = vpop.xlane.xlu0 %778 }
 0x274   : > { %v919_v14 = vadd.f32 %v779_v8, %v599_v62  ;;  %953 = vst.msk [vmem:[#allocation3 + $0x28] sm:$0xff] %vm947_vm1, %v920_v16  ;;  %v622_v8 = vld [vmem:[#allocation3 + $0xd8] sm:$0xff] }
 0x275   : > { %v794_v20 = vpop.xlane.xlu1 %793 }
 0x276   : > { %952 = vst.msk [vmem:[#allocation3 + $0x20] sm:$0xff] %vm947_vm1, %v919_v14  ;;  %v922_v5 = vadd.f32 %v794_v20, %v602_v48  ;;  %v621_v48 = vld [vmem:[#allocation3 + $0xd0] sm:$0xff] }
 0x277   : > { %v789_v61 = vpop.xlane.xlu0 %788 }
 0x278   : > { %v921_v28 = vadd.f32 %v789_v61, %v601_v63  ;;  %955 = vst.msk [vmem:[#allocation3 + $0x38] sm:$0xff] %vm947_vm1, %v922_v5  ;;  %v624_v61 = vld [vmem:[#allocation3 + $0xe8] sm:$0xff] }
 0x279   : > { %v804_v6 = vpop.xlane.xlu1 %803 }
 0x27a   : > { %954 = vst.msk [vmem:[#allocation3 + $0x30] sm:$0xff] %vm947_vm1, %v921_v28  ;;  %v924_v60 = vadd.f32 %v804_v6, %v604_v59  ;;  %v623_v59 = vld [vmem:[#allocation3 + $0xe0] sm:$0xff] }
 0x27b   : > { %v799_v26 = vpop.xlane.xlu0 %798 }
 0x27c   : > { %v923_v32 = vadd.f32 %v799_v26, %v603_v1  ;;  %957 = vst.msk [vmem:[#allocation3 + $0x48] sm:$0xff] %vm947_vm1, %v924_v60  ;;  %v1130_v26 = vld [vmem:[#allocation2] sm:$0xff]  ;;  %v626_v60 = vld [vmem:[#allocation3 + $0xf8] sm:$0xff] }
 0x27e   : > { %956 = vst.msk [vmem:[#allocation3 + $0x40] sm:$0xff] %vm947_vm1, %v923_v32  ;;  %v814_v57 = vpop.xlane.xlu1 %813 }
 0x27f   : > { %v809_v34 = vpop.xlane.xlu0 %808  ;;  %v926_v18 = vadd.f32 %v814_v57, %v606_v50  ;;  %v1132_v50 = vld [vmem:[#allocation2 + $0x10] sm:$0xff]  ;;  %v1131_v57 = vld [vmem:[#allocation2 + $0x8] sm:$0xff] }
 0x280   : > { %v925_v15 = vadd.f32 %v809_v34, %v605_v12 }
 0x281   : > { %959 = vst.msk [vmem:[#allocation3 + $0x58] sm:$0xff] %vm947_vm1, %v926_v18  ;;  %v625_v18 = vld [vmem:[#allocation3 + $0xf0] sm:$0xff] }
 0x282   : > { %958 = vst.msk [vmem:[#allocation3 + $0x50] sm:$0xff] %vm947_vm1, %v925_v15  ;;  %v824_v41 = vpop.xlane.xlu1 %823  ;;  %v1133_v15 = vld [vmem:[#allocation2 + $0x18] sm:$0xff] }
 0x283   : > { %v819_v13 = vpop.xlane.xlu0 %818  ;;  %v928_v44 = vadd.f32 %v824_v41, %v608_v30 }
 0x284   : > { %v927_v24 = vadd.f32 %v819_v13, %v607_v43 }
 0x285   : > { %961 = vst.msk [vmem:[#allocation3 + $0x68] sm:$0xff] %vm947_vm1, %v928_v44 }
 0x286   : > { %960 = vst.msk [vmem:[#allocation3 + $0x60] sm:$0xff] %vm947_vm1, %v927_v24  ;;  %v834_v10 = vpop.xlane.xlu1 %833 }
 0x287   : > { %v829_v46 = vpop.xlane.xlu0 %828  ;;  %v930_v31 = vadd.f32 %v834_v10, %v610_v55  ;;  %v1134_v10 = vld [vmem:[#allocation2 + $0x20] sm:$0xff] }
 0x288   : > { %v929_v56 = vadd.f32 %v829_v46, %v609_v39  ;;  %v1135_v39 = vld [vmem:[#allocation2 + $0x28] sm:$0xff] }
 0x289   : > { %963 = vst.msk [vmem:[#allocation3 + $0x78] sm:$0xff] %vm947_vm1, %v930_v31  ;;  %v1136_v31 = vld [vmem:[#allocation2 + $0x30] sm:$0xff] }
 0x28a   : > { %962 = vst.msk [vmem:[#allocation3 + $0x70] sm:$0xff] %vm947_vm1, %v929_v56  ;;  %v844_v25 = vpop.xlane.xlu1 %843 }
 0x28b   : > { %v839_v53 = vpop.xlane.xlu0 %838  ;;  %v932_v29 = vadd.f32 %v844_v25, %v612_v36  ;;  %v1137_v36 = vld [vmem:[#allocation2 + $0x38] sm:$0xff] }
 0x28c   : > { %v931_v19 = vadd.f32 %v839_v53, %v611_v11 }
 0x28d   : > { %965 = vst.msk [vmem:[#allocation3 + $0x88] sm:$0xff] %vm947_vm1, %v932_v29 }
 0x28e   : > { %964 = vst.msk [vmem:[#allocation3 + $0x80] sm:$0xff] %vm947_vm1, %v931_v19  ;;  %v854_v9 = vpop.xlane.xlu1 %853 }
 0x28f   : > { %v849_v37 = vpop.xlane.xlu0 %848  ;;  %v934_v2 = vadd.f32 %v854_v9, %v614_v22  ;;  %v1138_v9 = vld [vmem:[#allocation2 + $0x40] sm:$0xff] }
 0x290   : > { %v933_v58 = vadd.f32 %v849_v37, %v613_v52  ;;  %v1139_v52 = vld [vmem:[#allocation2 + $0x48] sm:$0xff] }
 0x291   : > { %967 = vst.msk [vmem:[#allocation3 + $0x98] sm:$0xff] %vm947_vm1, %v934_v2  ;;  %v1140_v2 = vld [vmem:[#allocation2 + $0x50] sm:$0xff] }
 0x292   : > { %966 = vst.msk [vmem:[#allocation3 + $0x90] sm:$0xff] %vm947_vm1, %v933_v58  ;;  %v864_v51 = vpop.xlane.xlu1 %863 }
 0x293   : > { %v859_v47 = vpop.xlane.xlu0 %858  ;;  %v936_v0 = vadd.f32 %v864_v51, %v616_v38  ;;  %v1141_v38 = vld [vmem:[#allocation2 + $0x58] sm:$0xff] }
 0x294   : > { %v935_v17 = vadd.f32 %v859_v47, %v615_v21 }
 0x295   : > { %969 = vst.msk [vmem:[#allocation3 + $0xa8] sm:$0xff] %vm947_vm1, %v936_v0 }
 0x296   : > { %968 = vst.msk [vmem:[#allocation3 + $0xa0] sm:$0xff] %vm947_vm1, %v935_v17  ;;  %v874_v54 = vpop.xlane.xlu1 %873 }
 0x297   : > { %v869_v4 = vpop.xlane.xlu0 %868  ;;  %v938_v23 = vadd.f32 %v874_v54, %v618_v33  ;;  %v1142_v54 = vld [vmem:[#allocation2 + $0x60] sm:$0xff] }
 0x298   : > { %v937_v45 = vadd.f32 %v869_v4, %v617_v42  ;;  %v1143_v42 = vld [vmem:[#allocation2 + $0x68] sm:$0xff] }
 0x299   : > { %971 = vst.msk [vmem:[#allocation3 + $0xb8] sm:$0xff] %vm947_vm1, %v938_v23  ;;  %v1144_v23 = vld [vmem:[#allocation2 + $0x70] sm:$0xff] }
 0x29a   : > { %970 = vst.msk [vmem:[#allocation3 + $0xb0] sm:$0xff] %vm947_vm1, %v937_v45  ;;  %v884_v27 = vpop.xlane.xlu1 %883 }
 0x29b   : > { %v879_v35 = vpop.xlane.xlu0 %878  ;;  %v940_v7 = vadd.f32 %v884_v27, %v620_v40  ;;  %v1145_v40 = vld [vmem:[#allocation2 + $0x78] sm:$0xff] }
 0x29c   : > { %v939_v3 = vadd.f32 %v879_v35, %v619_v49 }
 0x29d   : > { %973 = vst.msk [vmem:[#allocation3 + $0xc8] sm:$0xff] %vm947_vm1, %v940_v7 }
 0x29e   : > { %972 = vst.msk [vmem:[#allocation3 + $0xc0] sm:$0xff] %vm947_vm1, %v939_v3  ;;  %v894_v16 = vpop.xlane.xlu1 %893 }
 0x29f   : > { %v889_v62 = vpop.xlane.xlu0 %888  ;;  %v942_v14 = vadd.f32 %v894_v16, %v622_v8  ;;  %v1146_v16 = vld [vmem:[#allocation2 + $0x80] sm:$0xff] }
 0x2a0   : > { %v941_v20 = vadd.f32 %v889_v62, %v621_v48  ;;  %v1147_v48 = vld [vmem:[#allocation2 + $0x88] sm:$0xff] }
 0x2a1   : > { %975 = vst.msk [vmem:[#allocation3 + $0xd8] sm:$0xff] %vm947_vm1, %v942_v14  ;;  %v1148_v14 = vld [vmem:[#allocation2 + $0x90] sm:$0xff] }
 0x2a2   : > { %974 = vst.msk [vmem:[#allocation3 + $0xd0] sm:$0xff] %vm947_vm1, %v941_v20  ;;  %v904_v5 = vpop.xlane.xlu1 %903 }
 0x2a3   : > { %v899_v63 = vpop.xlane.xlu0 %898  ;;  %v944_v28 = vadd.f32 %v904_v5, %v624_v61  ;;  %v1149_v61 = vld [vmem:[#allocation2 + $0x98] sm:$0xff] }
 0x2a4   : > { %v943_v6 = vadd.f32 %v899_v63, %v623_v59 }
 0x2a5   : > { %977 = vst.msk [vmem:[#allocation3 + $0xe8] sm:$0xff] %vm947_vm1, %v944_v28 }
 0x2a6   : > { %976 = vst.msk [vmem:[#allocation3 + $0xe0] sm:$0xff] %vm947_vm1, %v943_v6  ;;  %v914_v1 = vpop.xlane.xlu1 %913 }
 0x2a7   : > { %v909_v32 = vpop.xlane.xlu0 %908  ;;  %v946_v34 = vadd.f32 %v914_v1, %v626_v60  ;;  %v1150_v60 = vld [vmem:[#allocation2 + $0xa0] sm:$0xff] }
 0x2a8   : > { %v945_v30 = vadd.f32 %v909_v32, %v625_v18  ;;  %v1152_v32 = vld [vmem:[#allocation2 + $0xb0] sm:$0xff] }
 0x2a9   : > { %979 = vst.msk [vmem:[#allocation3 + $0xf8] sm:$0xff] %vm947_vm1, %v946_v34  ;;  %v1153_v34 = vld [vmem:[#allocation2 + $0xb8] sm:$0xff] }
 0x2aa   : > { %978 = vst.msk [vmem:[#allocation3 + $0xf0] sm:$0xff] %vm947_vm1, %v945_v30 }
 0x2ad   : > { %v1837_v12 = vpop.f32.mrb[0].mxu0 }
 0x2ae   : > { %v2542_v41 = vadd.f32 %v1837_v12, %v1130_v26  ;;  %v2351_v13 = vpop.f32.mrb[0].mxu1  ;;  %v1839_v44 = vpop.f32.mrb[1].mxu0 }
 0x2af   : > { %v2544_v43 = vadd.f32 %v2351_v13, %v1132_v50  ;;  %v2543_v24 = vadd.f32 %v1839_v44, %v1131_v57  ;;  %v2353_v55 = vpop.f32.mrb[1].mxu1  ;;  %v1151_v50 = vld [vmem:[#allocation2 + $0xa8] sm:$0xff]  ;;  %v1154_v44 = vld [vmem:[#allocation2 + $0xc0] sm:$0xff] }
 0x2b0   : > { %2670 = vst [vmem:[#allocation2] sm:$0xff] %v2542_v41  ;;  %v2545_v46 = vadd.f32 %v2353_v55, %v1133_v15  ;;  %v1155_v55 = vld [vmem:[#allocation2 + $0xc8] sm:$0xff] }
 0x2b1   : > { %2672 = vst [vmem:[#allocation2 + $0x10] sm:$0xff] %v2544_v43  ;;  %2671 = vst [vmem:[#allocation2 + $0x8] sm:$0xff] %v2543_v24  ;;  %v1843_v56 = vpop.f32.mrb[2].mxu0  ;;  %v1156_v24 = vld [vmem:[#allocation2 + $0xd0] sm:$0xff] }
 0x2b2   : > { %2673 = vst [vmem:[#allocation2 + $0x18] sm:$0xff] %v2545_v46  ;;  %v2546_v25 = vadd.f32 %v1843_v56, %v1134_v10  ;;  %v2357_v53 = vpop.f32.mrb[2].mxu1  ;;  %v1845_v29 = vpop.f32.mrb[3].mxu0  ;;  %v1157_v46 = vld [vmem:[#allocation2 + $0xd8] sm:$0xff] }
 0x2b3   : > { %v2548_v11 = vadd.f32 %v2357_v53, %v1136_v31  ;;  %v2547_v19 = vadd.f32 %v1845_v29, %v1135_v39  ;;  %v2359_v22 = vpop.f32.mrb[3].mxu1  ;;  %v1158_v29 = vld [vmem:[#allocation2 + $0xe0] sm:$0xff] }
 0x2b4   : > { %2674 = vst [vmem:[#allocation2 + $0x20] sm:$0xff] %v2546_v25  ;;  %v2549_v37 = vadd.f32 %v2359_v22, %v1137_v36  ;;  %v1159_v22 = vld [vmem:[#allocation2 + $0xe8] sm:$0xff] }
 0x2b5   : > { %2676 = vst [vmem:[#allocation2 + $0x30] sm:$0xff] %v2548_v11  ;;  %2675 = vst [vmem:[#allocation2 + $0x28] sm:$0xff] %v2547_v19  ;;  %v1849_v58 = vpop.f32.mrb[4].mxu0  ;;  %v1160_v19 = vld [vmem:[#allocation2 + $0xf0] sm:$0xff] }
 0x2b6   : > { %2677 = vst [vmem:[#allocation2 + $0x38] sm:$0xff] %v2549_v37  ;;  %v2550_v51 = vadd.f32 %v1849_v58, %v1138_v9  ;;  %v2363_v47 = vpop.f32.mrb[4].mxu1  ;;  %v1851_v0 = vpop.f32.mrb[5].mxu0  ;;  %v1161_v37 = vld [vmem:[#allocation2 + $0xf8] sm:$0xff] }
 0x2b7   : > { %v2552_v21 = vadd.f32 %v2363_v47, %v1140_v2  ;;  %v2551_v17 = vadd.f32 %v1851_v0, %v1139_v52  ;;  %v2365_v33 = vpop.f32.mrb[5].mxu1  ;;  %v1162_v0 = vld [vmem:[#allocation2 + $0x100] sm:$0xff] }
 0x2b8   : > { %2678 = vst [vmem:[#allocation2 + $0x40] sm:$0xff] %v2550_v51  ;;  %v2553_v4 = vadd.f32 %v2365_v33, %v1141_v38  ;;  %v1163_v33 = vld [vmem:[#allocation2 + $0x108] sm:$0xff] }
 0x2b9   : > { %2680 = vst [vmem:[#allocation2 + $0x50] sm:$0xff] %v2552_v21  ;;  %2679 = vst [vmem:[#allocation2 + $0x48] sm:$0xff] %v2551_v17  ;;  %v1855_v45 = vpop.f32.mrb[6].mxu0  ;;  %v1164_v17 = vld [vmem:[#allocation2 + $0x110] sm:$0xff] }
 0x2ba   : > { %2681 = vst [vmem:[#allocation2 + $0x58] sm:$0xff] %v2553_v4  ;;  %v2554_v27 = vadd.f32 %v1855_v45, %v1142_v54  ;;  %v2369_v35 = vpop.f32.mrb[6].mxu1  ;;  %v1857_v7 = vpop.f32.mrb[7].mxu0  ;;  %v1165_v4 = vld [vmem:[#allocation2 + $0x118] sm:$0xff] }
 0x2bb   : > { %v2556_v49 = vadd.f32 %v2369_v35, %v1144_v23  ;;  %v2555_v3 = vadd.f32 %v1857_v7, %v1143_v42  ;;  %v2371_v8 = vpop.f32.mrb[7].mxu1  ;;  %v1166_v7 = vld [vmem:[#allocation2 + $0x120] sm:$0xff] }
 0x2bc   : > { %2682 = vst [vmem:[#allocation2 + $0x60] sm:$0xff] %v2554_v27  ;;  %v2557_v62 = vadd.f32 %v2371_v8, %v1145_v40  ;;  %v1167_v8 = vld [vmem:[#allocation2 + $0x128] sm:$0xff] }
 0x2bd   : > { %2684 = vst [vmem:[#allocation2 + $0x70] sm:$0xff] %v2556_v49  ;;  %2683 = vst [vmem:[#allocation2 + $0x68] sm:$0xff] %v2555_v3  ;;  %v1861_v20 = vpop.f32.mrb[8].mxu0  ;;  %v1168_v3 = vld [vmem:[#allocation2 + $0x130] sm:$0xff] }
 0x2be   : > { %2685 = vst [vmem:[#allocation2 + $0x78] sm:$0xff] %v2557_v62  ;;  %v2558_v5 = vadd.f32 %v1861_v20, %v1146_v16  ;;  %v2375_v63 = vpop.f32.mrb[8].mxu1  ;;  %v1863_v28 = vpop.f32.mrb[9].mxu0  ;;  %v1169_v62 = vld [vmem:[#allocation2 + $0x138] sm:$0xff] }
 0x2bf   : > { %v2560_v59 = vadd.f32 %v2375_v63, %v1148_v14  ;;  %v2559_v6 = vadd.f32 %v1863_v28, %v1147_v48  ;;  %v2377_v26 = vpop.f32.mrb[9].mxu1  ;;  %v1170_v28 = vld [vmem:[#allocation2 + $0x140] sm:$0xff] }
 0x2c0   : > { %2686 = vst [vmem:[#allocation2 + $0x80] sm:$0xff] %v2558_v5  ;;  %v2561_v1 = vadd.f32 %v2377_v26, %v1149_v61  ;;  %v1171_v26 = vld [vmem:[#allocation2 + $0x148] sm:$0xff] }
 0x2c1   : > { %2688 = vst [vmem:[#allocation2 + $0x90] sm:$0xff] %v2560_v59  ;;  %2687 = vst [vmem:[#allocation2 + $0x88] sm:$0xff] %v2559_v6  ;;  %v1867_v57 = vpop.f32.mrb[10].mxu0  ;;  %v1172_v6 = vld [vmem:[#allocation2 + $0x150] sm:$0xff] }
 0x2c2   : > { %2689 = vst [vmem:[#allocation2 + $0x98] sm:$0xff] %v2561_v1  ;;  %v2562_v18 = vadd.f32 %v1867_v57, %v1150_v60  ;;  %v2381_v12 = vpop.f32.mrb[10].mxu1  ;;  %v1869_v15 = vpop.f32.mrb[11].mxu0  ;;  %v1173_v1 = vld [vmem:[#allocation2 + $0x158] sm:$0xff] }
 0x2c3   : > { %v2564_v30 = vadd.f32 %v2381_v12, %v1152_v32  ;;  %v2563_v41 = vadd.f32 %v1869_v15, %v1151_v50  ;;  %v2383_v13 = vpop.f32.mrb[11].mxu1  ;;  %v1174_v15 = vld [vmem:[#allocation2 + $0x160] sm:$0xff] }
 0x2c4   : > { %2690 = vst [vmem:[#allocation2 + $0xa0] sm:$0xff] %v2562_v18  ;;  %v2565_v43 = vadd.f32 %v2383_v13, %v1153_v34  ;;  %v1175_v13 = vld [vmem:[#allocation2 + $0x168] sm:$0xff] }
 0x2c5   : > { %2692 = vst [vmem:[#allocation2 + $0xb0] sm:$0xff] %v2564_v30  ;;  %2691 = vst [vmem:[#allocation2 + $0xa8] sm:$0xff] %v2563_v41  ;;  %v1873_v10 = vpop.f32.mrb[12].mxu0  ;;  %v1176_v41 = vld [vmem:[#allocation2 + $0x170] sm:$0xff] }
 0x2c6   : > { %2693 = vst [vmem:[#allocation2 + $0xb8] sm:$0xff] %v2565_v43  ;;  %v2566_v31 = vadd.f32 %v1873_v10, %v1154_v44  ;;  %v2387_v39 = vpop.f32.mrb[12].mxu1  ;;  %v1875_v56 = vpop.f32.mrb[13].mxu0  ;;  %v1177_v43 = vld [vmem:[#allocation2 + $0x178] sm:$0xff] }
 0x2c7   : > { %v2568_v36 = vadd.f32 %v2387_v39, %v1156_v24  ;;  %v2567_v25 = vadd.f32 %v1875_v56, %v1155_v55  ;;  %v2389_v53 = vpop.f32.mrb[13].mxu1  ;;  %v1178_v56 = vld [vmem:[#allocation2 + $0x180] sm:$0xff] }
 0x2c8   : > { %2694 = vst [vmem:[#allocation2 + $0xc0] sm:$0xff] %v2566_v31  ;;  %v2569_v11 = vadd.f32 %v2389_v53, %v1157_v46  ;;  %v1179_v53 = vld [vmem:[#allocation2 + $0x188] sm:$0xff] }
 0x2c9   : > { %2696 = vst [vmem:[#allocation2 + $0xd0] sm:$0xff] %v2568_v36  ;;  %2695 = vst [vmem:[#allocation2 + $0xc8] sm:$0xff] %v2567_v25  ;;  %v1879_v9 = vpop.f32.mrb[14].mxu0  ;;  %v1180_v25 = vld [vmem:[#allocation2 + $0x190] sm:$0xff] }
 0x2ca   : > { %2697 = vst [vmem:[#allocation2 + $0xd8] sm:$0xff] %v2569_v11  ;;  %v2570_v2 = vadd.f32 %v1879_v9, %v1158_v29  ;;  %v2393_v52 = vpop.f32.mrb[14].mxu1  ;;  %v1881_v58 = vpop.f32.mrb[15].mxu0  ;;  %v1181_v11 = vld [vmem:[#allocation2 + $0x198] sm:$0xff] }
 0x2cb   : > { %v2572_v38 = vadd.f32 %v2393_v52, %v1160_v19  ;;  %v2571_v51 = vadd.f32 %v1881_v58, %v1159_v22  ;;  %v2395_v47 = vpop.f32.mrb[15].mxu1  ;;  %v1182_v58 = vld [vmem:[#allocation2 + $0x1a0] sm:$0xff] }
 0x2cc   : > { %2698 = vst [vmem:[#allocation2 + $0xe0] sm:$0xff] %v2570_v2  ;;  %v2573_v21 = vadd.f32 %v2395_v47, %v1161_v37  ;;  %v1183_v47 = vld [vmem:[#allocation2 + $0x1a8] sm:$0xff] }
 0x2cd   : > { %2700 = vst [vmem:[#allocation2 + $0xf0] sm:$0xff] %v2572_v38  ;;  %2699 = vst [vmem:[#allocation2 + $0xe8] sm:$0xff] %v2571_v51  ;;  %v1885_v54 = vpop.f32.mrb[16].mxu0  ;;  %v1184_v51 = vld [vmem:[#allocation2 + $0x1b0] sm:$0xff] }
 0x2ce   : > { %2701 = vst [vmem:[#allocation2 + $0xf8] sm:$0xff] %v2573_v21  ;;  %v2574_v23 = vadd.f32 %v1885_v54, %v1162_v0  ;;  %v2399_v42 = vpop.f32.mrb[16].mxu1  ;;  %v1887_v45 = vpop.f32.mrb[17].mxu0  ;;  %v1185_v21 = vld [vmem:[#allocation2 + $0x1b8] sm:$0xff] }
 0x2cf   : > { %v2576_v40 = vadd.f32 %v2399_v42, %v1164_v17  ;;  %v2575_v27 = vadd.f32 %v1887_v45, %v1163_v33  ;;  %v2401_v35 = vpop.f32.mrb[17].mxu1  ;;  %v1186_v45 = vld [vmem:[#allocation2 + $0x1c0] sm:$0xff] }
 0x2d0   : > { %2702 = vst [vmem:[#allocation2 + $0x100] sm:$0xff] %v2574_v23  ;;  %v2577_v49 = vadd.f32 %v2401_v35, %v1165_v4  ;;  %v1187_v35 = vld [vmem:[#allocation2 + $0x1c8] sm:$0xff] }
 0x2d1   : > { %2704 = vst [vmem:[#allocation2 + $0x110] sm:$0xff] %v2576_v40  ;;  %2703 = vst [vmem:[#allocation2 + $0x108] sm:$0xff] %v2575_v27  ;;  %v1891_v16 = vpop.f32.mrb[18].mxu0  ;;  %v1188_v27 = vld [vmem:[#allocation2 + $0x1d0] sm:$0xff] }
 0x2d2   : > { %2705 = vst [vmem:[#allocation2 + $0x118] sm:$0xff] %v2577_v49  ;;  %v2578_v14 = vadd.f32 %v1891_v16, %v1166_v7  ;;  %v2405_v48 = vpop.f32.mrb[18].mxu1  ;;  %v1893_v20 = vpop.f32.mrb[19].mxu0  ;;  %v1189_v49 = vld [vmem:[#allocation2 + $0x1d8] sm:$0xff] }
 0x2d3   : > { %v2580_v61 = vadd.f32 %v2405_v48, %v1168_v3  ;;  %v2579_v5 = vadd.f32 %v1893_v20, %v1167_v8  ;;  %v2407_v63 = vpop.f32.mrb[19].mxu1  ;;  %v1190_v20 = vld [vmem:[#allocation2 + $0x1e0] sm:$0xff] }
 0x2d4   : > { %2706 = vst [vmem:[#allocation2 + $0x120] sm:$0xff] %v2578_v14  ;;  %v2581_v59 = vadd.f32 %v2407_v63, %v1169_v62  ;;  %v1191_v63 = vld [vmem:[#allocation2 + $0x1e8] sm:$0xff] }
 0x2d5   : > { %2708 = vst [vmem:[#allocation2 + $0x130] sm:$0xff] %v2580_v61  ;;  %2707 = vst [vmem:[#allocation2 + $0x128] sm:$0xff] %v2579_v5  ;;  %v1897_v60 = vpop.f32.mrb[20].mxu0  ;;  %v1192_v5 = vld [vmem:[#allocation2 + $0x1f0] sm:$0xff] }
 0x2d6   : > { %2709 = vst [vmem:[#allocation2 + $0x138] sm:$0xff] %v2581_v59  ;;  %v2582_v32 = vadd.f32 %v1897_v60, %v1170_v28  ;;  %v2411_v50 = vpop.f32.mrb[20].mxu1  ;;  %v1899_v57 = vpop.f32.mrb[21].mxu0  ;;  %v1193_v59 = vld [vmem:[#allocation2 + $0x1f8] sm:$0xff] }
 0x2d7   : > { %v2584_v34 = vadd.f32 %v2411_v50, %v1172_v6  ;;  %v2583_v18 = vadd.f32 %v1899_v57, %v1171_v26  ;;  %v2413_v12 = vpop.f32.mrb[21].mxu1  ;;  %v1194_v57 = vld [vmem:[#allocation2 + $0x200] sm:$0xff] }
 0x2d8   : > { %2710 = vst [vmem:[#allocation2 + $0x140] sm:$0xff] %v2582_v32  ;;  %v2585_v30 = vadd.f32 %v2413_v12, %v1173_v1  ;;  %v1195_v12 = vld [vmem:[#allocation2 + $0x208] sm:$0xff] }
 0x2d9   : > { %2712 = vst [vmem:[#allocation2 + $0x150] sm:$0xff] %v2584_v34  ;;  %2711 = vst [vmem:[#allocation2 + $0x148] sm:$0xff] %v2583_v18  ;;  %v1903_v44 = vpop.f32.mrb[22].mxu0  ;;  %v1196_v18 = vld [vmem:[#allocation2 + $0x210] sm:$0xff] }
 0x2da   : > { %2713 = vst [vmem:[#allocation2 + $0x158] sm:$0xff] %v2585_v30  ;;  %v2586_v24 = vadd.f32 %v1903_v44, %v1174_v15  ;;  %v2417_v55 = vpop.f32.mrb[22].mxu1  ;;  %v1905_v10 = vpop.f32.mrb[23].mxu0  ;;  %v1197_v30 = vld [vmem:[#allocation2 + $0x218] sm:$0xff] }
 0x2db   : > { %v2588_v46 = vadd.f32 %v2417_v55, %v1176_v41  ;;  %v2587_v31 = vadd.f32 %v1905_v10, %v1175_v13  ;;  %v2419_v39 = vpop.f32.mrb[23].mxu1  ;;  %v1198_v10 = vld [vmem:[#allocation2 + $0x220] sm:$0xff] }
 0x2dc   : > { %2714 = vst [vmem:[#allocation2 + $0x160] sm:$0xff] %v2586_v24  ;;  %v2589_v36 = vadd.f32 %v2419_v39, %v1177_v43  ;;  %v1199_v39 = vld [vmem:[#allocation2 + $0x228] sm:$0xff] }
 0x2dd   : > { %2716 = vst [vmem:[#allocation2 + $0x170] sm:$0xff] %v2588_v46  ;;  %2715 = vst [vmem:[#allocation2 + $0x168] sm:$0xff] %v2587_v31  ;;  %v1909_v29 = vpop.f32.mrb[24].mxu0  ;;  %v1200_v31 = vld [vmem:[#allocation2 + $0x230] sm:$0xff] }
 0x2de   : > { %2717 = vst [vmem:[#allocation2 + $0x178] sm:$0xff] %v2589_v36  ;;  %v2590_v19 = vadd.f32 %v1909_v29, %v1178_v56  ;;  %v2423_v22 = vpop.f32.mrb[24].mxu1  ;;  %v1911_v9 = vpop.f32.mrb[25].mxu0  ;;  %v1201_v36 = vld [vmem:[#allocation2 + $0x238] sm:$0xff] }
 0x2df   : > { %v2592_v37 = vadd.f32 %v2423_v22, %v1180_v25  ;;  %v2591_v2 = vadd.f32 %v1911_v9, %v1179_v53  ;;  %v2425_v52 = vpop.f32.mrb[25].mxu1  ;;  %v1202_v9 = vld [vmem:[#allocation2 + $0x240] sm:$0xff] }
 0x2e0   : > { %2718 = vst [vmem:[#allocation2 + $0x180] sm:$0xff] %v2590_v19  ;;  %v2593_v38 = vadd.f32 %v2425_v52, %v1181_v11  ;;  %v1203_v52 = vld [vmem:[#allocation2 + $0x248] sm:$0xff] }
 0x2e1   : > { %2720 = vst [vmem:[#allocation2 + $0x190] sm:$0xff] %v2592_v37  ;;  %2719 = vst [vmem:[#allocation2 + $0x188] sm:$0xff] %v2591_v2  ;;  %v1915_v0 = vpop.f32.mrb[26].mxu0  ;;  %v1204_v2 = vld [vmem:[#allocation2 + $0x250] sm:$0xff] }
 0x2e2   : > { %2721 = vst [vmem:[#allocation2 + $0x198] sm:$0xff] %v2593_v38  ;;  %v2594_v17 = vadd.f32 %v1915_v0, %v1182_v58  ;;  %v2429_v33 = vpop.f32.mrb[26].mxu1  ;;  %v1917_v54 = vpop.f32.mrb[27].mxu0  ;;  %v1205_v38 = vld [vmem:[#allocation2 + $0x258] sm:$0xff] }
 0x2e3   : > { %v2596_v4 = vadd.f32 %v2429_v33, %v1184_v51  ;;  %v2595_v23 = vadd.f32 %v1917_v54, %v1183_v47  ;;  %v2431_v42 = vpop.f32.mrb[27].mxu1  ;;  %v1206_v54 = vld [vmem:[#allocation2 + $0x260] sm:$0xff] }
 0x2e4   : > { %2722 = vst [vmem:[#allocation2 + $0x1a0] sm:$0xff] %v2594_v17  ;;  %v2597_v40 = vadd.f32 %v2431_v42, %v1185_v21  ;;  %v1207_v42 = vld [vmem:[#allocation2 + $0x268] sm:$0xff] }
 0x2e5   : > { %2724 = vst [vmem:[#allocation2 + $0x1b0] sm:$0xff] %v2596_v4  ;;  %2723 = vst [vmem:[#allocation2 + $0x1a8] sm:$0xff] %v2595_v23  ;;  %v1921_v7 = vpop.f32.mrb[28].mxu0  ;;  %v1208_v23 = vld [vmem:[#allocation2 + $0x270] sm:$0xff] }
 0x2e6   : > { %2725 = vst [vmem:[#allocation2 + $0x1b8] sm:$0xff] %v2597_v40  ;;  %v2598_v3 = vadd.f32 %v1921_v7, %v1186_v45  ;;  %v2435_v8 = vpop.f32.mrb[28].mxu1  ;;  %v1923_v16 = vpop.f32.mrb[29].mxu0  ;;  %v1209_v40 = vld [vmem:[#allocation2 + $0x278] sm:$0xff] }
 0x2e7   : > { %v2600_v62 = vadd.f32 %v2435_v8, %v1188_v27  ;;  %v2599_v14 = vadd.f32 %v1923_v16, %v1187_v35  ;;  %v2437_v48 = vpop.f32.mrb[29].mxu1  ;;  %v1210_v16 = vld [vmem:[#allocation2 + $0x280] sm:$0xff] }
 0x2e8   : > { %2726 = vst [vmem:[#allocation2 + $0x1c0] sm:$0xff] %v2598_v3  ;;  %v2601_v61 = vadd.f32 %v2437_v48, %v1189_v49  ;;  %v1211_v48 = vld [vmem:[#allocation2 + $0x288] sm:$0xff] }
 0x2e9   : > { %2728 = vst [vmem:[#allocation2 + $0x1d0] sm:$0xff] %v2600_v62  ;;  %2727 = vst [vmem:[#allocation2 + $0x1c8] sm:$0xff] %v2599_v14  ;;  %v1927_v28 = vpop.f32.mrb[30].mxu0  ;;  %v1212_v14 = vld [vmem:[#allocation2 + $0x290] sm:$0xff] }
 0x2ea   : > { %2729 = vst [vmem:[#allocation2 + $0x1d8] sm:$0xff] %v2601_v61  ;;  %v2602_v6 = vadd.f32 %v1927_v28, %v1190_v20  ;;  %v2441_v26 = vpop.f32.mrb[30].mxu1  ;;  %v1929_v60 = vpop.f32.mrb[31].mxu0  ;;  %v1213_v61 = vld [vmem:[#allocation2 + $0x298] sm:$0xff] }
 0x2eb   : > { %v2604_v1 = vadd.f32 %v2441_v26, %v1192_v5  ;;  %v2603_v32 = vadd.f32 %v1929_v60, %v1191_v63  ;;  %v2443_v50 = vpop.f32.mrb[31].mxu1  ;;  %v1214_v60 = vld [vmem:[#allocation2 + $0x2a0] sm:$0xff] }
 0x2ec   : > { %2730 = vst [vmem:[#allocation2 + $0x1e0] sm:$0xff] %v2602_v6  ;;  %v2605_v34 = vadd.f32 %v2443_v50, %v1193_v59  ;;  %v1215_v50 = vld [vmem:[#allocation2 + $0x2a8] sm:$0xff] }
 0x2ed   : > { %2732 = vst [vmem:[#allocation2 + $0x1f0] sm:$0xff] %v2604_v1  ;;  %2731 = vst [vmem:[#allocation2 + $0x1e8] sm:$0xff] %v2603_v32  ;;  %v1933_v15 = vpop.f32.mrb[32].mxu0  ;;  %v1216_v32 = vld [vmem:[#allocation2 + $0x2b0] sm:$0xff] }
 0x2ee   : > { %2733 = vst [vmem:[#allocation2 + $0x1f8] sm:$0xff] %v2605_v34  ;;  %v2606_v41 = vadd.f32 %v1933_v15, %v1194_v57  ;;  %v2447_v13 = vpop.f32.mrb[32].mxu1  ;;  %v1935_v44 = vpop.f32.mrb[33].mxu0  ;;  %v1217_v34 = vld [vmem:[#allocation2 + $0x2b8] sm:$0xff] }
 0x2ef   : > { %v2608_v43 = vadd.f32 %v2447_v13, %v1196_v18  ;;  %v2607_v24 = vadd.f32 %v1935_v44, %v1195_v12  ;;  %v2449_v55 = vpop.f32.mrb[33].mxu1  ;;  %v1218_v44 = vld [vmem:[#allocation2 + $0x2c0] sm:$0xff] }
 0x2f0   : > { %2734 = vst [vmem:[#allocation2 + $0x200] sm:$0xff] %v2606_v41  ;;  %v2609_v46 = vadd.f32 %v2449_v55, %v1197_v30  ;;  %v1219_v55 = vld [vmem:[#allocation2 + $0x2c8] sm:$0xff] }
 0x2f1   : > { %2736 = vst [vmem:[#allocation2 + $0x210] sm:$0xff] %v2608_v43  ;;  %2735 = vst [vmem:[#allocation2 + $0x208] sm:$0xff] %v2607_v24  ;;  %v1939_v56 = vpop.f32.mrb[34].mxu0  ;;  %v1220_v24 = vld [vmem:[#allocation2 + $0x2d0] sm:$0xff] }
 0x2f2   : > { %2737 = vst [vmem:[#allocation2 + $0x218] sm:$0xff] %v2609_v46  ;;  %v2610_v25 = vadd.f32 %v1939_v56, %v1198_v10  ;;  %v2453_v53 = vpop.f32.mrb[34].mxu1  ;;  %v1941_v29 = vpop.f32.mrb[35].mxu0  ;;  %v1221_v46 = vld [vmem:[#allocation2 + $0x2d8] sm:$0xff] }
 0x2f3   : > { %v2612_v11 = vadd.f32 %v2453_v53, %v1200_v31  ;;  %v2611_v19 = vadd.f32 %v1941_v29, %v1199_v39  ;;  %v2455_v22 = vpop.f32.mrb[35].mxu1  ;;  %v1222_v29 = vld [vmem:[#allocation2 + $0x2e0] sm:$0xff] }
 0x2f4   : > { %2738 = vst [vmem:[#allocation2 + $0x220] sm:$0xff] %v2610_v25  ;;  %v2613_v37 = vadd.f32 %v2455_v22, %v1201_v36  ;;  %v1223_v22 = vld [vmem:[#allocation2 + $0x2e8] sm:$0xff] }
 0x2f5   : > { %2740 = vst [vmem:[#allocation2 + $0x230] sm:$0xff] %v2612_v11  ;;  %2739 = vst [vmem:[#allocation2 + $0x228] sm:$0xff] %v2611_v19  ;;  %v1945_v58 = vpop.f32.mrb[36].mxu0  ;;  %v1224_v19 = vld [vmem:[#allocation2 + $0x2f0] sm:$0xff] }
 0x2f6   : > { %2741 = vst [vmem:[#allocation2 + $0x238] sm:$0xff] %v2613_v37  ;;  %v2614_v51 = vadd.f32 %v1945_v58, %v1202_v9  ;;  %v2459_v47 = vpop.f32.mrb[36].mxu1  ;;  %v1947_v0 = vpop.f32.mrb[37].mxu0  ;;  %v1225_v37 = vld [vmem:[#allocation2 + $0x2f8] sm:$0xff] }
 0x2f7   : > { %v2616_v21 = vadd.f32 %v2459_v47, %v1204_v2  ;;  %v2615_v17 = vadd.f32 %v1947_v0, %v1203_v52  ;;  %v2461_v33 = vpop.f32.mrb[37].mxu1  ;;  %v1226_v0 = vld [vmem:[#allocation2 + $0x300] sm:$0xff] }
 0x2f8   : > { %2742 = vst [vmem:[#allocation2 + $0x240] sm:$0xff] %v2614_v51  ;;  %v2617_v4 = vadd.f32 %v2461_v33, %v1205_v38  ;;  %v1227_v33 = vld [vmem:[#allocation2 + $0x308] sm:$0xff] }
 0x2f9   : > { %2744 = vst [vmem:[#allocation2 + $0x250] sm:$0xff] %v2616_v21  ;;  %2743 = vst [vmem:[#allocation2 + $0x248] sm:$0xff] %v2615_v17  ;;  %v1951_v45 = vpop.f32.mrb[38].mxu0  ;;  %v1228_v17 = vld [vmem:[#allocation2 + $0x310] sm:$0xff] }
 0x2fa   : > { %2745 = vst [vmem:[#allocation2 + $0x258] sm:$0xff] %v2617_v4  ;;  %v2618_v27 = vadd.f32 %v1951_v45, %v1206_v54  ;;  %v2465_v35 = vpop.f32.mrb[38].mxu1  ;;  %v1953_v7 = vpop.f32.mrb[39].mxu0  ;;  %v1229_v4 = vld [vmem:[#allocation2 + $0x318] sm:$0xff] }
 0x2fb   : > { %v2620_v49 = vadd.f32 %v2465_v35, %v1208_v23  ;;  %v2619_v3 = vadd.f32 %v1953_v7, %v1207_v42  ;;  %v2467_v8 = vpop.f32.mrb[39].mxu1  ;;  %v1230_v7 = vld [vmem:[#allocation2 + $0x320] sm:$0xff] }
 0x2fc   : > { %2746 = vst [vmem:[#allocation2 + $0x260] sm:$0xff] %v2618_v27  ;;  %v2621_v62 = vadd.f32 %v2467_v8, %v1209_v40  ;;  %v1231_v8 = vld [vmem:[#allocation2 + $0x328] sm:$0xff] }
 0x2fd   : > { %2748 = vst [vmem:[#allocation2 + $0x270] sm:$0xff] %v2620_v49  ;;  %2747 = vst [vmem:[#allocation2 + $0x268] sm:$0xff] %v2619_v3  ;;  %v1957_v20 = vpop.f32.mrb[40].mxu0  ;;  %v1232_v3 = vld [vmem:[#allocation2 + $0x330] sm:$0xff] }
 0x2fe   : > { %2749 = vst [vmem:[#allocation2 + $0x278] sm:$0xff] %v2621_v62  ;;  %v2622_v5 = vadd.f32 %v1957_v20, %v1210_v16  ;;  %v2471_v63 = vpop.f32.mrb[40].mxu1  ;;  %v1959_v28 = vpop.f32.mrb[41].mxu0  ;;  %v1233_v62 = vld [vmem:[#allocation2 + $0x338] sm:$0xff] }
 0x2ff   : > { %v2624_v59 = vadd.f32 %v2471_v63, %v1212_v14  ;;  %v2623_v6 = vadd.f32 %v1959_v28, %v1211_v48  ;;  %v2473_v26 = vpop.f32.mrb[41].mxu1  ;;  %v1234_v28 = vld [vmem:[#allocation2 + $0x340] sm:$0xff] }
 0x300   : > { %2750 = vst [vmem:[#allocation2 + $0x280] sm:$0xff] %v2622_v5  ;;  %v2625_v1 = vadd.f32 %v2473_v26, %v1213_v61  ;;  %v1235_v26 = vld [vmem:[#allocation2 + $0x348] sm:$0xff] }
 0x301   : > { %2752 = vst [vmem:[#allocation2 + $0x290] sm:$0xff] %v2624_v59  ;;  %2751 = vst [vmem:[#allocation2 + $0x288] sm:$0xff] %v2623_v6  ;;  %v1963_v57 = vpop.f32.mrb[42].mxu0  ;;  %v1236_v6 = vld [vmem:[#allocation2 + $0x350] sm:$0xff] }
 0x302   : > { %2753 = vst [vmem:[#allocation2 + $0x298] sm:$0xff] %v2625_v1  ;;  %v2626_v18 = vadd.f32 %v1963_v57, %v1214_v60  ;;  %v2477_v12 = vpop.f32.mrb[42].mxu1  ;;  %v1965_v15 = vpop.f32.mrb[43].mxu0  ;;  %v1237_v1 = vld [vmem:[#allocation2 + $0x358] sm:$0xff] }
 0x303   : > { %v2628_v30 = vadd.f32 %v2477_v12, %v1216_v32  ;;  %v2627_v41 = vadd.f32 %v1965_v15, %v1215_v50  ;;  %v2479_v13 = vpop.f32.mrb[43].mxu1  ;;  %v1238_v15 = vld [vmem:[#allocation2 + $0x360] sm:$0xff] }
 0x304   : > { %2754 = vst [vmem:[#allocation2 + $0x2a0] sm:$0xff] %v2626_v18  ;;  %v2629_v43 = vadd.f32 %v2479_v13, %v1217_v34  ;;  %v1239_v13 = vld [vmem:[#allocation2 + $0x368] sm:$0xff] }
 0x305   : > { %2756 = vst [vmem:[#allocation2 + $0x2b0] sm:$0xff] %v2628_v30  ;;  %2755 = vst [vmem:[#allocation2 + $0x2a8] sm:$0xff] %v2627_v41  ;;  %v1969_v10 = vpop.f32.mrb[44].mxu0  ;;  %v1240_v41 = vld [vmem:[#allocation2 + $0x370] sm:$0xff] }
 0x306   : > { %2757 = vst [vmem:[#allocation2 + $0x2b8] sm:$0xff] %v2629_v43  ;;  %v2630_v31 = vadd.f32 %v1969_v10, %v1218_v44  ;;  %v2483_v39 = vpop.f32.mrb[44].mxu1  ;;  %v1971_v56 = vpop.f32.mrb[45].mxu0  ;;  %v1241_v43 = vld [vmem:[#allocation2 + $0x378] sm:$0xff] }
 0x307   : > { %v2632_v36 = vadd.f32 %v2483_v39, %v1220_v24  ;;  %v2631_v25 = vadd.f32 %v1971_v56, %v1219_v55  ;;  %v2485_v53 = vpop.f32.mrb[45].mxu1  ;;  %v1242_v56 = vld [vmem:[#allocation2 + $0x380] sm:$0xff] }
 0x308   : > { %2758 = vst [vmem:[#allocation2 + $0x2c0] sm:$0xff] %v2630_v31  ;;  %v2633_v11 = vadd.f32 %v2485_v53, %v1221_v46  ;;  %v1243_v53 = vld [vmem:[#allocation2 + $0x388] sm:$0xff] }
 0x309   : > { %2760 = vst [vmem:[#allocation2 + $0x2d0] sm:$0xff] %v2632_v36  ;;  %2759 = vst [vmem:[#allocation2 + $0x2c8] sm:$0xff] %v2631_v25  ;;  %v1975_v9 = vpop.f32.mrb[46].mxu0  ;;  %v1244_v25 = vld [vmem:[#allocation2 + $0x390] sm:$0xff] }
 0x30a   : > { %2761 = vst [vmem:[#allocation2 + $0x2d8] sm:$0xff] %v2633_v11  ;;  %v2634_v2 = vadd.f32 %v1975_v9, %v1222_v29  ;;  %v2489_v52 = vpop.f32.mrb[46].mxu1  ;;  %v1977_v58 = vpop.f32.mrb[47].mxu0  ;;  %v1245_v11 = vld [vmem:[#allocation2 + $0x398] sm:$0xff] }
 0x30b   : > { %v2636_v38 = vadd.f32 %v2489_v52, %v1224_v19  ;;  %v2635_v51 = vadd.f32 %v1977_v58, %v1223_v22  ;;  %v2491_v47 = vpop.f32.mrb[47].mxu1  ;;  %v1246_v58 = vld [vmem:[#allocation2 + $0x3a0] sm:$0xff] }
 0x30c   : > { %2762 = vst [vmem:[#allocation2 + $0x2e0] sm:$0xff] %v2634_v2  ;;  %v2637_v21 = vadd.f32 %v2491_v47, %v1225_v37  ;;  %v1247_v47 = vld [vmem:[#allocation2 + $0x3a8] sm:$0xff] }
 0x30d   : > { %2764 = vst [vmem:[#allocation2 + $0x2f0] sm:$0xff] %v2636_v38  ;;  %2763 = vst [vmem:[#allocation2 + $0x2e8] sm:$0xff] %v2635_v51  ;;  %v1981_v54 = vpop.f32.mrb[48].mxu0  ;;  %v1248_v51 = vld [vmem:[#allocation2 + $0x3b0] sm:$0xff] }
 0x30e   : > { %2765 = vst [vmem:[#allocation2 + $0x2f8] sm:$0xff] %v2637_v21  ;;  %v2638_v23 = vadd.f32 %v1981_v54, %v1226_v0  ;;  %v2495_v42 = vpop.f32.mrb[48].mxu1  ;;  %v1983_v45 = vpop.f32.mrb[49].mxu0  ;;  %v1249_v21 = vld [vmem:[#allocation2 + $0x3b8] sm:$0xff] }
 0x30f   : > { %v2640_v40 = vadd.f32 %v2495_v42, %v1228_v17  ;;  %v2639_v27 = vadd.f32 %v1983_v45, %v1227_v33  ;;  %v2497_v35 = vpop.f32.mrb[49].mxu1  ;;  %v1250_v45 = vld [vmem:[#allocation2 + $0x3c0] sm:$0xff] }
 0x310   : > { %2766 = vst [vmem:[#allocation2 + $0x300] sm:$0xff] %v2638_v23  ;;  %v2641_v49 = vadd.f32 %v2497_v35, %v1229_v4  ;;  %v1251_v35 = vld [vmem:[#allocation2 + $0x3c8] sm:$0xff] }
 0x311   : > { %2768 = vst [vmem:[#allocation2 + $0x310] sm:$0xff] %v2640_v40  ;;  %2767 = vst [vmem:[#allocation2 + $0x308] sm:$0xff] %v2639_v27  ;;  %v1987_v16 = vpop.f32.mrb[50].mxu0  ;;  %v1252_v27 = vld [vmem:[#allocation2 + $0x3d0] sm:$0xff] }
 0x312   : > { %2769 = vst [vmem:[#allocation2 + $0x318] sm:$0xff] %v2641_v49  ;;  %v2642_v14 = vadd.f32 %v1987_v16, %v1230_v7  ;;  %v2501_v48 = vpop.f32.mrb[50].mxu1  ;;  %v1989_v20 = vpop.f32.mrb[51].mxu0  ;;  %v1253_v49 = vld [vmem:[#allocation2 + $0x3d8] sm:$0xff] }
 0x313   : > { %v2644_v61 = vadd.f32 %v2501_v48, %v1232_v3  ;;  %v2643_v5 = vadd.f32 %v1989_v20, %v1231_v8  ;;  %v2503_v63 = vpop.f32.mrb[51].mxu1  ;;  %v1254_v20 = vld [vmem:[#allocation2 + $0x3e0] sm:$0xff] }
 0x314   : > { %2770 = vst [vmem:[#allocation2 + $0x320] sm:$0xff] %v2642_v14  ;;  %v2645_v59 = vadd.f32 %v2503_v63, %v1233_v62  ;;  %v1255_v63 = vld [vmem:[#allocation2 + $0x3e8] sm:$0xff] }
 0x315   : > { %2772 = vst [vmem:[#allocation2 + $0x330] sm:$0xff] %v2644_v61  ;;  %2771 = vst [vmem:[#allocation2 + $0x328] sm:$0xff] %v2643_v5  ;;  %v1993_v60 = vpop.f32.mrb[52].mxu0  ;;  %v1256_v5 = vld [vmem:[#allocation2 + $0x3f0] sm:$0xff] }
 0x316   : > { %2773 = vst [vmem:[#allocation2 + $0x338] sm:$0xff] %v2645_v59  ;;  %v2646_v32 = vadd.f32 %v1993_v60, %v1234_v28  ;;  %v2507_v50 = vpop.f32.mrb[52].mxu1  ;;  %v1995_v57 = vpop.f32.mrb[53].mxu0  ;;  %v1257_v59 = vld [vmem:[#allocation2 + $0x3f8] sm:$0xff] }
 0x317   : > { %v2648_v34 = vadd.f32 %v2507_v50, %v1236_v6  ;;  %v2647_v18 = vadd.f32 %v1995_v57, %v1235_v26  ;;  %v2509_v12 = vpop.f32.mrb[53].mxu1 }
 0x318   : > { %2774 = vst [vmem:[#allocation2 + $0x340] sm:$0xff] %v2646_v32  ;;  %v2649_v30 = vadd.f32 %v2509_v12, %v1237_v1  ;;  %v2805_v12 = vld [vmem:[#allocation3 + $0x18] sm:$0xff] (!%p3657_p10) }
 0x319   : > { %2776 = vst [vmem:[#allocation2 + $0x350] sm:$0xff] %v2648_v34  ;;  %2775 = vst [vmem:[#allocation2 + $0x348] sm:$0xff] %v2647_v18  ;;  %v1999_v44 = vpop.f32.mrb[54].mxu0  ;;  %v2804_v34 = vld [vmem:[#allocation3 + $0x10] sm:$0xff] (!%p3657_p10)  ;;  %v2802_v18 = vld [vmem:[#allocation3] sm:$0xff] (!%p3657_p10) }
 0x31a   : > { %2777 = vst [vmem:[#allocation2 + $0x358] sm:$0xff] %v2649_v30  ;;  %v2650_v24 = vadd.f32 %v1999_v44, %v1238_v15  ;;  %v2513_v55 = vpop.f32.mrb[54].mxu1  ;;  %v2001_v10 = vpop.f32.mrb[55].mxu0  ;;  %v4602_v15 = vmov (!%p3657_p10), 0   ;;  %v2837_v30 = vmul.f32 (!%p3657_p10), 0.0009765625, %v2804_v34  ;;  %v2803_v44 = vld [vmem:[#allocation3 + $0x8] sm:$0xff] (!%p3657_p10) }
 0x31b   : > { %v2652_v46 = vadd.f32 %v2513_v55, %v1240_v41  ;;  %v2651_v31 = vadd.f32 %v2001_v10, %v1239_v13  ;;  %v2515_v39 = vpop.f32.mrb[55].mxu1  ;;  %4243 = vset.pattern.permute.xlu1 (!%p3657_p10), %v4602_v15  ;;  %4242 = vset.pattern.permute.xlu0 (!%p3657_p10), %v4602_v15  ;;  %v2835_v41 = vmul.f32 (!%p3657_p10), 0.0009765625, %v2802_v18  ;;  %v2838_v13 = vmul.f32 (!%p3657_p10), 0.0009765625, %v2805_v12 }
 0x31c   : > { %2778 = vst [vmem:[#allocation2 + $0x360] sm:$0xff] %v2650_v24  ;;  %v2653_v36 = vadd.f32 %v2515_v39, %v1241_v43  ;;  %v2807_v43 = vld [vmem:[#allocation3 + $0x28] sm:$0xff] (!%p3657_p10)  ;;  %v2806_v24 = vld [vmem:[#allocation3 + $0x20] sm:$0xff] (!%p3657_p10)  ;;  %v2836_v55 = vmul.f32 (!%p3657_p10), 0.0009765625, %v2803_v44 }
 0x31d   : > { %2780 = vst [vmem:[#allocation2 + $0x370] sm:$0xff] %v2652_v46  ;;  %2779 = vst [vmem:[#allocation2 + $0x368] sm:$0xff] %v2651_v31  ;;  %v2005_v29 = vpop.f32.mrb[56].mxu0  ;;  %v2840_v10 = vmul.f32 (!%p3657_p10), 0.0009765625, %v2807_v43  ;;  %v2869_v46 = vadd.f32 (!%p3657_p10), 1e-05, %v2837_v30 }
 0x31e   : > { %2781 = vst [vmem:[#allocation2 + $0x378] sm:$0xff] %v2653_v36  ;;  %v2654_v19 = vadd.f32 %v2005_v29, %v1242_v56  ;;  %v2519_v22 = vpop.f32.mrb[56].mxu1  ;;  %v2007_v9 = vpop.f32.mrb[57].mxu0  ;;  %v2867_v31 = vadd.f32 (!%p3657_p10), 1e-05, %v2835_v41  ;;  %v2839_v36 = vmul.f32 (!%p3657_p10), 0.0009765625, %v2806_v24 }
 0x31f   : > { %v2656_v37 = vadd.f32 %v2519_v22, %v1244_v25  ;;  %v2655_v2 = vadd.f32 %v2007_v9, %v1243_v53  ;;  %v2521_v52 = vpop.f32.mrb[57].mxu1  ;;  %v2870_v39 = vadd.f32 (!%p3657_p10), 1e-05, %v2838_v13  ;;  %v2868_v56 = vadd.f32 (!%p3657_p10), 1e-05, %v2836_v55  ;;  %v2809_v25 = vld [vmem:[#allocation3 + $0x38] sm:$0xff] (!%p3657_p10) }
 0x320   : > { %2782 = vst [vmem:[#allocation2 + $0x380] sm:$0xff] %v2654_v19  ;;  %v2657_v38 = vadd.f32 %v2521_v52, %v1245_v11  ;;  %4244 = vrsqrt.f32 (!%p3657_p10), %v2869_v46  ;;  %v2808_v53 = vld [vmem:[#allocation3 + $0x30] sm:$0xff] (!%p3657_p10)  ;;  %v2872_v29 = vadd.f32 (!%p3657_p10), 1e-05, %v2840_v10  ;;  %v2842_v11 = vmul.f32 (!%p3657_p10), 0.0009765625, %v2809_v25  ;;  %v2811_v9 = vld [vmem:[#allocation3 + $0x48] sm:$0xff] (!%p3657_p10) }
 0x321   : > { %2784 = vst [vmem:[#allocation2 + $0x390] sm:$0xff] %v2656_v37  ;;  %2783 = vst [vmem:[#allocation2 + $0x388] sm:$0xff] %v2655_v2  ;;  %v2011_v0 = vpop.f32.mrb[58].mxu0  ;;  %4246 = vrsqrt.f32 (!%p3657_p10), %v2867_v31  ;;  %v2871_v19 = vadd.f32 (!%p3657_p10), 1e-05, %v2839_v36  ;;  %v2841_v22 = vmul.f32 (!%p3657_p10), 0.0009765625, %v2808_v53 }
 0x322   : > { %2785 = vst [vmem:[#allocation2 + $0x398] sm:$0xff] %v2657_v38  ;;  %v2658_v17 = vadd.f32 %v2011_v0, %v1246_v58  ;;  %v2525_v33 = vpop.f32.mrb[58].mxu1  ;;  %v2013_v54 = vpop.f32.mrb[59].mxu0  ;;  %4248 = vrsqrt.f32 (!%p3657_p10), %v2870_v39  ;;  %v2810_v37 = vld [vmem:[#allocation3 + $0x40] sm:$0xff] (!%p3657_p10)  ;;  %v2874_v2 = vadd.f32 (!%p3657_p10), 1e-05, %v2842_v11 }
 0x323   : > { %v2660_v4 = vadd.f32 %v2525_v33, %v1248_v51  ;;  %v2659_v23 = vadd.f32 %v2013_v54, %v1247_v47  ;;  %v2527_v42 = vpop.f32.mrb[59].mxu1  ;;  %4250 = vrsqrt.f32 (!%p3657_p10), %v2868_v56  ;;  %v2844_v52 = vmul.f32 (!%p3657_p10), 0.0009765625, %v2811_v9  ;;  %v2813_v51 = vld [vmem:[#allocation3 + $0x58] sm:$0xff] (!%p3657_p10)  ;;  %v2812_v47 = vld [vmem:[#allocation3 + $0x50] sm:$0xff] (!%p3657_p10)  ;;  %v2823_v41 = vld [vmem:[#allocation3 + $0xa8] sm:$0xff] (!%p3657_p10) }
 0x324   : > { %2786 = vst [vmem:[#allocation2 + $0x3a0] sm:$0xff] %v2658_v17  ;;  %v2661_v40 = vadd.f32 %v2527_v42, %v1249_v21  ;;  %4252 = vrsqrt.f32 (!%p3657_p10), %v2872_v29  ;;  %v2873_v58 = vadd.f32 (!%p3657_p10), 1e-05, %v2841_v22  ;;  %v2843_v38 = vmul.f32 (!%p3657_p10), 0.0009765625, %v2810_v37  ;;  %v2822_v44 = vld [vmem:[#allocation3 + $0xa0] sm:$0xff] (!%p3657_p10)  ;;  %v2825_v31 = vld [vmem:[#allocation3 + $0xb8] sm:$0xff] (!%p3657_p10) }
 0x325   : > { %2788 = vst [vmem:[#allocation2 + $0x3b0] sm:$0xff] %v2660_v4  ;;  %2787 = vst [vmem:[#allocation2 + $0x3a8] sm:$0xff] %v2659_v23  ;;  %v2017_v7 = vpop.f32.mrb[60].mxu0  ;;  %4254 = vrsqrt.f32 (!%p3657_p10), %v2871_v19  ;;  %v2876_v21 = vadd.f32 (!%p3657_p10), 1e-05, %v2844_v52  ;;  %v2846_v17 = vmul.f32 (!%p3657_p10), 0.0009765625, %v2813_v51 }
 0x326   : > { %2789 = vst [vmem:[#allocation2 + $0x3b8] sm:$0xff] %v2661_v40  ;;  %v2662_v3 = vadd.f32 %v2017_v7, %v1250_v45  ;;  %v2531_v8 = vpop.f32.mrb[60].mxu1  ;;  %v2019_v16 = vpop.f32.mrb[61].mxu0  ;;  %4256 = vrsqrt.f32 (!%p3657_p10), %v2874_v2  ;;  %v2875_v54 = vadd.f32 (!%p3657_p10), 1e-05, %v2843_v38  ;;  %v2845_v4 = vmul.f32 (!%p3657_p10), 0.0009765625, %v2812_v47 }
 0x327   : > { %v2664_v62 = vadd.f32 %v2531_v8, %v1252_v27  ;;  %v2663_v14 = vadd.f32 %v2019_v16, %v1251_v35  ;;  %v2533_v48 = vpop.f32.mrb[61].mxu1  ;;  %4258 = vrsqrt.f32 (!%p3657_p10), %v2873_v58  ;;  %v2815_v23 = vld [vmem:[#allocation3 + $0x68] sm:$0xff] (!%p3657_p10)  ;;  %v2814_v45 = vld [vmem:[#allocation3 + $0x60] sm:$0xff] (!%p3657_p10)  ;;  %v2878_v27 = vadd.f32 (!%p3657_p10), 1e-05, %v2846_v17  ;;  %v2816_v16 = vld [vmem:[#allocation3 + $0x70] sm:$0xff] (!%p3657_p10) }
 0x328   : > { %2790 = vst [vmem:[#allocation2 + $0x3c0] sm:$0xff] %v2662_v3  ;;  %v2665_v61 = vadd.f32 %v2533_v48, %v1253_v49  ;;  %2801 = sbr.rel (%p3657_p10) target bundleno = 1006 (0x3ee), region = 52  ;;  %4260 = vrsqrt.f32 (!%p3657_p10), %v2876_v21  ;;  %v2848_v35 = vmul.f32 (!%p3657_p10), 0.0009765625, %v2815_v23  ;;  %v2877_v7 = vadd.f32 (!%p3657_p10), 1e-05, %v2845_v4  ;;  %v2817_v3 = vld [vmem:[#allocation3 + $0x78] sm:$0xff] (!%p3657_p10) }
 0x329   : > { %2792 = vst [vmem:[#allocation2 + $0x3d0] sm:$0xff] %v2664_v62  ;;  %2791 = vst [vmem:[#allocation2 + $0x3c8] sm:$0xff] %v2663_v14  ;;  %v2023_v28 = vpop.f32.mrb[62].mxu0  ;;  %4262 = vrsqrt.f32 (!%p3657_p10), %v2875_v54  ;;  %v2847_v49 = vmul.f32 (!%p3657_p10), 0.0009765625, %v2814_v45  ;;  %v2850_v48 = vmul.f32 (!%p3657_p10), 0.0009765625, %v2817_v3  ;;  %v2856_v55 = vmul.f32 (!%p3657_p10), 0.0009765625, %v2823_v41 }
 0x32a   : > { %2793 = vst [vmem:[#allocation2 + $0x3d8] sm:$0xff] %v2665_v61  ;;  %v2666_v6 = vadd.f32 %v2023_v28, %v1254_v20  ;;  %v2537_v26 = vpop.f32.mrb[62].mxu1  ;;  %v2025_v60 = vpop.f32.mrb[63].mxu0  ;;  %4264 = vrsqrt.f32 (!%p3657_p10), %v2878_v27  ;;  %v2880_v14 = vadd.f32 (!%p3657_p10), 1e-05, %v2848_v35  ;;  %v2849_v61 = vmul.f32 (!%p3657_p10), 0.0009765625, %v2816_v16 }
 0x32b   : > { %v2668_v1 = vadd.f32 %v2537_v26, %v1256_v5  ;;  %v2667_v32 = vadd.f32 %v2025_v60, %v1255_v63  ;;  %v2539_v50 = vpop.f32.mrb[63].mxu1  ;;  %v4245_v0 = vpop.eup (!%p3657_p10), %4244  ;;  %4266 = vrsqrt.f32 (!%p3657_p10), %v2877_v7  ;;  %v2879_v20 = vadd.f32 (!%p3657_p10), 1e-05, %v2847_v49  ;;  %v2819_v5 = vld [vmem:[#allocation3 + $0x88] sm:$0xff] (!%p3657_p10)  ;;  %v2818_v28 = vld [vmem:[#allocation3 + $0x80] sm:$0xff] (!%p3657_p10)  ;;  %v2824_v56 = vld [vmem:[#allocation3 + $0xb0] sm:$0xff] (!%p3657_p10) }
 0x32c   : > { %2794 = vst [vmem:[#allocation2 + $0x3e0] sm:$0xff] %v2666_v6  ;;  %v2669_v57 = vadd.f32 %v2539_v50, %v1257_v59  ;;  %v4247_v33 = vpop.eup (!%p3657_p10), %4246  ;;  %3071 = vperm.xlu1 (!%p3657_p10), %4243, %v4245_v0   ;;  %4268 = vrsqrt.f32 (!%p3657_p10), %v2880_v14  ;;  %v2882_v6 = vadd.f32 (!%p3657_p10), 1e-05, %v2850_v48  ;;  %v2852_v26 = vmul.f32 (!%p3657_p10), 0.0009765625, %v2819_v5  ;;  %v2827_v19 = vld [vmem:[#allocation3 + $0xc8] sm:$0xff] (!%p3657_p10)  ;;  %v2826_v9 = vld [vmem:[#allocation3 + $0xc0] sm:$0xff] (!%p3657_p10) }
 0x32d   : > { %2796 = vst [vmem:[#allocation2 + $0x3f0] sm:$0xff] %v2668_v1  ;;  %2795 = vst [vmem:[#allocation2 + $0x3e8] sm:$0xff] %v2667_v32  ;;  %v4249_v42 = vpop.eup (!%p3657_p10), %4248  ;;  %3061 = vperm.xlu0 (!%p3657_p10), %4242, %v4247_v33   ;;  %4270 = vrsqrt.f32 (!%p3657_p10), %v2879_v20  ;;  %v2881_v60 = vadd.f32 (!%p3657_p10), 1e-05, %v2849_v61  ;;  %v2851_v1 = vmul.f32 (!%p3657_p10), 0.0009765625, %v2818_v28  ;;  %v2821_v32 = vld [vmem:[#allocation3 + $0x98] sm:$0xff] (!%p3657_p10) }
 0x32e   : > { %2797 = vst [vmem:[#allocation2 + $0x3f8] sm:$0xff] %v2669_v57  ;;  %v4251_v40 = vpop.eup (!%p3657_p10), %4250  ;;  %v2820_v57 = vld [vmem:[#allocation3 + $0x90] sm:$0xff] (!%p3657_p10)  ;;  %4272 = vrsqrt.f32 (!%p3657_p10), %v2882_v6  ;;  %v2884_v18 = vadd.f32 (!%p3657_p10), 1e-05, %v2852_v26  ;;  %v2854_v12 = vmul.f32 (!%p3657_p10), 0.0009765625, %v2821_v32  ;;  %v2855_v46 = vmul.f32 (!%p3657_p10), 0.0009765625, %v2822_v44 }
 0x32f   : > { %v4253_v8 = vpop.eup %4252  ;;  %4274 = vrsqrt.f32 %v2881_v60  ;;  %v2883_v15 = vadd.f32 1e-05, %v2851_v1  ;;  %v2853_v30 = vmul.f32 0.0009765625, %v2820_v57  ;;  %v2888_v25 = vadd.f32 1e-05, %v2856_v55  ;;  %v2829_v51 = vld [vmem:[#allocation3 + $0xd8] sm:$0xff] }
 0x330   : > { %3076 = vperm.xlu1 %4243, %v4249_v42   ;;  %v4255_v62 = vpop.eup %4254  ;;  %4276 = vrsqrt.f32 %v2884_v18  ;;  %v2886_v24 = vadd.f32 1e-05, %v2854_v12  ;;  %v2858_v53 = vmul.f32 0.0009765625, %v2825_v31  ;;  %v2887_v29 = vadd.f32 1e-05, %v2855_v46  ;;  %v2828_v0 = vld [vmem:[#allocation3 + $0xd0] sm:$0xff] }
 0x331   : > { %3066 = vperm.xlu0 %4242, %v4251_v40   ;;  %v4257_v63 = vpop.eup %4256  ;;  %4278 = vrsqrt.f32 %v2883_v15  ;;  %v2885_v10 = vadd.f32 1e-05, %v2853_v30  ;;  %v2857_v11 = vmul.f32 0.0009765625, %v2824_v56  ;;  %v2860_v52 = vmul.f32 0.0009765625, %v2827_v19  ;;  %v2831_v23 = vld [vmem:[#allocation3 + $0xe8] sm:$0xff]  ;;  %v2830_v45 = vld [vmem:[#allocation3 + $0xe0] sm:$0xff] }
 0x332   : > { %v4259_v59 = vpop.eup %4258  ;;  %4280 = vrsqrt.f32 %v2886_v24  ;;  %v2890_v2 = vadd.f32 1e-05, %v2858_v53  ;;  %v2859_v38 = vmul.f32 0.0009765625, %v2826_v9  ;;  %v2862_v33 = vmul.f32 0.0009765625, %v2829_v51  ;;  %v2833_v3 = vld [vmem:[#allocation3 + $0xf8] sm:$0xff]  ;;  %v2832_v16 = vld [vmem:[#allocation3 + $0xf0] sm:$0xff] }
 0x333   : > { %v4261_v50 = vpop.eup %4260  ;;  %4282 = vrsqrt.f32 %v2885_v10  ;;  %v2889_v58 = vadd.f32 1e-05, %v2857_v11  ;;  %v2892_v17 = vadd.f32 1e-05, %v2860_v52  ;;  %v2861_v4 = vmul.f32 0.0009765625, %v2828_v0  ;;  %v2939_v18 = vld [vmem:[#allocation2 + $0x40] sm:$0xff] }
 0x334   : > { %3086 = vperm.xlu1 %4243, %v4253_v8   ;;  %v4263_v34 = vpop.eup %4262  ;;  %4284 = vrsqrt.f32 %v2888_v25  ;;  %v2891_v54 = vadd.f32 1e-05, %v2859_v38  ;;  %v2894_v27 = vadd.f32 1e-05, %v2862_v33  ;;  %v2864_v35 = vmul.f32 0.0009765625, %v2831_v23  ;;  %v2940_v12 = vld [vmem:[#allocation2 + $0x48] sm:$0xff] }
 0x335   : > { %3081 = vperm.xlu0 %4242, %v4255_v62   ;;  %v4265_v13 = vpop.eup %4264  ;;  %4286 = vrsqrt.f32 %v2887_v29  ;;  %v2893_v7 = vadd.f32 1e-05, %v2861_v4  ;;  %v2863_v49 = vmul.f32 0.0009765625, %v2830_v45  ;;  %v2866_v48 = vmul.f32 0.0009765625, %v2833_v3  ;;  %v2941_v15 = vld [vmem:[#allocation2 + $0x50] sm:$0xff]  ;;  %v2942_v30 = vld [vmem:[#allocation2 + $0x58] sm:$0xff] }
 0x336   : > { %v4267_v43 = vpop.eup %4266  ;;  %4288 = vrsqrt.f32 %v2890_v2  ;;  %v2896_v14 = vadd.f32 1e-05, %v2864_v35  ;;  %v2865_v61 = vmul.f32 0.0009765625, %v2832_v16  ;;  %v2931_v41 = vld [vmem:[#allocation2] sm:$0xff]  ;;  %v2933_v44 = vld [vmem:[#allocation2 + $0x10] sm:$0xff]  ;;  %v2938_v52 = vld [vmem:[#allocation2 + $0x38] sm:$0xff] }
 0x337   : > { %v4269_v39 = vpop.eup %4268  ;;  %4290 = vrsqrt.f32 %v2889_v58  ;;  %v2895_v20 = vadd.f32 1e-05, %v2863_v49  ;;  %v2898_v28 = vadd.f32 1e-05, %v2866_v48  ;;  %v2943_v56 = vld [vmem:[#allocation2 + $0x60] sm:$0xff]  ;;  %v2945_v19 = vld [vmem:[#allocation2 + $0x70] sm:$0xff] }
 0x338   : > { %3096 = vperm.xlu1 %4243, %v4257_v63   ;;  %v4271_v36 = vpop.eup %4270  ;;  %4292 = vrsqrt.f32 %v2892_v17  ;;  %v2935_v9 = vld [vmem:[#allocation2 + $0x20] sm:$0xff]  ;;  %v2937_v2 = vld [vmem:[#allocation2 + $0x30] sm:$0xff]  ;;  %v2952_v33 = vld [vmem:[#allocation2 + $0xa8] sm:$0xff] }
 0x339   : > { %3091 = vperm.xlu0 %4242, %v4259_v59   ;;  %v4273_v22 = vpop.eup %4272  ;;  %4294 = vrsqrt.f32 %v2891_v54  ;;  %v2897_v59 = vadd.f32 1e-05, %v2865_v61  ;;  %v2951_v17 = vld [vmem:[#allocation2 + $0xa0] sm:$0xff]  ;;  %v2953_v45 = vld [vmem:[#allocation2 + $0xb0] sm:$0xff]  ;;  %v2948_v35 = vld [vmem:[#allocation2 + $0x88] sm:$0xff] }
 0x33a   : > { %v4275_v37 = vpop.eup %4274  ;;  %4296 = vrsqrt.f32 %v2894_v27  ;;  %v2947_v27 = vld [vmem:[#allocation2 + $0x80] sm:$0xff]  ;;  %v2950_v49 = vld [vmem:[#allocation2 + $0x98] sm:$0xff]  ;;  %v2960_v61 = vld [vmem:[#allocation2 + $0xe8] sm:$0xff] }
 0x33b   : > { %v4277_v47 = vpop.eup %4276  ;;  %4298 = vrsqrt.f32 %v2893_v7  ;;  %v2949_v7 = vld [vmem:[#allocation2 + $0x90] sm:$0xff] }
 0x33c   : > { %3106 = vperm.xlu1 %4243, %v4261_v50   ;;  %v4279_v21 = vpop.eup %4278  ;;  %4300 = vrsqrt.f32 %v2896_v14 }
 0x33d   : > { %3101 = vperm.xlu0 %4242, %v4263_v34   ;;  %v4281_v42 = vpop.eup %4280  ;;  %4302 = vrsqrt.f32 %v2895_v20  ;;  %v2959_v20 = vld [vmem:[#allocation2 + $0xe0] sm:$0xff] }
 0x33e   : > { %v4283_v40 = vpop.eup %4282  ;;  %4304 = vrsqrt.f32 %v2898_v28 }
 0x33f   : > { %v4285_v8 = vpop.eup %4284  ;;  %4306 = vrsqrt.f32 %v2897_v59 }
 0x340   : > { %3116 = vperm.xlu1 %4243, %v4265_v13   ;;  %v4287_v62 = vpop.eup %4286  ;;  %v2932_v13 = vld [vmem:[#allocation2 + $0x8] sm:$0xff] }
 0x341   : > { %3111 = vperm.xlu0 %4242, %v4267_v43   ;;  %v4289_v5 = vpop.eup %4288  ;;  %v2934_v43 = vld [vmem:[#allocation2 + $0x18] sm:$0xff] }
 0x342   : > { %v4291_v63 = vpop.eup %4290 }
 0x343   : > { %v4293_v6 = vpop.eup %4292 }
 0x344   : > { %3126 = vperm.xlu1 %4243, %v4269_v39   ;;  %v4295_v26 = vpop.eup %4294 }
 0x345   : > { %3121 = vperm.xlu0 %4242, %v4271_v36   ;;  %v4297_v60 = vpop.eup %4296  ;;  %v2944_v36 = vld [vmem:[#allocation2 + $0x68] sm:$0xff] }
 0x346   : > { %v4299_v1 = vpop.eup %4298 }
 0x347   : > { %v4301_v32 = vpop.eup %4300 }
 0x348   : > { %3136 = vperm.xlu1 %4243, %v4273_v22   ;;  %v4303_v50 = vpop.eup %4302  ;;  %v2946_v22 = vld [vmem:[#allocation2 + $0x78] sm:$0xff] }
 0x349   : > { %3131 = vperm.xlu0 %4242, %v4275_v37   ;;  %v4305_v57 = vpop.eup %4304  ;;  %v2936_v37 = vld [vmem:[#allocation2 + $0x28] sm:$0xff] }
 0x34a   : > { %v4307_v34 = vpop.eup %4306 }
 0x34c   : > { %3146 = vperm.xlu1 %4243, %v4277_v47  }
 0x34d   : > { %3141 = vperm.xlu0 %4242, %v4279_v21  }
 0x350   : > { %3156 = vperm.xlu1 %4243, %v4281_v42  }
 0x351   : > { %3151 = vperm.xlu0 %4242, %v4283_v40   ;;  %v2954_v40 = vld [vmem:[#allocation2 + $0xb8] sm:$0xff] }
 0x354   : > { %3166 = vperm.xlu1 %4243, %v4285_v8  }
 0x355   : > { %3161 = vperm.xlu0 %4242, %v4287_v62  }
 0x358   : > { %3176 = vperm.xlu1 %4243, %v4289_v5  }
 0x359   : > { %3171 = vperm.xlu0 %4242, %v4291_v63  }
 0x35c   : > { %3186 = vperm.xlu1 %4243, %v4293_v6   ;;  %v2961_v6 = vld [vmem:[#allocation2 + $0xf0] sm:$0xff] }
 0x35d   : > { %3181 = vperm.xlu0 %4242, %v4295_v26   ;;  %v2962_v26 = vld [vmem:[#allocation2 + $0xf8] sm:$0xff] }
 0x360   : > { %3196 = vperm.xlu1 %4243, %v4297_v60   ;;  %v2955_v60 = vld [vmem:[#allocation2 + $0xc0] sm:$0xff] }
 0x361   : > { %3191 = vperm.xlu0 %4242, %v4299_v1   ;;  %v2956_v1 = vld [vmem:[#allocation2 + $0xc8] sm:$0xff] }
 0x364   : > { %3206 = vperm.xlu1 %4243, %v4301_v32   ;;  %v2957_v32 = vld [vmem:[#allocation2 + $0xd0] sm:$0xff] }
 0x365   : > { %3201 = vperm.xlu0 %4242, %v4303_v50   ;;  %v2958_v50 = vld [vmem:[#allocation2 + $0xd8] sm:$0xff] }
 0x368   : > { %3216 = vperm.xlu1 %4243, %v4305_v57  }
 0x369   : > { %3211 = vperm.xlu0 %4242, %v4307_v34  }
 0x3ab   : > { %v3072_v24 = vpop.permute.xlu1 %3071 }
 0x3ac   : > { %v3227_v55 = vmul.f32 %v3072_v24, %v2939_v18  ;;  %v3228_v10 = vmul.f32 %v3072_v24, %v2940_v12  ;;  %v3229_v46 = vmul.f32 %v3072_v24, %v2941_v15  ;;  %v3230_v31 = vmul.f32 %v3072_v24, %v2942_v30  ;;  %v3062_v39 = vpop.permute.xlu0 %3061 }
 0x3ad   : > { %v3219_v25 = vmul.f32 %v3062_v39, %v2931_v41  ;;  %v3220_v53 = vmul.f32 %v3062_v39, %v2932_v13  ;;  %v3221_v29 = vmul.f32 %v3062_v39, %v2933_v44  ;;  %v3222_v11 = vmul.f32 %v3062_v39, %v2934_v43  ;;  %v2967_v41 = vld [vmem:[#allocation2 + $0x120] sm:$0xff]  ;;  %v2968_v13 = vld [vmem:[#allocation2 + $0x128] sm:$0xff] }
 0x3ae   : > { %3355 = vst [vmem:[%s5015_s19 + $0x40] sm:$0xff] %v3227_v55  ;;  %3356 = vst [vmem:[%s5015_s19 + $0x48] sm:$0xff] %v3228_v10  ;;  %v2969_v10 = vld [vmem:[#allocation2 + $0x130] sm:$0xff]  ;;  %v2964_v39 = vld [vmem:[#allocation2 + $0x108] sm:$0xff] }
 0x3af   : > { %3357 = vst [vmem:[%s5015_s19 + $0x50] sm:$0xff] %v3229_v46  ;;  %3358 = vst [vmem:[%s5015_s19 + $0x58] sm:$0xff] %v3230_v31  ;;  %v3077_v58 = vpop.permute.xlu1 %3076  ;;  %v2970_v46 = vld [vmem:[#allocation2 + $0x138] sm:$0xff]  ;;  %v2963_v31 = vld [vmem:[#allocation2 + $0x100] sm:$0xff] }
 0x3b0   : > { %3347 = vst [vmem:[%s5015_s19] sm:$0xff] %v3219_v25  ;;  %3348 = vst [vmem:[%s5015_s19 + $0x8] sm:$0xff] %v3220_v53  ;;  %v3231_v38 = vmul.f32 %v3077_v58, %v2943_v56  ;;  %v3232_v51 = vmul.f32 %v3077_v58, %v2944_v36  ;;  %v3233_v47 = vmul.f32 %v3077_v58, %v2945_v19  ;;  %v3067_v21 = vpop.permute.xlu0 %3066  ;;  %v2965_v56 = vld [vmem:[#allocation2 + $0x110] sm:$0xff]  ;;  %v2966_v36 = vld [vmem:[#allocation2 + $0x118] sm:$0xff] }
 0x3b1   : > { %3349 = vst [vmem:[%s5015_s19 + $0x10] sm:$0xff] %v3221_v29  ;;  %3350 = vst [vmem:[%s5015_s19 + $0x18] sm:$0xff] %v3222_v11  ;;  %v3234_v0 = vmul.f32 %v3077_v58, %v2946_v22  ;;  %v3223_v54 = vmul.f32 %v3067_v21, %v2935_v9  ;;  %v3224_v4 = vmul.f32 %v3067_v21, %v2936_v37  ;;  %v2975_v9 = vld [vmem:[#allocation2 + $0x160] sm:$0xff]  ;;  %v2976_v37 = vld [vmem:[#allocation2 + $0x168] sm:$0xff] }
 0x3b2   : > { %v3225_v23 = vmul.f32 %v3067_v21, %v2937_v2  ;;  %v3226_v42 = vmul.f32 %v3067_v21, %v2938_v52  ;;  %3359 = vst [vmem:[%s5015_s19 + $0x60] sm:$0xff] %v3231_v38  ;;  %3360 = vst [vmem:[%s5015_s19 + $0x68] sm:$0xff] %v3232_v51  ;;  %v2977_v51 = vld [vmem:[#allocation2 + $0x170] sm:$0xff]  ;;  %v2972_v21 = vld [vmem:[#allocation2 + $0x148] sm:$0xff] }
 0x3b3   : > { %3361 = vst [vmem:[%s5015_s19 + $0x70] sm:$0xff] %v3233_v47  ;;  %3362 = vst [vmem:[%s5015_s19 + $0x78] sm:$0xff] %v3234_v0  ;;  %v3087_v3 = vpop.permute.xlu1 %3086  ;;  %v2978_v47 = vld [vmem:[#allocation2 + $0x178] sm:$0xff]  ;;  %v2971_v0 = vld [vmem:[#allocation2 + $0x140] sm:$0xff] }
 0x3b4   : > { %3351 = vst [vmem:[%s5015_s19 + $0x20] sm:$0xff] %v3223_v54  ;;  %3352 = vst [vmem:[%s5015_s19 + $0x28] sm:$0xff] %v3224_v4  ;;  %v3239_v8 = vmul.f32 %v3087_v3, %v2951_v17  ;;  %v3240_v16 = vmul.f32 %v3087_v3, %v2952_v33  ;;  %v3241_v62 = vmul.f32 %v3087_v3, %v2953_v45  ;;  %v3082_v48 = vpop.permute.xlu0 %3081  ;;  %v2973_v17 = vld [vmem:[#allocation2 + $0x150] sm:$0xff]  ;;  %v2974_v33 = vld [vmem:[#allocation2 + $0x158] sm:$0xff] }
 0x3b5   : > { %3353 = vst [vmem:[%s5015_s19 + $0x30] sm:$0xff] %v3225_v23  ;;  %3354 = vst [vmem:[%s5015_s19 + $0x38] sm:$0xff] %v3226_v42  ;;  %v3242_v14 = vmul.f32 %v3087_v3, %v2954_v40  ;;  %v3235_v5 = vmul.f32 %v3082_v48, %v2947_v27  ;;  %v3236_v63 = vmul.f32 %v3082_v48, %v2948_v35  ;;  %v2983_v27 = vld [vmem:[#allocation2 + $0x1a0] sm:$0xff]  ;;  %v2984_v35 = vld [vmem:[#allocation2 + $0x1a8] sm:$0xff] }
 0x3b6   : > { %v3237_v28 = vmul.f32 %v3082_v48, %v2949_v7  ;;  %v3238_v59 = vmul.f32 %v3082_v48, %v2950_v49  ;;  %3367 = vst [vmem:[%s5015_s19 + $0xa0] sm:$0xff] %v3239_v8  ;;  %3368 = vst [vmem:[%s5015_s19 + $0xa8] sm:$0xff] %v3240_v16  ;;  %v2985_v16 = vld [vmem:[#allocation2 + $0x1b0] sm:$0xff]  ;;  %v2980_v48 = vld [vmem:[#allocation2 + $0x188] sm:$0xff] }
 0x3b7   : > { %3369 = vst [vmem:[%s5015_s19 + $0xb0] sm:$0xff] %v3241_v62  ;;  %3370 = vst [vmem:[%s5015_s19 + $0xb8] sm:$0xff] %v3242_v14  ;;  %v3097_v57 = vpop.permute.xlu1 %3096  ;;  %v2986_v62 = vld [vmem:[#allocation2 + $0x1b8] sm:$0xff]  ;;  %v2979_v14 = vld [vmem:[#allocation2 + $0x180] sm:$0xff] }
 0x3b8   : > { %3363 = vst [vmem:[%s5015_s19 + $0x80] sm:$0xff] %v3235_v5  ;;  %3364 = vst [vmem:[%s5015_s19 + $0x88] sm:$0xff] %v3236_v63  ;;  %v3247_v34 = vmul.f32 %v3097_v57, %v2959_v20  ;;  %v3248_v18 = vmul.f32 %v3097_v57, %v2960_v61  ;;  %v3249_v12 = vmul.f32 %v3097_v57, %v2961_v6  ;;  %v3092_v30 = vpop.permute.xlu0 %3091  ;;  %v2981_v20 = vld [vmem:[#allocation2 + $0x190] sm:$0xff]  ;;  %v2982_v61 = vld [vmem:[#allocation2 + $0x198] sm:$0xff] }
 0x3b9   : > { %3365 = vst [vmem:[%s5015_s19 + $0x90] sm:$0xff] %v3237_v28  ;;  %3366 = vst [vmem:[%s5015_s19 + $0x98] sm:$0xff] %v3238_v59  ;;  %v3250_v15 = vmul.f32 %v3097_v57, %v2962_v26  ;;  %v3243_v44 = vmul.f32 %v3092_v30, %v2955_v60  ;;  %v3244_v43 = vmul.f32 %v3092_v30, %v2956_v1  ;;  %v2991_v60 = vld [vmem:[#allocation2 + $0x1e0] sm:$0xff]  ;;  %v2992_v1 = vld [vmem:[#allocation2 + $0x1e8] sm:$0xff] }
 0x3ba   : > { %v3245_v24 = vmul.f32 %v3092_v30, %v2957_v32  ;;  %v3246_v55 = vmul.f32 %v3092_v30, %v2958_v50  ;;  %3375 = vst [vmem:[%s5015_s19 + $0xe0] sm:$0xff] %v3247_v34  ;;  %3376 = vst [vmem:[%s5015_s19 + $0xe8] sm:$0xff] %v3248_v18  ;;  %v2993_v18 = vld [vmem:[#allocation2 + $0x1f0] sm:$0xff]  ;;  %v2988_v30 = vld [vmem:[#allocation2 + $0x1c8] sm:$0xff] }
 0x3bb   : > { %3377 = vst [vmem:[%s5015_s19 + $0xf0] sm:$0xff] %v3249_v12  ;;  %3378 = vst [vmem:[%s5015_s19 + $0xf8] sm:$0xff] %v3250_v15  ;;  %v3107_v25 = vpop.permute.xlu1 %3106  ;;  %v2994_v12 = vld [vmem:[#allocation2 + $0x1f8] sm:$0xff]  ;;  %v2987_v15 = vld [vmem:[#allocation2 + $0x1c0] sm:$0xff] }
 0x3bc   : > { %3371 = vst [vmem:[%s5015_s19 + $0xc0] sm:$0xff] %v3243_v44  ;;  %3372 = vst [vmem:[%s5015_s19 + $0xc8] sm:$0xff] %v3244_v43  ;;  %v3255_v53 = vmul.f32 %v3107_v25, %v2967_v41  ;;  %v3256_v29 = vmul.f32 %v3107_v25, %v2968_v13  ;;  %v3257_v11 = vmul.f32 %v3107_v25, %v2969_v10  ;;  %v3102_v22 = vpop.permute.xlu0 %3101  ;;  %v2989_v41 = vld [vmem:[#allocation2 + $0x1d0] sm:$0xff]  ;;  %v2990_v13 = vld [vmem:[#allocation2 + $0x1d8] sm:$0xff] }
 0x3bd   : > { %3373 = vst [vmem:[%s5015_s19 + $0xd0] sm:$0xff] %v3245_v24  ;;  %3374 = vst [vmem:[%s5015_s19 + $0xd8] sm:$0xff] %v3246_v55  ;;  %v3258_v19 = vmul.f32 %v3107_v25, %v2970_v46  ;;  %v3251_v2 = vmul.f32 %v3102_v22, %v2963_v31  ;;  %v3252_v52 = vmul.f32 %v3102_v22, %v2964_v39  ;;  %v2999_v31 = vld [vmem:[#allocation2 + $0x220] sm:$0xff]  ;;  %v3000_v39 = vld [vmem:[#allocation2 + $0x228] sm:$0xff] }
 0x3be   : > { %v3253_v58 = vmul.f32 %v3102_v22, %v2965_v56  ;;  %v3254_v38 = vmul.f32 %v3102_v22, %v2966_v36  ;;  %3383 = vst [vmem:[%s5015_s19 + $0x120] sm:$0xff] %v3255_v53  ;;  %3384 = vst [vmem:[%s5015_s19 + $0x128] sm:$0xff] %v3256_v29  ;;  %v3001_v29 = vld [vmem:[#allocation2 + $0x230] sm:$0xff]  ;;  %v2996_v22 = vld [vmem:[#allocation2 + $0x208] sm:$0xff] }
 0x3bf   : > { %3385 = vst [vmem:[%s5015_s19 + $0x130] sm:$0xff] %v3257_v11  ;;  %3386 = vst [vmem:[%s5015_s19 + $0x138] sm:$0xff] %v3258_v19  ;;  %v3117_v54 = vpop.permute.xlu1 %3116  ;;  %v3002_v11 = vld [vmem:[#allocation2 + $0x238] sm:$0xff]  ;;  %v2995_v19 = vld [vmem:[#allocation2 + $0x200] sm:$0xff] }
 0x3c0   : > { %3379 = vst [vmem:[%s5015_s19 + $0x100] sm:$0xff] %v3251_v2  ;;  %3380 = vst [vmem:[%s5015_s19 + $0x108] sm:$0xff] %v3252_v52  ;;  %v3263_v4 = vmul.f32 %v3117_v54, %v2975_v9  ;;  %v3264_v23 = vmul.f32 %v3117_v54, %v2976_v37  ;;  %v3265_v42 = vmul.f32 %v3117_v54, %v2977_v51  ;;  %v3112_v40 = vpop.permute.xlu0 %3111  ;;  %v2997_v9 = vld [vmem:[#allocation2 + $0x210] sm:$0xff]  ;;  %v2998_v37 = vld [vmem:[#allocation2 + $0x218] sm:$0xff] }
 0x3c1   : > { %3381 = vst [vmem:[%s5015_s19 + $0x110] sm:$0xff] %v3253_v58  ;;  %3382 = vst [vmem:[%s5015_s19 + $0x118] sm:$0xff] %v3254_v38  ;;  %v3266_v45 = vmul.f32 %v3117_v54, %v2978_v47  ;;  %v3259_v7 = vmul.f32 %v3112_v40, %v2971_v0  ;;  %v3260_v49 = vmul.f32 %v3112_v40, %v2972_v21  ;;  %v3007_v0 = vld [vmem:[#allocation2 + $0x260] sm:$0xff]  ;;  %v3008_v21 = vld [vmem:[#allocation2 + $0x268] sm:$0xff] }
 0x3c2   : > { %v3261_v3 = vmul.f32 %v3112_v40, %v2973_v17  ;;  %v3262_v8 = vmul.f32 %v3112_v40, %v2974_v33  ;;  %3391 = vst [vmem:[%s5015_s19 + $0x160] sm:$0xff] %v3263_v4  ;;  %3392 = vst [vmem:[%s5015_s19 + $0x168] sm:$0xff] %v3264_v23  ;;  %v3009_v23 = vld [vmem:[#allocation2 + $0x270] sm:$0xff]  ;;  %v3004_v40 = vld [vmem:[#allocation2 + $0x248] sm:$0xff] }
 0x3c3   : > { %3393 = vst [vmem:[%s5015_s19 + $0x170] sm:$0xff] %v3265_v42  ;;  %3394 = vst [vmem:[%s5015_s19 + $0x178] sm:$0xff] %v3266_v45  ;;  %v3127_v5 = vpop.permute.xlu1 %3126  ;;  %v3010_v42 = vld [vmem:[#allocation2 + $0x278] sm:$0xff]  ;;  %v3003_v45 = vld [vmem:[#allocation2 + $0x240] sm:$0xff] }
 0x3c4   : > { %3387 = vst [vmem:[%s5015_s19 + $0x140] sm:$0xff] %v3259_v7  ;;  %3388 = vst [vmem:[%s5015_s19 + $0x148] sm:$0xff] %v3260_v49  ;;  %v3271_v63 = vmul.f32 %v3127_v5, %v2983_v27  ;;  %v3272_v28 = vmul.f32 %v3127_v5, %v2984_v35  ;;  %v3273_v59 = vmul.f32 %v3127_v5, %v2985_v16  ;;  %v3122_v26 = vpop.permute.xlu0 %3121  ;;  %v3005_v27 = vld [vmem:[#allocation2 + $0x250] sm:$0xff]  ;;  %v3006_v35 = vld [vmem:[#allocation2 + $0x258] sm:$0xff] }
 0x3c5   : > { %3389 = vst [vmem:[%s5015_s19 + $0x150] sm:$0xff] %v3261_v3  ;;  %3390 = vst [vmem:[%s5015_s19 + $0x158] sm:$0xff] %v3262_v8  ;;  %v3274_v6 = vmul.f32 %v3127_v5, %v2986_v62  ;;  %v3267_v32 = vmul.f32 %v3122_v26, %v2979_v14  ;;  %v3268_v50 = vmul.f32 %v3122_v26, %v2980_v48  ;;  %v3015_v14 = vld [vmem:[#allocation2 + $0x2a0] sm:$0xff]  ;;  %v3016_v48 = vld [vmem:[#allocation2 + $0x2a8] sm:$0xff] }
 0x3c6   : > { %v3269_v57 = vmul.f32 %v3122_v26, %v2981_v20  ;;  %v3270_v34 = vmul.f32 %v3122_v26, %v2982_v61  ;;  %3399 = vst [vmem:[%s5015_s19 + $0x1a0] sm:$0xff] %v3271_v63  ;;  %3400 = vst [vmem:[%s5015_s19 + $0x1a8] sm:$0xff] %v3272_v28  ;;  %v3017_v28 = vld [vmem:[#allocation2 + $0x2b0] sm:$0xff]  ;;  %v3012_v26 = vld [vmem:[#allocation2 + $0x288] sm:$0xff] }
 0x3c7   : > { %3401 = vst [vmem:[%s5015_s19 + $0x1b0] sm:$0xff] %v3273_v59  ;;  %3402 = vst [vmem:[%s5015_s19 + $0x1b8] sm:$0xff] %v3274_v6  ;;  %v3137_v44 = vpop.permute.xlu1 %3136  ;;  %v3018_v59 = vld [vmem:[#allocation2 + $0x2b8] sm:$0xff]  ;;  %v3011_v6 = vld [vmem:[#allocation2 + $0x280] sm:$0xff] }
 0x3c8   : > { %3395 = vst [vmem:[%s5015_s19 + $0x180] sm:$0xff] %v3267_v32  ;;  %3396 = vst [vmem:[%s5015_s19 + $0x188] sm:$0xff] %v3268_v50  ;;  %v3279_v43 = vmul.f32 %v3137_v44, %v2991_v60  ;;  %v3280_v24 = vmul.f32 %v3137_v44, %v2992_v1  ;;  %v3281_v55 = vmul.f32 %v3137_v44, %v2993_v18  ;;  %v3132_v46 = vpop.permute.xlu0 %3131  ;;  %v3013_v60 = vld [vmem:[#allocation2 + $0x290] sm:$0xff]  ;;  %v3014_v1 = vld [vmem:[#allocation2 + $0x298] sm:$0xff] }
 0x3c9   : > { %3397 = vst [vmem:[%s5015_s19 + $0x190] sm:$0xff] %v3269_v57  ;;  %3398 = vst [vmem:[%s5015_s19 + $0x198] sm:$0xff] %v3270_v34  ;;  %v3282_v10 = vmul.f32 %v3137_v44, %v2994_v12  ;;  %v3275_v56 = vmul.f32 %v3132_v46, %v2987_v15  ;;  %v3276_v36 = vmul.f32 %v3132_v46, %v2988_v30  ;;  %v3023_v15 = vld [vmem:[#allocation2 + $0x2e0] sm:$0xff]  ;;  %v3024_v30 = vld [vmem:[#allocation2 + $0x2e8] sm:$0xff] }
 0x3ca   : > { %v3277_v25 = vmul.f32 %v3132_v46, %v2989_v41  ;;  %v3278_v53 = vmul.f32 %v3132_v46, %v2990_v13  ;;  %3407 = vst [vmem:[%s5015_s19 + $0x1e0] sm:$0xff] %v3279_v43  ;;  %3408 = vst [vmem:[%s5015_s19 + $0x1e8] sm:$0xff] %v3280_v24  ;;  %v3025_v24 = vld [vmem:[#allocation2 + $0x2f0] sm:$0xff]  ;;  %v3020_v46 = vld [vmem:[#allocation2 + $0x2c8] sm:$0xff] }
 0x3cb   : > { %3409 = vst [vmem:[%s5015_s19 + $0x1f0] sm:$0xff] %v3281_v55  ;;  %3410 = vst [vmem:[%s5015_s19 + $0x1f8] sm:$0xff] %v3282_v10  ;;  %v3147_v2 = vpop.permute.xlu1 %3146  ;;  %v3026_v55 = vld [vmem:[#allocation2 + $0x2f8] sm:$0xff]  ;;  %v3019_v10 = vld [vmem:[#allocation2 + $0x2c0] sm:$0xff] }
 0x3cc   : > { %3403 = vst [vmem:[%s5015_s19 + $0x1c0] sm:$0xff] %v3275_v56  ;;  %3404 = vst [vmem:[%s5015_s19 + $0x1c8] sm:$0xff] %v3276_v36  ;;  %v3287_v52 = vmul.f32 %v3147_v2, %v2999_v31  ;;  %v3288_v58 = vmul.f32 %v3147_v2, %v3000_v39  ;;  %v3289_v38 = vmul.f32 %v3147_v2, %v3001_v29  ;;  %v3142_v47 = vpop.permute.xlu0 %3141  ;;  %v3021_v31 = vld [vmem:[#allocation2 + $0x2d0] sm:$0xff]  ;;  %v3022_v39 = vld [vmem:[#allocation2 + $0x2d8] sm:$0xff] }
 0x3cd   : > { %3405 = vst [vmem:[%s5015_s19 + $0x1d0] sm:$0xff] %v3277_v25  ;;  %3406 = vst [vmem:[%s5015_s19 + $0x1d8] sm:$0xff] %v3278_v53  ;;  %v3290_v51 = vmul.f32 %v3147_v2, %v3002_v11  ;;  %v3283_v17 = vmul.f32 %v3142_v47, %v2995_v19  ;;  %v3284_v33 = vmul.f32 %v3142_v47, %v2996_v22  ;;  %v3031_v19 = vld [vmem:[#allocation2 + $0x320] sm:$0xff]  ;;  %v3032_v22 = vld [vmem:[#allocation2 + $0x328] sm:$0xff] }
 0x3ce   : > { %v3285_v54 = vmul.f32 %v3142_v47, %v2997_v9  ;;  %v3286_v4 = vmul.f32 %v3142_v47, %v2998_v37  ;;  %3415 = vst [vmem:[%s5015_s19 + $0x220] sm:$0xff] %v3287_v52  ;;  %3416 = vst [vmem:[%s5015_s19 + $0x228] sm:$0xff] %v3288_v58  ;;  %v3033_v58 = vld [vmem:[#allocation2 + $0x330] sm:$0xff]  ;;  %v3028_v47 = vld [vmem:[#allocation2 + $0x308] sm:$0xff] }
 0x3cf   : > { %3417 = vst [vmem:[%s5015_s19 + $0x230] sm:$0xff] %v3289_v38  ;;  %3418 = vst [vmem:[%s5015_s19 + $0x238] sm:$0xff] %v3290_v51  ;;  %v3157_v7 = vpop.permute.xlu1 %3156  ;;  %v3034_v38 = vld [vmem:[#allocation2 + $0x338] sm:$0xff]  ;;  %v3027_v51 = vld [vmem:[#allocation2 + $0x300] sm:$0xff] }
 0x3d0   : > { %3411 = vst [vmem:[%s5015_s19 + $0x200] sm:$0xff] %v3283_v17  ;;  %3412 = vst [vmem:[%s5015_s19 + $0x208] sm:$0xff] %v3284_v33  ;;  %v3295_v49 = vmul.f32 %v3157_v7, %v3007_v0  ;;  %v3296_v3 = vmul.f32 %v3157_v7, %v3008_v21  ;;  %v3297_v8 = vmul.f32 %v3157_v7, %v3009_v23  ;;  %v3152_v62 = vpop.permute.xlu0 %3151  ;;  %v3029_v0 = vld [vmem:[#allocation2 + $0x310] sm:$0xff]  ;;  %v3030_v21 = vld [vmem:[#allocation2 + $0x318] sm:$0xff] }
 0x3d1   : > { %3413 = vst [vmem:[%s5015_s19 + $0x210] sm:$0xff] %v3285_v54  ;;  %3414 = vst [vmem:[%s5015_s19 + $0x218] sm:$0xff] %v3286_v4  ;;  %v3298_v16 = vmul.f32 %v3157_v7, %v3010_v42  ;;  %v3291_v20 = vmul.f32 %v3152_v62, %v3003_v45  ;;  %v3292_v61 = vmul.f32 %v3152_v62, %v3004_v40  ;;  %v3039_v45 = vld [vmem:[#allocation2 + $0x360] sm:$0xff]  ;;  %v3040_v40 = vld [vmem:[#allocation2 + $0x368] sm:$0xff] }
 0x3d2   : > { %v3293_v5 = vmul.f32 %v3152_v62, %v3005_v27  ;;  %v3294_v63 = vmul.f32 %v3152_v62, %v3006_v35  ;;  %3423 = vst [vmem:[%s5015_s19 + $0x260] sm:$0xff] %v3295_v49  ;;  %3424 = vst [vmem:[%s5015_s19 + $0x268] sm:$0xff] %v3296_v3  ;;  %v3041_v3 = vld [vmem:[#allocation2 + $0x370] sm:$0xff]  ;;  %v3036_v62 = vld [vmem:[#allocation2 + $0x348] sm:$0xff] }
 0x3d3   : > { %3425 = vst [vmem:[%s5015_s19 + $0x270] sm:$0xff] %v3297_v8  ;;  %3426 = vst [vmem:[%s5015_s19 + $0x278] sm:$0xff] %v3298_v16  ;;  %v3167_v32 = vpop.permute.xlu1 %3166  ;;  %v3042_v8 = vld [vmem:[#allocation2 + $0x378] sm:$0xff]  ;;  %v3035_v16 = vld [vmem:[#allocation2 + $0x340] sm:$0xff] }
 0x3d4   : > { %3419 = vst [vmem:[%s5015_s19 + $0x240] sm:$0xff] %v3291_v20  ;;  %3420 = vst [vmem:[%s5015_s19 + $0x248] sm:$0xff] %v3292_v61  ;;  %v3303_v50 = vmul.f32 %v3167_v32, %v3015_v14  ;;  %v3304_v57 = vmul.f32 %v3167_v32, %v3016_v48  ;;  %v3305_v34 = vmul.f32 %v3167_v32, %v3017_v28  ;;  %v3162_v12 = vpop.permute.xlu0 %3161  ;;  %v3037_v14 = vld [vmem:[#allocation2 + $0x350] sm:$0xff]  ;;  %v3038_v48 = vld [vmem:[#allocation2 + $0x358] sm:$0xff] }
 0x3d5   : > { %3421 = vst [vmem:[%s5015_s19 + $0x250] sm:$0xff] %v3293_v5  ;;  %3422 = vst [vmem:[%s5015_s19 + $0x258] sm:$0xff] %v3294_v63  ;;  %v3306_v18 = vmul.f32 %v3167_v32, %v3018_v59  ;;  %v3299_v41 = vmul.f32 %v3162_v12, %v3011_v6  ;;  %v3300_v13 = vmul.f32 %v3162_v12, %v3012_v26  ;;  %v3047_v6 = vld [vmem:[#allocation2 + $0x3a0] sm:$0xff]  ;;  %v3048_v26 = vld [vmem:[#allocation2 + $0x3a8] sm:$0xff] }
 0x3d6   : > { %v3301_v44 = vmul.f32 %v3162_v12, %v3013_v60  ;;  %v3302_v43 = vmul.f32 %v3162_v12, %v3014_v1  ;;  %3431 = vst [vmem:[%s5015_s19 + $0x2a0] sm:$0xff] %v3303_v50  ;;  %3432 = vst [vmem:[%s5015_s19 + $0x2a8] sm:$0xff] %v3304_v57  ;;  %v3049_v57 = vld [vmem:[#allocation2 + $0x3b0] sm:$0xff]  ;;  %v3044_v12 = vld [vmem:[#allocation2 + $0x388] sm:$0xff] }
 0x3d7   : > { %3433 = vst [vmem:[%s5015_s19 + $0x2b0] sm:$0xff] %v3305_v34  ;;  %3434 = vst [vmem:[%s5015_s19 + $0x2b8] sm:$0xff] %v3306_v18  ;;  %v3177_v56 = vpop.permute.xlu1 %3176  ;;  %v3050_v34 = vld [vmem:[#allocation2 + $0x3b8] sm:$0xff]  ;;  %v3043_v18 = vld [vmem:[#allocation2 + $0x380] sm:$0xff] }
 0x3d8   : > { %3427 = vst [vmem:[%s5015_s19 + $0x280] sm:$0xff] %v3299_v41  ;;  %3428 = vst [vmem:[%s5015_s19 + $0x288] sm:$0xff] %v3300_v13  ;;  %v3311_v36 = vmul.f32 %v3177_v56, %v3023_v15  ;;  %v3312_v25 = vmul.f32 %v3177_v56, %v3024_v30  ;;  %v3313_v53 = vmul.f32 %v3177_v56, %v3025_v24  ;;  %v3172_v11 = vpop.permute.xlu0 %3171  ;;  %v3045_v15 = vld [vmem:[#allocation2 + $0x390] sm:$0xff]  ;;  %v3046_v30 = vld [vmem:[#allocation2 + $0x398] sm:$0xff] }
 0x3d9   : > { %3429 = vst [vmem:[%s5015_s19 + $0x290] sm:$0xff] %v3301_v44  ;;  %3430 = vst [vmem:[%s5015_s19 + $0x298] sm:$0xff] %v3302_v43  ;;  %v3314_v29 = vmul.f32 %v3177_v56, %v3026_v55  ;;  %v3307_v9 = vmul.f32 %v3172_v11, %v3019_v10  ;;  %v3308_v37 = vmul.f32 %v3172_v11, %v3020_v46  ;;  %v3055_v10 = vld [vmem:[#allocation2 + $0x3e0] sm:$0xff]  ;;  %v3056_v46 = vld [vmem:[#allocation2 + $0x3e8] sm:$0xff] }
 0x3da   : > { %v3309_v2 = vmul.f32 %v3172_v11, %v3021_v31  ;;  %v3310_v52 = vmul.f32 %v3172_v11, %v3022_v39  ;;  %3439 = vst [vmem:[%s5015_s19 + $0x2e0] sm:$0xff] %v3311_v36  ;;  %3440 = vst [vmem:[%s5015_s19 + $0x2e8] sm:$0xff] %v3312_v25  ;;  %v3057_v25 = vld [vmem:[#allocation2 + $0x3f0] sm:$0xff]  ;;  %v3052_v11 = vld [vmem:[#allocation2 + $0x3c8] sm:$0xff] }
 0x3db   : > { %3441 = vst [vmem:[%s5015_s19 + $0x2f0] sm:$0xff] %v3313_v53  ;;  %3442 = vst [vmem:[%s5015_s19 + $0x2f8] sm:$0xff] %v3314_v29  ;;  %v3187_v17 = vpop.permute.xlu1 %3186  ;;  %v3058_v53 = vld [vmem:[#allocation2 + $0x3f8] sm:$0xff]  ;;  %v3051_v29 = vld [vmem:[#allocation2 + $0x3c0] sm:$0xff] }
 0x3dc   : > { %3435 = vst [vmem:[%s5015_s19 + $0x2c0] sm:$0xff] %v3307_v9  ;;  %3436 = vst [vmem:[%s5015_s19 + $0x2c8] sm:$0xff] %v3308_v37  ;;  %v3319_v33 = vmul.f32 %v3187_v17, %v3031_v19  ;;  %v3320_v54 = vmul.f32 %v3187_v17, %v3032_v22  ;;  %v3321_v4 = vmul.f32 %v3187_v17, %v3033_v58  ;;  %v3182_v42 = vpop.permute.xlu0 %3181  ;;  %v3053_v19 = vld [vmem:[#allocation2 + $0x3d0] sm:$0xff]  ;;  %v3054_v22 = vld [vmem:[#allocation2 + $0x3d8] sm:$0xff] }
 0x3dd   : > { %3437 = vst [vmem:[%s5015_s19 + $0x2d0] sm:$0xff] %v3309_v2  ;;  %3438 = vst [vmem:[%s5015_s19 + $0x2d8] sm:$0xff] %v3310_v52  ;;  %v3322_v23 = vmul.f32 %v3187_v17, %v3034_v38  ;;  %v3315_v27 = vmul.f32 %v3182_v42, %v3027_v51  ;;  %v3316_v35 = vmul.f32 %v3182_v42, %v3028_v47 }
 0x3de   : > { %v3317_v7 = vmul.f32 %v3182_v42, %v3029_v0  ;;  %v3318_v49 = vmul.f32 %v3182_v42, %v3030_v21  ;;  %3447 = vst [vmem:[%s5015_s19 + $0x320] sm:$0xff] %v3319_v33  ;;  %3448 = vst [vmem:[%s5015_s19 + $0x328] sm:$0xff] %v3320_v54 }
 0x3df   : > { %3449 = vst [vmem:[%s5015_s19 + $0x330] sm:$0xff] %v3321_v4  ;;  %3450 = vst [vmem:[%s5015_s19 + $0x338] sm:$0xff] %v3322_v23  ;;  %v3197_v20 = vpop.permute.xlu1 %3196 }
 0x3e0   : > { %3443 = vst [vmem:[%s5015_s19 + $0x300] sm:$0xff] %v3315_v27  ;;  %3444 = vst [vmem:[%s5015_s19 + $0x308] sm:$0xff] %v3316_v35  ;;  %v3327_v61 = vmul.f32 %v3197_v20, %v3039_v45  ;;  %v3328_v5 = vmul.f32 %v3197_v20, %v3040_v40  ;;  %v3329_v63 = vmul.f32 %v3197_v20, %v3041_v3  ;;  %v3192_v59 = vpop.permute.xlu0 %3191 }
 0x3e1   : > { %3445 = vst [vmem:[%s5015_s19 + $0x310] sm:$0xff] %v3317_v7  ;;  %3446 = vst [vmem:[%s5015_s19 + $0x318] sm:$0xff] %v3318_v49  ;;  %v3330_v28 = vmul.f32 %v3197_v20, %v3042_v8  ;;  %v3323_v60 = vmul.f32 %v3192_v59, %v3035_v16  ;;  %v3324_v1 = vmul.f32 %v3192_v59, %v3036_v62 }
 0x3e2   : > { %v3325_v32 = vmul.f32 %v3192_v59, %v3037_v14  ;;  %v3326_v50 = vmul.f32 %v3192_v59, %v3038_v48  ;;  %3455 = vst [vmem:[%s5015_s19 + $0x360] sm:$0xff] %v3327_v61  ;;  %3456 = vst [vmem:[%s5015_s19 + $0x368] sm:$0xff] %v3328_v5 }
 0x3e3   : > { %3457 = vst [vmem:[%s5015_s19 + $0x370] sm:$0xff] %v3329_v63  ;;  %3458 = vst [vmem:[%s5015_s19 + $0x378] sm:$0xff] %v3330_v28  ;;  %v3207_v41 = vpop.permute.xlu1 %3206 }
 0x3e4   : > { %3451 = vst [vmem:[%s5015_s19 + $0x340] sm:$0xff] %v3323_v60  ;;  %3452 = vst [vmem:[%s5015_s19 + $0x348] sm:$0xff] %v3324_v1  ;;  %v3335_v13 = vmul.f32 %v3207_v41, %v3047_v6  ;;  %v3336_v44 = vmul.f32 %v3207_v41, %v3048_v26  ;;  %v3337_v43 = vmul.f32 %v3207_v41, %v3049_v57  ;;  %v3202_v55 = vpop.permute.xlu0 %3201 }
 0x3e5   : > { %3453 = vst [vmem:[%s5015_s19 + $0x350] sm:$0xff] %v3325_v32  ;;  %3454 = vst [vmem:[%s5015_s19 + $0x358] sm:$0xff] %v3326_v50  ;;  %v3338_v24 = vmul.f32 %v3207_v41, %v3050_v34  ;;  %v3331_v31 = vmul.f32 %v3202_v55, %v3043_v18  ;;  %v3332_v39 = vmul.f32 %v3202_v55, %v3044_v12 }
 0x3e6   : > { %v3333_v56 = vmul.f32 %v3202_v55, %v3045_v15  ;;  %v3334_v36 = vmul.f32 %v3202_v55, %v3046_v30  ;;  %3463 = vst [vmem:[%s5015_s19 + $0x3a0] sm:$0xff] %v3335_v13  ;;  %3464 = vst [vmem:[%s5015_s19 + $0x3a8] sm:$0xff] %v3336_v44 }
 0x3e7   : > { %3465 = vst [vmem:[%s5015_s19 + $0x3b0] sm:$0xff] %v3337_v43  ;;  %3466 = vst [vmem:[%s5015_s19 + $0x3b8] sm:$0xff] %v3338_v24  ;;  %v3217_v9 = vpop.permute.xlu1 %3216 }
 0x3e8   : > { %3459 = vst [vmem:[%s5015_s19 + $0x380] sm:$0xff] %v3331_v31  ;;  %3460 = vst [vmem:[%s5015_s19 + $0x388] sm:$0xff] %v3332_v39  ;;  %v3343_v37 = vmul.f32 %v3217_v9, %v3055_v10  ;;  %v3344_v2 = vmul.f32 %v3217_v9, %v3056_v46  ;;  %v3345_v52 = vmul.f32 %v3217_v9, %v3057_v25  ;;  %v3212_v38 = vpop.permute.xlu0 %3211 }
 0x3e9   : > { %3461 = vst [vmem:[%s5015_s19 + $0x390] sm:$0xff] %v3333_v56  ;;  %3462 = vst [vmem:[%s5015_s19 + $0x398] sm:$0xff] %v3334_v36  ;;  %v3346_v58 = vmul.f32 %v3217_v9, %v3058_v53  ;;  %v3339_v51 = vmul.f32 %v3212_v38, %v3051_v29  ;;  %v3340_v47 = vmul.f32 %v3212_v38, %v3052_v11 }
 0x3ea   : > { %v3341_v0 = vmul.f32 %v3212_v38, %v3053_v19  ;;  %v3342_v21 = vmul.f32 %v3212_v38, %v3054_v22  ;;  %3471 = vst [vmem:[%s5015_s19 + $0x3e0] sm:$0xff] %v3343_v37  ;;  %3472 = vst [vmem:[%s5015_s19 + $0x3e8] sm:$0xff] %v3344_v2 }
 0x3eb   : > { %3473 = vst [vmem:[%s5015_s19 + $0x3f0] sm:$0xff] %v3345_v52  ;;  %3474 = vst [vmem:[%s5015_s19 + $0x3f8] sm:$0xff] %v3346_v58 }
 0x3ec   : > { %3467 = vst [vmem:[%s5015_s19 + $0x3c0] sm:$0xff] %v3339_v51  ;;  %3468 = vst [vmem:[%s5015_s19 + $0x3c8] sm:$0xff] %v3340_v47 }
 0x3ed   : > { %3469 = vst [vmem:[%s5015_s19 + $0x3d0] sm:$0xff] %v3341_v0  ;;  %3470 = vst [vmem:[%s5015_s19 + $0x3d8] sm:$0xff] %v3342_v21 }
 0x3ee PF: > { %s6939_s1 = sld [smem:[#allocation22_spill]]  ;;  %s6940_s13 = sld [smem:[#allocation23_spill]] }
 0x3ef   : > { %s6942_s3 = sld [smem:[#allocation33_spill]]  ;;  %s3492_s7 = sshll.u32 %s5015_s19, 4  ;;  %s6685_s7 = int_to_ptr.vmem [resolvable:$true] %s3492_s7 }
 0x3f0   : > { %s6943_s4 = sld [smem:[#allocation63_spill]]  ;;  %s6694_s9 = scalar_lea.sflag [#allocation6], %s292_s18 }
 0x3f1   : > { %s4398_s10 = scalar_lea.vmem %s6685_s7, 16384  ;;  %s4603_s11 = smov [#allocation10]  }
 0x3f2   : > { %p4399_p11 = scmp.ne.s32.totalorder %s6685_s7, %s4398_s10  ;;  %s4402_s19 = sshll.u32 %s4603_s11, 4  ;;  %s4403_s19 = int_to_ptr.vmem [resolvable:$false] %s4402_s19 }
 0x3f3   : > { %s4404_s25 = scalar_lea.vmem %s4403_s19, 32768  ;;  %p4405_p0 = scmp.lt.s32.totalorder %s6685_s7, %s4403_s19 }
 0x3f4   : > { %s3660_s15 = sshll.u32 %s6939_s1, 2  ;;  %s3668_s24 = sshll.u32 %s6940_s13, 9 }
 0x3f5   : > { %s3489_s21 = sadd.s32 %s3668_s24, %s3660_s15  ;;  %p6944_p6 = scmp.ne.s32.totalorder %s6942_s3, 0 }
 0x3f6   : > { %s3662_s26 = sshll.u32 %s3489_s21, 7  ;;  %p4406_p9 = scmp.lt.s32.totalorder %s4404_s25, %s4398_s10 }
 0x3f7   : > { %s6690_s20 = scalar_lea.hbm %s6943_s4, %s3662_s26  ;;  %p4400_p13 = pnand %p4399_p11, %p6944_p6 }
 0x3f8   : > { %p4407_p12 = por %p4406_p9, %p4405_p0 }
 0x3f9   : > { %p4401_p8 = pneg %p4400_p13 }
 0x3fb   : > { %p4408_p3 = pnand %p4407_p12, %p4401_p8 }
 0x3fd   : > { %4411 = shalt.err (!%p4408_p3)
}
 0x3fe   : > { %s4412_s18 = scalar_lea.hbm %s6690_s20, 16384  ;;  %s4416_s13 = scalar_lea.hbm %s6943_s4, 131072 }
 0x3ff   : > { %p4413_p7 = scmp.ne.s32.totalorder %s6690_s20, %s4412_s18  ;;  %p4417_p1 = scmp.lt.u32.totalorder %s6690_s20, %s6943_s4 }
 0x400   : > { %p4418_p4 = scmp.lt.u32.totalorder %s4416_s13, %s4412_s18  ;;  %p4420_p11 = scmp.lt.u32.totalorder %s4412_s18, %s6690_s20 }
 0x401   : > { %p4414_p5 = pnand %p4413_p7, %p6944_p6 }
 0x402   : > { %p4419_p10 = por %p4418_p4, %p4417_p1 }
 0x403   : > { %p4415_p2 = pneg %p4414_p5 }
 0x404   : > { %p4421_p13 = por %p4420_p11, %p4419_p10 }
 0x406   : > { %p4422_p8 = pnand %p4421_p13, %p4415_p2 }
 0x408   : > { %4425 = shalt.err (!%p4422_p8)
}
 0x409   : > { %s4604_s24 = smov 512   ;;  %s4605_s21 = smov 2048  }
 0x40a   : > { %s4606_s26 = smov 32  }
 0x40b   : > { %4059 = dma.vmem_to_hbm [thread:$0]  (%p6944_p6), %s6685_s7, 16384, %s6690_s20, %s6694_s9, %s4604_s24, %s4605_s21, %s4606_s26  }
 0x40c PF: > { %s6945_s12 = sld [smem:[#allocation24_spill]]  ;;  %s6946_s30 = sld [smem:[#allocation15_spill]] }
 0x40d   : > { %s6947_s10 = sld [smem:[#allocation34_spill]] }
 0x412   : > { %p4076_p0 = scmp.ge.s32.totalorder %s6945_s12, 2  ;;  %s3507_s11 = sand.u32 1, %s6946_s30  }
 0x413   : > { %p6948_p9 = scmp.ne.s32.totalorder %s6947_s10, 0  ;;  %s3508_s19 = scalar_lea.sflag [#allocation6], %s3507_s11 }
 0x415   : > { %p4072_p12 = pnand %p4076_p0, %p6948_p9 }
 0x417   : > { %4515 = dma.done.wait (!%p4072_p12), %s3508_s19, 16384  }
 0x418   : > { %4517 = vsyncadd (!%p4072_p12), %s3508_s19, 4294950912  ;;  %s22_s30 = sadd.s32 1, %s6945_s12   ;;  %s6950_s12 = sld [smem:[#allocation16_spill]] }
 0x419   : > { %p6723_p3 = scmp.ge.s32.totalorder %s22_s30, 18   ;;  %s6951_s15 = sld [smem:[#allocation17_spill]] }
 0x41a   : > { %s6952_s3 = sld [smem:[#allocation31_spill]]  ;;  %s6953_s18 = sld [smem:[#allocation18_spill]] }
 0x41b   : > { %s6954_s19 = sld [smem:[#allocation19_spill]]  ;;  %s6955_s20 = sld [smem:[#allocation29_spill]] }
 0x41c   : > { %s6956_s21 = sld [smem:[#allocation20_spill]]  ;;  %s6957_s7 = sld [smem:[#allocation26_spill]] }
 0x41d   : > { %s6958_s9 = sld [smem:[#allocation27_spill]]  ;;  %s6959_s13 = smov %s4528_s14 }
 0x41e   : > { %s6960_s14 = smov %s4907_s22  ;;  %s6962_s16 = smov %s4540_s17 }
 0x41f   : > { %s6964_s22 = smov %s4564_s23  ;;  %s6965_s23 = smov %s4904_s8 }
 0x420   : > { %s6963_s17 = smov %s6952_s3  ;;  %s6966_s24 = smov %s4580_s27 }
 0x421   : > { %s6967_s25 = smov %s4584_s28  ;;  %s6968_s26 = smov %s4588_s29 }
 0x422   : > { %s6969_s27 = smov %s6957_s7  ;;  %s6971_s29 = smov %s6870_s5 }
 0x423   : > { %s6970_s28 = smov %s6958_s9  ;;  %21 = sbr.rel (!%p6723_p3) target bundleno = 18 (0x12), region = 109 }
 0x42a   :  { %3513 = vsyncpa [#allocation5], 1 }
 0x42b   :  { %3515 = vsyncpa [#allocation5 + $0x1], 1 }
 0x42c   :  { %3516 = vsyncpa [#allocation8], 1 }
 0x42d   :  { %3518 = vsyncpa [#allocation8 + $0x1], 1 }
 0x42e   :  { %3519 = vsyncpa [#allocation6], 1 }
 0x42f   :  { %3521 = vsyncpa [#allocation6 + $0x1], 1 }

</bundles_post_ra>
